<compile_context>
chip_gen: v7x
topology: tpu7x:2x2x1
jax: 0.10.0
libtpu: 0.0.40
codegen_flags: <defaults>
</compile_context>

<pallas_src>
import functools

import jax
import jax.numpy as jnp
from jax import lax
from jax.experimental import pallas as pl
from jax.experimental.pallas import tpu as pltpu


def _round_up(x, m):
    return (x + m - 1) // m * m


def _style_conv_kernel(x_ref, w_ref, g_ref, b_ref, out_ref, *,
                       H, W, negative_slope, apply_act):
    # x_ref: (1, H+2, W+2, Cin)  bf16   reflect-padded input tile
    # w_ref: (9, Cin, Cpad)      bf16   conv taps, Cout zero-padded to Cpad
    # g_ref, b_ref: (1, 1, Cpad) f32    AdaIN gamma / beta for this batch elem
    # out_ref: (1, H*W, Cpad)    f32
    xp = x_ref[0]                                    # (H+2, W+2, Cin)
    cin = xp.shape[-1]
    cpad = out_ref.shape[-1]
    hw = H * W

    # 3x3 conv (bias dropped: cancelled by instance norm) as 9 shifted matmuls.
    acc = jnp.zeros((hw, cpad), jnp.float32)
    tap = 0
    for dy in range(3):
        for dx in range(3):
            win = xp[dy:dy + H, dx:dx + W, :].reshape(hw, cin)
            acc = acc + jnp.dot(win, w_ref[tap],
                                preferred_element_type=jnp.float32)
            tap += 1

    # One-pass InstanceNorm2d(affine=False, eps=1e-8): biased variance over HW.
    inv_n = 1.0 / hw
    mean = jnp.sum(acc, axis=0, keepdims=True) * inv_n          # (1, Cpad)
    ex2 = jnp.sum(acc * acc, axis=0, keepdims=True) * inv_n
    var = jnp.maximum(ex2 - mean * mean, 0.0)
    inv_std = lax.rsqrt(var + 1e-8)

    # AdaIN folded into a single FMA pass: y = acc * scale + shift.
    scale = g_ref[0] * inv_std                                   # (1, Cpad)
    shift = b_ref[0] - mean * scale
    y = acc * scale + shift
    if apply_act:                                                # LeakyReLU(0.2)
        y = jnp.where(y >= 0, y, negative_slope * y)
    out_ref[0] = y.astype(out_ref.dtype)


def style_conv_layer(x_nhwc, gamma, beta, conv_w, *, apply_act,
                     negative_slope=0.2):
    """One StyleConvLayer. x_nhwc (B,H,W,Cin), gamma/beta (B,Cout) -> (B,H,W,Cout)."""
    B, H, W, Cin = x_nhwc.shape
    Cout = conv_w.shape[0]
    Cpad = _round_up(Cout, 128)
    HW = H * W

    # Reflect pad once in the wrapper (cheap) and feed the MXU bf16.
    xp = jnp.pad(x_nhwc, ((0, 0), (1, 1), (1, 1), (0, 0)),
                 mode="reflect").astype(jnp.bfloat16)

    # PyTorch conv weight (Cout, Cin, 3, 3) -> (9, Cin, Cpad), bf16, no bias.
    w = jnp.transpose(conv_w, (2, 3, 1, 0)).reshape(9, Cin, Cout)
    w = jnp.pad(w, ((0, 0), (0, 0), (0, Cpad - Cout))).astype(jnp.bfloat16)

    g = jnp.pad(gamma, ((0, 0), (0, Cpad - Cout))) \
        .reshape(B, 1, Cpad).astype(jnp.float32)
    bt = jnp.pad(beta, ((0, 0), (0, Cpad - Cout))) \
        .reshape(B, 1, Cpad).astype(jnp.float32)

    kernel = functools.partial(_style_conv_kernel, H=H, W=W,
                               negative_slope=negative_slope,
                               apply_act=apply_act)

    flops = 2 * B * HW * 9 * Cin * Cpad
    bytes_accessed = (xp.size * 2 + w.size * 2 + g.size * 4 + bt.size * 4
                      + B * HW * Cpad * 4)

    out = pl.pallas_call(
        kernel,
        out_shape=jax.ShapeDtypeStruct((B, HW, Cpad), jnp.float32),
        grid=(B,),
        in_specs=[
            pl.BlockSpec((1, H + 2, W + 2, Cin), lambda b: (b, 0, 0, 0)),
            pl.BlockSpec((9, Cin, Cpad), lambda b: (0, 0, 0)),
            pl.BlockSpec((1, 1, Cpad), lambda b: (b, 0, 0)),
            pl.BlockSpec((1, 1, Cpad), lambda b: (b, 0, 0)),
        ],
        out_specs=pl.BlockSpec((1, HW, Cpad), lambda b: (b, 0, 0)),
        compiler_params=pltpu.CompilerParams(
            dimension_semantics=("parallel",),
            vmem_limit_bytes=64 * 1024 * 1024),
        cost_estimate=pl.CostEstimate(flops=flops,
                                      transcendentals=B * Cpad,
                                      bytes_accessed=bytes_accessed),
    )(xp, w, g, bt)

    return out.reshape(B, H, W, Cpad)[:, :, :, :Cout]


def style_block(x_nchw, s, params):
    """StyleBlock.forward: x (B, Cin, H, W), s (B, E) -> (B, Cout, H, W)."""
    x = jnp.transpose(x_nchw, (0, 2, 3, 1))                  # NCHW -> NHWC

    # Style Linear hoisted out of the kernel (tiny (B,E)@(E,2C) GEMM).
    C1 = params["conv1_w"].shape[0]
    st1 = s @ params["style1_w"].T + params["style1_b"]
    x = style_conv_layer(x, st1[:, :C1], st1[:, C1:], params["conv1_w"],
                         apply_act=True)                     # LeakyReLU(0.2)

    C2 = params["conv2_w"].shape[0]
    st2 = s @ params["style2_w"].T + params["style2_b"]
    x = style_conv_layer(x, st2[:, :C2], st2[:, C2:], params["conv2_w"],
                         apply_act=False)                    # Identity

    return jnp.transpose(x, (0, 3, 1, 2))                    # NHWC -> NCHW


# ---------------- pure-JAX reference (for verification only) ----------------
def _ref_layer(x, s, cw, cb, sw, sb, act):
    xp = jnp.pad(x, ((0, 0), (0, 0), (1, 1), (1, 1)), mode="reflect")
    y = lax.conv_general_dilated(
        xp, cw, (1, 1), "VALID",
        dimension_numbers=("NCHW", "OIHW", "NCHW"),
        precision=lax.Precision.HIGHEST) + cb[None, :, None, None]
    mean = y.mean(axis=(2, 3), keepdims=True)
    var = ((y - mean) ** 2).mean(axis=(2, 3), keepdims=True)
    yn = (y - mean) / jnp.sqrt(var + 1e-8)
    style = s @ sw.T + sb
    C = cw.shape[0]
    gamma = style[:, :C][:, :, None, None]
    beta = style[:, C:][:, :, None, None]
    return act(gamma * yn + beta)


def ref_style_block(x, s, params):
    lrelu = lambda v: jnp.where(v >= 0, v, 0.2 * v)
    x = _ref_layer(x, s, params["conv1_w"], params["conv1_b"],
                   params["style1_w"], params["style1_b"], lrelu)
    x = _ref_layer(x, s, params["conv2_w"], params["conv2_b"],
                   params["style2_w"], params["style2_b"], lambda v: v)
    return x


if __name__ == "__main__":
    B, Cin, Cout, H, W, E = 2, 4, 8, 16, 16, 32
    key = jax.random.PRNGKey(0)
    ks = jax.random.split(key, 10)

    x = jax.random.normal(ks[0], (B, Cin, H, W), jnp.float32)
    s = jax.random.normal(ks[1], (B, E), jnp.float32)

    params = {
        "conv1_w": 0.1 * jax.random.normal(ks[2], (Cout, Cin, 3, 3), jnp.float32),
        "conv1_b": 0.1 * jax.random.normal(ks[3], (Cout,), jnp.float32),
        "style1_w": 0.1 * jax.random.normal(ks[4], (2 * Cout, E), jnp.float32),
        "style1_b": 0.1 * jax.random.normal(ks[5], (2 * Cout,), jnp.float32),
        "conv2_w": 0.1 * jax.random.normal(ks[6], (Cout, Cout, 3, 3), jnp.float32),
        "conv2_b": 0.1 * jax.random.normal(ks[7], (Cout,), jnp.float32),
        "style2_w": 0.1 * jax.random.normal(ks[8], (2 * Cout, E), jnp.float32),
        "style2_b": 0.1 * jax.random.normal(ks[9], (2 * Cout,), jnp.float32),
    }

    out = jax.block_until_ready(jax.jit(style_block)(x, s, params))
    ref = jax.block_until_ready(ref_style_block(x, s, params))

    assert out.shape == (B, Cout, H, W), out.shape
    max_err = float(jnp.max(jnp.abs(out - ref)))
    # bf16 MXU inputs (f32 accumulate) -> allow ~bf16-level tolerance vs f32 ref.
    assert jnp.allclose(out, ref, atol=3e-2, rtol=3e-2), max_err
    print("KERNEL_OK")
</pallas_src>

<mosaic_0001>
module attributes {stable_mosaic.version = 11 : i64} {
  func.func @_style_conv_kernel(%arg0: i32, %arg1: memref<1x18x18x4xbf16, #tpu.memory_space<vmem>>, %arg2: memref<9x4x128xbf16, #tpu.memory_space<vmem>>, %arg3: memref<1x1x128xf32, #tpu.memory_space<vmem>>, %arg4: memref<1x1x128xf32, #tpu.memory_space<vmem>>, %arg5: memref<1x256x128xf32, #tpu.memory_space<vmem>>) attributes {dimension_semantics = [#tpu.dimension_semantics<parallel>], iteration_bounds = array<i64: 2>, scalar_prefetch = 0 : i64, scratch_operands = 0 : i64, tpu.core_type = #tpu.core_type<tc>, window_params = [{transform_indices = @transform_0, window_bounds = array<i64: 1, 18, 18, 4>}, {pipeline_mode = #tpu.pipeline_mode<synchronous>, transform_indices = @transform_1, window_bounds = array<i64: 9, 4, 128>}, {transform_indices = @transform_2, window_bounds = array<i64: 1, 1, 128>}, {transform_indices = @transform_3, window_bounds = array<i64: 1, 1, 128>}, {transform_indices = @transform_4, window_bounds = array<i64: 1, 256, 128>}]} {
    %c0 = arith.constant 0 : index
    %c0_0 = arith.constant 0 : index
    %c0_1 = arith.constant 0 : index
    %c0_2 = arith.constant 0 : index
    %0 = vector.load %arg1[%c0, %c0_0, %c0_1, %c0_2] : memref<1x18x18x4xbf16, #tpu.memory_space<vmem>>, vector<1x18x18x4xbf16>
    %1 = vector.shape_cast %0 : vector<1x18x18x4xbf16> to vector<18x18x4xbf16>
    %cst = arith.constant 0.000000e+00 : f32
    %2 = vector.broadcast %cst : f32 to vector<256x128xf32>
    %3 = vector.extract_strided_slice %1 {offsets = [0, 0, 0], sizes = [16, 16, 4], strides = [1, 1, 1]} : vector<18x18x4xbf16> to vector<16x16x4xbf16>
    %4 = vector.shape_cast %3 : vector<16x16x4xbf16> to vector<256x4xbf16>
    %c0_3 = arith.constant 0 : index
    %c0_4 = arith.constant 0 : index
    %c0_5 = arith.constant 0 : index
    %5 = vector.load %arg2[%c0_3, %c0_4, %c0_5] : memref<9x4x128xbf16, #tpu.memory_space<vmem>>, vector<1x4x128xbf16>
    %6 = vector.shape_cast %5 : vector<1x4x128xbf16> to vector<4x128xbf16>
    %cst_6 = arith.constant dense<0.000000e+00> : vector<256x128xf32>
    %7 = tpu.matmul %4, %6, %cst_6 {dimension_numbers = #tpu.dot_dimension_numbers<[1], [0], [0], [1], [0, 0, 1, 1], [], []>} : vector<256x4xbf16>, vector<4x128xbf16>, vector<256x128xf32> -> vector<256x128xf32>
    %8 = arith.addf %2, %7 : vector<256x128xf32>
    %9 = vector.extract_strided_slice %1 {offsets = [0, 1, 0], sizes = [16, 16, 4], strides = [1, 1, 1]} : vector<18x18x4xbf16> to vector<16x16x4xbf16>
    %10 = vector.shape_cast %9 : vector<16x16x4xbf16> to vector<256x4xbf16>
    %c1 = arith.constant 1 : index
    %c0_7 = arith.constant 0 : index
    %c0_8 = arith.constant 0 : index
    %11 = vector.load %arg2[%c1, %c0_7, %c0_8] : memref<9x4x128xbf16, #tpu.memory_space<vmem>>, vector<1x4x128xbf16>
    %12 = vector.shape_cast %11 : vector<1x4x128xbf16> to vector<4x128xbf16>
    %cst_9 = arith.constant dense<0.000000e+00> : vector<256x128xf32>
    %13 = tpu.matmul %10, %12, %cst_9 {dimension_numbers = #tpu.dot_dimension_numbers<[1], [0], [0], [1], [0, 0, 1, 1], [], []>} : vector<256x4xbf16>, vector<4x128xbf16>, vector<256x128xf32> -> vector<256x128xf32>
    %14 = arith.addf %8, %13 : vector<256x128xf32>
    %15 = vector.extract_strided_slice %1 {offsets = [0, 2, 0], sizes = [16, 16, 4], strides = [1, 1, 1]} : vector<18x18x4xbf16> to vector<16x16x4xbf16>
    %16 = vector.shape_cast %15 : vector<16x16x4xbf16> to vector<256x4xbf16>
    %c2 = arith.constant 2 : index
    %c0_10 = arith.constant 0 : index
    %c0_11 = arith.constant 0 : index
    %17 = vector.load %arg2[%c2, %c0_10, %c0_11] : memref<9x4x128xbf16, #tpu.memory_space<vmem>>, vector<1x4x128xbf16>
    %18 = vector.shape_cast %17 : vector<1x4x128xbf16> to vector<4x128xbf16>
    %cst_12 = arith.constant dense<0.000000e+00> : vector<256x128xf32>
    %19 = tpu.matmul %16, %18, %cst_12 {dimension_numbers = #tpu.dot_dimension_numbers<[1], [0], [0], [1], [0, 0, 1, 1], [], []>} : vector<256x4xbf16>, vector<4x128xbf16>, vector<256x128xf32> -> vector<256x128xf32>
    %20 = arith.addf %14, %19 : vector<256x128xf32>
    %21 = vector.extract_strided_slice %1 {offsets = [1, 0, 0], sizes = [16, 16, 4], strides = [1, 1, 1]} : vector<18x18x4xbf16> to vector<16x16x4xbf16>
    %22 = vector.shape_cast %21 : vector<16x16x4xbf16> to vector<256x4xbf16>
    %c3 = arith.constant 3 : index
    %c0_13 = arith.constant 0 : index
    %c0_14 = arith.constant 0 : index
    %23 = vector.load %arg2[%c3, %c0_13, %c0_14] : memref<9x4x128xbf16, #tpu.memory_space<vmem>>, vector<1x4x128xbf16>
    %24 = vector.shape_cast %23 : vector<1x4x128xbf16> to vector<4x128xbf16>
    %cst_15 = arith.constant dense<0.000000e+00> : vector<256x128xf32>
    %25 = tpu.matmul %22, %24, %cst_15 {dimension_numbers = #tpu.dot_dimension_numbers<[1], [0], [0], [1], [0, 0, 1, 1], [], []>} : vector<256x4xbf16>, vector<4x128xbf16>, vector<256x128xf32> -> vector<256x128xf32>
    %26 = arith.addf %20, %25 : vector<256x128xf32>
    %27 = vector.extract_strided_slice %1 {offsets = [1, 1, 0], sizes = [16, 16, 4], strides = [1, 1, 1]} : vector<18x18x4xbf16> to vector<16x16x4xbf16>
    %28 = vector.shape_cast %27 : vector<16x16x4xbf16> to vector<256x4xbf16>
    %c4 = arith.constant 4 : index
    %c0_16 = arith.constant 0 : index
    %c0_17 = arith.constant 0 : index
    %29 = vector.load %arg2[%c4, %c0_16, %c0_17] : memref<9x4x128xbf16, #tpu.memory_space<vmem>>, vector<1x4x128xbf16>
    %30 = vector.shape_cast %29 : vector<1x4x128xbf16> to vector<4x128xbf16>
    %cst_18 = arith.constant dense<0.000000e+00> : vector<256x128xf32>
    %31 = tpu.matmul %28, %30, %cst_18 {dimension_numbers = #tpu.dot_dimension_numbers<[1], [0], [0], [1], [0, 0, 1, 1], [], []>} : vector<256x4xbf16>, vector<4x128xbf16>, vector<256x128xf32> -> vector<256x128xf32>
    %32 = arith.addf %26, %31 : vector<256x128xf32>
    %33 = vector.extract_strided_slice %1 {offsets = [1, 2, 0], sizes = [16, 16, 4], strides = [1, 1, 1]} : vector<18x18x4xbf16> to vector<16x16x4xbf16>
    %34 = vector.shape_cast %33 : vector<16x16x4xbf16> to vector<256x4xbf16>
    %c5 = arith.constant 5 : index
    %c0_19 = arith.constant 0 : index
    %c0_20 = arith.constant 0 : index
    %35 = vector.load %arg2[%c5, %c0_19, %c0_20] : memref<9x4x128xbf16, #tpu.memory_space<vmem>>, vector<1x4x128xbf16>
    %36 = vector.shape_cast %35 : vector<1x4x128xbf16> to vector<4x128xbf16>
    %cst_21 = arith.constant dense<0.000000e+00> : vector<256x128xf32>
    %37 = tpu.matmul %34, %36, %cst_21 {dimension_numbers = #tpu.dot_dimension_numbers<[1], [0], [0], [1], [0, 0, 1, 1], [], []>} : vector<256x4xbf16>, vector<4x128xbf16>, vector<256x128xf32> -> vector<256x128xf32>
    %38 = arith.addf %32, %37 : vector<256x128xf32>
    %39 = vector.extract_strided_slice %1 {offsets = [2, 0, 0], sizes = [16, 16, 4], strides = [1, 1, 1]} : vector<18x18x4xbf16> to vector<16x16x4xbf16>
    %40 = vector.shape_cast %39 : vector<16x16x4xbf16> to vector<256x4xbf16>
    %c6 = arith.constant 6 : index
    %c0_22 = arith.constant 0 : index
    %c0_23 = arith.constant 0 : index
    %41 = vector.load %arg2[%c6, %c0_22, %c0_23] : memref<9x4x128xbf16, #tpu.memory_space<vmem>>, vector<1x4x128xbf16>
    %42 = vector.shape_cast %41 : vector<1x4x128xbf16> to vector<4x128xbf16>
    %cst_24 = arith.constant dense<0.000000e+00> : vector<256x128xf32>
    %43 = tpu.matmul %40, %42, %cst_24 {dimension_numbers = #tpu.dot_dimension_numbers<[1], [0], [0], [1], [0, 0, 1, 1], [], []>} : vector<256x4xbf16>, vector<4x128xbf16>, vector<256x128xf32> -> vector<256x128xf32>
    %44 = arith.addf %38, %43 : vector<256x128xf32>
    %45 = vector.extract_strided_slice %1 {offsets = [2, 1, 0], sizes = [16, 16, 4], strides = [1, 1, 1]} : vector<18x18x4xbf16> to vector<16x16x4xbf16>
    %46 = vector.shape_cast %45 : vector<16x16x4xbf16> to vector<256x4xbf16>
    %c7 = arith.constant 7 : index
    %c0_25 = arith.constant 0 : index
    %c0_26 = arith.constant 0 : index
    %47 = vector.load %arg2[%c7, %c0_25, %c0_26] : memref<9x4x128xbf16, #tpu.memory_space<vmem>>, vector<1x4x128xbf16>
    %48 = vector.shape_cast %47 : vector<1x4x128xbf16> to vector<4x128xbf16>
    %cst_27 = arith.constant dense<0.000000e+00> : vector<256x128xf32>
    %49 = tpu.matmul %46, %48, %cst_27 {dimension_numbers = #tpu.dot_dimension_numbers<[1], [0], [0], [1], [0, 0, 1, 1], [], []>} : vector<256x4xbf16>, vector<4x128xbf16>, vector<256x128xf32> -> vector<256x128xf32>
    %50 = arith.addf %44, %49 : vector<256x128xf32>
    %51 = vector.extract_strided_slice %1 {offsets = [2, 2, 0], sizes = [16, 16, 4], strides = [1, 1, 1]} : vector<18x18x4xbf16> to vector<16x16x4xbf16>
    %52 = vector.shape_cast %51 : vector<16x16x4xbf16> to vector<256x4xbf16>
    %c8 = arith.constant 8 : index
    %c0_28 = arith.constant 0 : index
    %c0_29 = arith.constant 0 : index
    %53 = vector.load %arg2[%c8, %c0_28, %c0_29] : memref<9x4x128xbf16, #tpu.memory_space<vmem>>, vector<1x4x128xbf16>
    %54 = vector.shape_cast %53 : vector<1x4x128xbf16> to vector<4x128xbf16>
    %cst_30 = arith.constant dense<0.000000e+00> : vector<256x128xf32>
    %55 = tpu.matmul %52, %54, %cst_30 {dimension_numbers = #tpu.dot_dimension_numbers<[1], [0], [0], [1], [0, 0, 1, 1], [], []>} : vector<256x4xbf16>, vector<4x128xbf16>, vector<256x128xf32> -> vector<256x128xf32>
    %56 = arith.addf %50, %55 : vector<256x128xf32>
    %cst_31 = arith.constant dense<0.000000e+00> : vector<128xf32>
    %57 = vector.multi_reduction <add>, %56, %cst_31 [0] : vector<256x128xf32> to vector<128xf32>
    %58 = vector.shape_cast %57 : vector<128xf32> to vector<1x128xf32>
    %cst_32 = arith.constant 3.906250e-03 : f32
    %59 = vector.broadcast %cst_32 : f32 to vector<1x128xf32>
    %60 = arith.mulf %58, %59 : vector<1x128xf32>
    %61 = arith.mulf %56, %56 : vector<256x128xf32>
    %cst_33 = arith.constant dense<0.000000e+00> : vector<128xf32>
    %62 = vector.multi_reduction <add>, %61, %cst_33 [0] : vector<256x128xf32> to vector<128xf32>
    %63 = vector.shape_cast %62 : vector<128xf32> to vector<1x128xf32>
    %cst_34 = arith.constant 3.906250e-03 : f32
    %64 = vector.broadcast %cst_34 : f32 to vector<1x128xf32>
    %65 = arith.mulf %63, %64 : vector<1x128xf32>
    %66 = arith.mulf %60, %60 : vector<1x128xf32>
    %67 = arith.subf %65, %66 : vector<1x128xf32>
    %cst_35 = arith.constant 0.000000e+00 : f32
    %68 = vector.broadcast %cst_35 : f32 to vector<1x128xf32>
    %69 = arith.maximumf %67, %68 : vector<1x128xf32>
    %cst_36 = arith.constant 9.99999993E-9 : f32
    %70 = vector.broadcast %cst_36 : f32 to vector<1x128xf32>
    %71 = arith.addf %69, %70 : vector<1x128xf32>
    %72 = math.rsqrt %71 : vector<1x128xf32>
    %c0_37 = arith.constant 0 : index
    %c0_38 = arith.constant 0 : index
    %c0_39 = arith.constant 0 : index
    %73 = vector.load %arg3[%c0_37, %c0_38, %c0_39] : memref<1x1x128xf32, #tpu.memory_space<vmem>>, vector<1x1x128xf32>
    %74 = vector.shape_cast %73 : vector<1x1x128xf32> to vector<1x128xf32>
    %75 = arith.mulf %74, %72 : vector<1x128xf32>
    %c0_40 = arith.constant 0 : index
    %c0_41 = arith.constant 0 : index
    %c0_42 = arith.constant 0 : index
    %76 = vector.load %arg4[%c0_40, %c0_41, %c0_42] : memref<1x1x128xf32, #tpu.memory_space<vmem>>, vector<1x1x128xf32>
    %77 = vector.shape_cast %76 : vector<1x1x128xf32> to vector<1x128xf32>
    %78 = arith.mulf %60, %75 : vector<1x128xf32>
    %79 = arith.subf %77, %78 : vector<1x128xf32>
    %80 = vector.broadcast %75 : vector<1x128xf32> to vector<256x128xf32>
    %81 = arith.mulf %56, %80 : vector<256x128xf32>
    %82 = vector.broadcast %79 : vector<1x128xf32> to vector<256x128xf32>
    %83 = arith.addf %81, %82 : vector<256x128xf32>
    %cst_43 = arith.constant 0.000000e+00 : f32
    %84 = vector.broadcast %cst_43 : f32 to vector<256x128xf32>
    %85 = arith.cmpf oge, %83, %84 : vector<256x128xf32>
    %cst_44 = arith.constant 2.000000e-01 : f32
    %86 = vector.broadcast %cst_44 : f32 to vector<256x128xf32>
    %87 = arith.mulf %86, %83 : vector<256x128xf32>
    %88 = arith.select %85, %83, %87 : vector<256x128xi1>, vector<256x128xf32>
    %c0_45 = arith.constant 0 : index
    %c0_46 = arith.constant 0 : index
    %c0_47 = arith.constant 0 : index
    %89 = vector.load %arg5[%c0_45, %c0_46, %c0_47] : memref<1x256x128xf32, #tpu.memory_space<vmem>>, vector<1x256x128xf32>
    %90 = vector.shape_cast %89 : vector<1x256x128xf32> to vector<256x128xf32>
    %91 = vector.shape_cast %88 : vector<256x128xf32> to vector<1x256x128xf32>
    tpu.vector_store %arg5[%c0_45, %c0_46, %c0_47], %91 {strides = array<i32>} : memref<1x256x128xf32, #tpu.memory_space<vmem>>, vector<1x256x128xf32>,
    return
  }
  func.func @transform_0(%arg0: i32) -> (i32, i32, i32, i32) {
    %c0_i32 = arith.constant 0 : i32
    %c0_i32_0 = arith.constant 0 : i32
    %c0_i32_1 = arith.constant 0 : i32
    %c0_i32_2 = arith.constant 0 : i32
    return %arg0, %c0_i32, %c0_i32_0, %c0_i32_1 : i32, i32, i32, i32
  }
  func.func @transform_1(%arg0: i32) -> (i32, i32, i32) {
    %c0_i32 = arith.constant 0 : i32
    %c0_i32_0 = arith.constant 0 : i32
    %c0_i32_1 = arith.constant 0 : i32
    %c0_i32_2 = arith.constant 0 : i32
    return %c0_i32, %c0_i32_0, %c0_i32_1 : i32, i32, i32
  }
  func.func @transform_2(%arg0: i32) -> (i32, i32, i32) {
    %c0_i32 = arith.constant 0 : i32
    %c0_i32_0 = arith.constant 0 : i32
    %c0_i32_1 = arith.constant 0 : i32
    return %arg0, %c0_i32, %c0_i32_0 : i32, i32, i32
  }
  func.func @transform_3(%arg0: i32) -> (i32, i32, i32) {
    %c0_i32 = arith.constant 0 : i32
    %c0_i32_0 = arith.constant 0 : i32
    %c0_i32_1 = arith.constant 0 : i32
    return %arg0, %c0_i32, %c0_i32_0 : i32, i32, i32
  }
  func.func @transform_4(%arg0: i32) -> (i32, i32, i32) {
    %c0_i32 = arith.constant 0 : i32
    %c0_i32_0 = arith.constant 0 : i32
    %c0_i32_1 = arith.constant 0 : i32
    return %arg0, %c0_i32, %c0_i32_0 : i32, i32, i32
  }
}

module attributes {stable_mosaic.version = 11 : i64} {
  func.func @_style_conv_kernel(%arg0: i32, %arg1: memref<1x18x18x8xbf16, #tpu.memory_space<vmem>>, %arg2: memref<9x8x128xbf16, #tpu.memory_space<vmem>>, %arg3: memref<1x1x128xf32, #tpu.memory_space<vmem>>, %arg4: memref<1x1x128xf32, #tpu.memory_space<vmem>>, %arg5: memref<1x256x128xf32, #tpu.memory_space<vmem>>) attributes {dimension_semantics = [#tpu.dimension_semantics<parallel>], iteration_bounds = array<i64: 2>, scalar_prefetch = 0 : i64, scratch_operands = 0 : i64, tpu.core_type = #tpu.core_type<tc>, window_params = [{transform_indices = @transform_0, window_bounds = array<i64: 1, 18, 18, 8>}, {pipeline_mode = #tpu.pipeline_mode<synchronous>, transform_indices = @transform_1, window_bounds = array<i64: 9, 8, 128>}, {transform_indices = @transform_2, window_bounds = array<i64: 1, 1, 128>}, {transform_indices = @transform_3, window_bounds = array<i64: 1, 1, 128>}, {transform_indices = @transform_4, window_bounds = array<i64: 1, 256, 128>}]} {
    %c0 = arith.constant 0 : index
    %c0_0 = arith.constant 0 : index
    %c0_1 = arith.constant 0 : index
    %c0_2 = arith.constant 0 : index
    %0 = vector.load %arg1[%c0, %c0_0, %c0_1, %c0_2] : memref<1x18x18x8xbf16, #tpu.memory_space<vmem>>, vector<1x18x18x8xbf16>
    %1 = vector.shape_cast %0 : vector<1x18x18x8xbf16> to vector<18x18x8xbf16>
    %cst = arith.constant 0.000000e+00 : f32
    %2 = vector.broadcast %cst : f32 to vector<256x128xf32>
    %3 = vector.extract_strided_slice %1 {offsets = [0, 0, 0], sizes = [16, 16, 8], strides = [1, 1, 1]} : vector<18x18x8xbf16> to vector<16x16x8xbf16>
    %4 = vector.shape_cast %3 : vector<16x16x8xbf16> to vector<256x8xbf16>
    %c0_3 = arith.constant 0 : index
    %c0_4 = arith.constant 0 : index
    %c0_5 = arith.constant 0 : index
    %5 = vector.load %arg2[%c0_3, %c0_4, %c0_5] : memref<9x8x128xbf16, #tpu.memory_space<vmem>>, vector<1x8x128xbf16>
    %6 = vector.shape_cast %5 : vector<1x8x128xbf16> to vector<8x128xbf16>
    %cst_6 = arith.constant dense<0.000000e+00> : vector<256x128xf32>
    %7 = tpu.matmul %4, %6, %cst_6 {dimension_numbers = #tpu.dot_dimension_numbers<[1], [0], [0], [1], [0, 0, 1, 1], [], []>} : vector<256x8xbf16>, vector<8x128xbf16>, vector<256x128xf32> -> vector<256x128xf32>
    %8 = arith.addf %2, %7 : vector<256x128xf32>
    %9 = vector.extract_strided_slice %1 {offsets = [0, 1, 0], sizes = [16, 16, 8], strides = [1, 1, 1]} : vector<18x18x8xbf16> to vector<16x16x8xbf16>
    %10 = vector.shape_cast %9 : vector<16x16x8xbf16> to vector<256x8xbf16>
    %c1 = arith.constant 1 : index
    %c0_7 = arith.constant 0 : index
    %c0_8 = arith.constant 0 : index
    %11 = vector.load %arg2[%c1, %c0_7, %c0_8] : memref<9x8x128xbf16, #tpu.memory_space<vmem>>, vector<1x8x128xbf16>
    %12 = vector.shape_cast %11 : vector<1x8x128xbf16> to vector<8x128xbf16>
    %cst_9 = arith.constant dense<0.000000e+00> : vector<256x128xf32>
    %13 = tpu.matmul %10, %12, %cst_9 {dimension_numbers = #tpu.dot_dimension_numbers<[1], [0], [0], [1], [0, 0, 1, 1], [], []>} : vector<256x8xbf16>, vector<8x128xbf16>, vector<256x128xf32> -> vector<256x128xf32>
    %14 = arith.addf %8, %13 : vector<256x128xf32>
    %15 = vector.extract_strided_slice %1 {offsets = [0, 2, 0], sizes = [16, 16, 8], strides = [1, 1, 1]} : vector<18x18x8xbf16> to vector<16x16x8xbf16>
    %16 = vector.shape_cast %15 : vector<16x16x8xbf16> to vector<256x8xbf16>
    %c2 = arith.constant 2 : index
    %c0_10 = arith.constant 0 : index
    %c0_11 = arith.constant 0 : index
    %17 = vector.load %arg2[%c2, %c0_10, %c0_11] : memref<9x8x128xbf16, #tpu.memory_space<vmem>>, vector<1x8x128xbf16>
    %18 = vector.shape_cast %17 : vector<1x8x128xbf16> to vector<8x128xbf16>
    %cst_12 = arith.constant dense<0.000000e+00> : vector<256x128xf32>
    %19 = tpu.matmul %16, %18, %cst_12 {dimension_numbers = #tpu.dot_dimension_numbers<[1], [0], [0], [1], [0, 0, 1, 1], [], []>} : vector<256x8xbf16>, vector<8x128xbf16>, vector<256x128xf32> -> vector<256x128xf32>
    %20 = arith.addf %14, %19 : vector<256x128xf32>
    %21 = vector.extract_strided_slice %1 {offsets = [1, 0, 0], sizes = [16, 16, 8], strides = [1, 1, 1]} : vector<18x18x8xbf16> to vector<16x16x8xbf16>
    %22 = vector.shape_cast %21 : vector<16x16x8xbf16> to vector<256x8xbf16>
    %c3 = arith.constant 3 : index
    %c0_13 = arith.constant 0 : index
    %c0_14 = arith.constant 0 : index
    %23 = vector.load %arg2[%c3, %c0_13, %c0_14] : memref<9x8x128xbf16, #tpu.memory_space<vmem>>, vector<1x8x128xbf16>
    %24 = vector.shape_cast %23 : vector<1x8x128xbf16> to vector<8x128xbf16>
    %cst_15 = arith.constant dense<0.000000e+00> : vector<256x128xf32>
    %25 = tpu.matmul %22, %24, %cst_15 {dimension_numbers = #tpu.dot_dimension_numbers<[1], [0], [0], [1], [0, 0, 1, 1], [], []>} : vector<256x8xbf16>, vector<8x128xbf16>, vector<256x128xf32> -> vector<256x128xf32>
    %26 = arith.addf %20, %25 : vector<256x128xf32>
    %27 = vector.extract_strided_slice %1 {offsets = [1, 1, 0], sizes = [16, 16, 8], strides = [1, 1, 1]} : vector<18x18x8xbf16> to vector<16x16x8xbf16>
    %28 = vector.shape_cast %27 : vector<16x16x8xbf16> to vector<256x8xbf16>
    %c4 = arith.constant 4 : index
    %c0_16 = arith.constant 0 : index
    %c0_17 = arith.constant 0 : index
    %29 = vector.load %arg2[%c4, %c0_16, %c0_17] : memref<9x8x128xbf16, #tpu.memory_space<vmem>>, vector<1x8x128xbf16>
    %30 = vector.shape_cast %29 : vector<1x8x128xbf16> to vector<8x128xbf16>
    %cst_18 = arith.constant dense<0.000000e+00> : vector<256x128xf32>
    %31 = tpu.matmul %28, %30, %cst_18 {dimension_numbers = #tpu.dot_dimension_numbers<[1], [0], [0], [1], [0, 0, 1, 1], [], []>} : vector<256x8xbf16>, vector<8x128xbf16>, vector<256x128xf32> -> vector<256x128xf32>
    %32 = arith.addf %26, %31 : vector<256x128xf32>
    %33 = vector.extract_strided_slice %1 {offsets = [1, 2, 0], sizes = [16, 16, 8], strides = [1, 1, 1]} : vector<18x18x8xbf16> to vector<16x16x8xbf16>
    %34 = vector.shape_cast %33 : vector<16x16x8xbf16> to vector<256x8xbf16>
    %c5 = arith.constant 5 : index
    %c0_19 = arith.constant 0 : index
    %c0_20 = arith.constant 0 : index
    %35 = vector.load %arg2[%c5, %c0_19, %c0_20] : memref<9x8x128xbf16, #tpu.memory_space<vmem>>, vector<1x8x128xbf16>
    %36 = vector.shape_cast %35 : vector<1x8x128xbf16> to vector<8x128xbf16>
    %cst_21 = arith.constant dense<0.000000e+00> : vector<256x128xf32>
    %37 = tpu.matmul %34, %36, %cst_21 {dimension_numbers = #tpu.dot_dimension_numbers<[1], [0], [0], [1], [0, 0, 1, 1], [], []>} : vector<256x8xbf16>, vector<8x128xbf16>, vector<256x128xf32> -> vector<256x128xf32>
    %38 = arith.addf %32, %37 : vector<256x128xf32>
    %39 = vector.extract_strided_slice %1 {offsets = [2, 0, 0], sizes = [16, 16, 8], strides = [1, 1, 1]} : vector<18x18x8xbf16> to vector<16x16x8xbf16>
    %40 = vector.shape_cast %39 : vector<16x16x8xbf16> to vector<256x8xbf16>
    %c6 = arith.constant 6 : index
    %c0_22 = arith.constant 0 : index
    %c0_23 = arith.constant 0 : index
    %41 = vector.load %arg2[%c6, %c0_22, %c0_23] : memref<9x8x128xbf16, #tpu.memory_space<vmem>>, vector<1x8x128xbf16>
    %42 = vector.shape_cast %41 : vector<1x8x128xbf16> to vector<8x128xbf16>
    %cst_24 = arith.constant dense<0.000000e+00> : vector<256x128xf32>
    %43 = tpu.matmul %40, %42, %cst_24 {dimension_numbers = #tpu.dot_dimension_numbers<[1], [0], [0], [1], [0, 0, 1, 1], [], []>} : vector<256x8xbf16>, vector<8x128xbf16>, vector<256x128xf32> -> vector<256x128xf32>
    %44 = arith.addf %38, %43 : vector<256x128xf32>
    %45 = vector.extract_strided_slice %1 {offsets = [2, 1, 0], sizes = [16, 16, 8], strides = [1, 1, 1]} : vector<18x18x8xbf16> to vector<16x16x8xbf16>
    %46 = vector.shape_cast %45 : vector<16x16x8xbf16> to vector<256x8xbf16>
    %c7 = arith.constant 7 : index
    %c0_25 = arith.constant 0 : index
    %c0_26 = arith.constant 0 : index
    %47 = vector.load %arg2[%c7, %c0_25, %c0_26] : memref<9x8x128xbf16, #tpu.memory_space<vmem>>, vector<1x8x128xbf16>
    %48 = vector.shape_cast %47 : vector<1x8x128xbf16> to vector<8x128xbf16>
    %cst_27 = arith.constant dense<0.000000e+00> : vector<256x128xf32>
    %49 = tpu.matmul %46, %48, %cst_27 {dimension_numbers = #tpu.dot_dimension_numbers<[1], [0], [0], [1], [0, 0, 1, 1], [], []>} : vector<256x8xbf16>, vector<8x128xbf16>, vector<256x128xf32> -> vector<256x128xf32>
    %50 = arith.addf %44, %49 : vector<256x128xf32>
    %51 = vector.extract_strided_slice %1 {offsets = [2, 2, 0], sizes = [16, 16, 8], strides = [1, 1, 1]} : vector<18x18x8xbf16> to vector<16x16x8xbf16>
    %52 = vector.shape_cast %51 : vector<16x16x8xbf16> to vector<256x8xbf16>
    %c8 = arith.constant 8 : index
    %c0_28 = arith.constant 0 : index
    %c0_29 = arith.constant 0 : index
    %53 = vector.load %arg2[%c8, %c0_28, %c0_29] : memref<9x8x128xbf16, #tpu.memory_space<vmem>>, vector<1x8x128xbf16>
    %54 = vector.shape_cast %53 : vector<1x8x128xbf16> to vector<8x128xbf16>
    %cst_30 = arith.constant dense<0.000000e+00> : vector<256x128xf32>
    %55 = tpu.matmul %52, %54, %cst_30 {dimension_numbers = #tpu.dot_dimension_numbers<[1], [0], [0], [1], [0, 0, 1, 1], [], []>} : vector<256x8xbf16>, vector<8x128xbf16>, vector<256x128xf32> -> vector<256x128xf32>
    %56 = arith.addf %50, %55 : vector<256x128xf32>
    %cst_31 = arith.constant dense<0.000000e+00> : vector<128xf32>
    %57 = vector.multi_reduction <add>, %56, %cst_31 [0] : vector<256x128xf32> to vector<128xf32>
    %58 = vector.shape_cast %57 : vector<128xf32> to vector<1x128xf32>
    %cst_32 = arith.constant 3.906250e-03 : f32
    %59 = vector.broadcast %cst_32 : f32 to vector<1x128xf32>
    %60 = arith.mulf %58, %59 : vector<1x128xf32>
    %61 = arith.mulf %56, %56 : vector<256x128xf32>
    %cst_33 = arith.constant dense<0.000000e+00> : vector<128xf32>
    %62 = vector.multi_reduction <add>, %61, %cst_33 [0] : vector<256x128xf32> to vector<128xf32>
    %63 = vector.shape_cast %62 : vector<128xf32> to vector<1x128xf32>
    %cst_34 = arith.constant 3.906250e-03 : f32
    %64 = vector.broadcast %cst_34 : f32 to vector<1x128xf32>
    %65 = arith.mulf %63, %64 : vector<1x128xf32>
    %66 = arith.mulf %60, %60 : vector<1x128xf32>
    %67 = arith.subf %65, %66 : vector<1x128xf32>
    %cst_35 = arith.constant 0.000000e+00 : f32
    %68 = vector.broadcast %cst_35 : f32 to vector<1x128xf32>
    %69 = arith.maximumf %67, %68 : vector<1x128xf32>
    %cst_36 = arith.constant 9.99999993E-9 : f32
    %70 = vector.broadcast %cst_36 : f32 to vector<1x128xf32>
    %71 = arith.addf %69, %70 : vector<1x128xf32>
    %72 = math.rsqrt %71 : vector<1x128xf32>
    %c0_37 = arith.constant 0 : index
    %c0_38 = arith.constant 0 : index
    %c0_39 = arith.constant 0 : index
    %73 = vector.load %arg3[%c0_37, %c0_38, %c0_39] : memref<1x1x128xf32, #tpu.memory_space<vmem>>, vector<1x1x128xf32>
    %74 = vector.shape_cast %73 : vector<1x1x128xf32> to vector<1x128xf32>
    %75 = arith.mulf %74, %72 : vector<1x128xf32>
    %c0_40 = arith.constant 0 : index
    %c0_41 = arith.constant 0 : index
    %c0_42 = arith.constant 0 : index
    %76 = vector.load %arg4[%c0_40, %c0_41, %c0_42] : memref<1x1x128xf32, #tpu.memory_space<vmem>>, vector<1x1x128xf32>
    %77 = vector.shape_cast %76 : vector<1x1x128xf32> to vector<1x128xf32>
    %78 = arith.mulf %60, %75 : vector<1x128xf32>
    %79 = arith.subf %77, %78 : vector<1x128xf32>
    %80 = vector.broadcast %75 : vector<1x128xf32> to vector<256x128xf32>
    %81 = arith.mulf %56, %80 : vector<256x128xf32>
    %82 = vector.broadcast %79 : vector<1x128xf32> to vector<256x128xf32>
    %83 = arith.addf %81, %82 : vector<256x128xf32>
    %c0_43 = arith.constant 0 : index
    %c0_44 = arith.constant 0 : index
    %c0_45 = arith.constant 0 : index
    %84 = vector.load %arg5[%c0_43, %c0_44, %c0_45] : memref<1x256x128xf32, #tpu.memory_space<vmem>>, vector<1x256x128xf32>
    %85 = vector.shape_cast %84 : vector<1x256x128xf32> to vector<256x128xf32>
    %86 = vector.shape_cast %83 : vector<256x128xf32> to vector<1x256x128xf32>
    tpu.vector_store %arg5[%c0_43, %c0_44, %c0_45], %86 {strides = array<i32>} : memref<1x256x128xf32, #tpu.memory_space<vmem>>, vector<1x256x128xf32>,
    return
  }
  func.func @transform_0(%arg0: i32) -> (i32, i32, i32, i32) {
    %c0_i32 = arith.constant 0 : i32
    %c0_i32_0 = arith.constant 0 : i32
    %c0_i32_1 = arith.constant 0 : i32
    %c0_i32_2 = arith.constant 0 : i32
    return %arg0, %c0_i32, %c0_i32_0, %c0_i32_1 : i32, i32, i32, i32
  }
  func.func @transform_1(%arg0: i32) -> (i32, i32, i32) {
    %c0_i32 = arith.constant 0 : i32
    %c0_i32_0 = arith.constant 0 : i32
    %c0_i32_1 = arith.constant 0 : i32
    %c0_i32_2 = arith.constant 0 : i32
    return %c0_i32, %c0_i32_0, %c0_i32_1 : i32, i32, i32
  }
  func.func @transform_2(%arg0: i32) -> (i32, i32, i32) {
    %c0_i32 = arith.constant 0 : i32
    %c0_i32_0 = arith.constant 0 : i32
    %c0_i32_1 = arith.constant 0 : i32
    return %arg0, %c0_i32, %c0_i32_0 : i32, i32, i32
  }
  func.func @transform_3(%arg0: i32) -> (i32, i32, i32) {
    %c0_i32 = arith.constant 0 : i32
    %c0_i32_0 = arith.constant 0 : i32
    %c0_i32_1 = arith.constant 0 : i32
    return %arg0, %c0_i32, %c0_i32_0 : i32, i32, i32
  }
  func.func @transform_4(%arg0: i32) -> (i32, i32, i32) {
    %c0_i32 = arith.constant 0 : i32
    %c0_i32_0 = arith.constant 0 : i32
    %c0_i32_1 = arith.constant 0 : i32
    return %arg0, %c0_i32, %c0_i32_0 : i32, i32, i32
  }
}

</mosaic_0001>

<bundles_post_ra>
// kernel: style_block.2
= control target key start
LH: loop header
LB: loop body
LE: loop exit
PB: predicated region body
PF: predicated region fallthrough
CT: control target
= control target key end

     0   :  { %s6418_s0 = inlined_call_operand.hbm [shape: bf16[2,18,18,4], index: 0, kind: input, shape index: {}]   ;;  %s6419_s1 = inlined_call_operand.hbm [shape: bf16[9,4,128], index: 1, kind: input, shape index: {}]   ;;  %s6420_s2 = inlined_call_operand.hbm [shape: f32[2,1,128], index: 2, kind: input, shape index: {}]   ;;  %s6421_s3 = inlined_call_operand.hbm [shape: f32[2,1,128], index: 3, kind: input, shape index: {}]   ;;  %s6422_s4 = inlined_call_operand.hbm [shape: f32[2,256,128], index: 4, kind: output, shape index: {}]  }
   0x1   :  { %6462 = sst [smem:[#allocation34_spill]] %s6418_s0 }
   0x2   :  { %6463 = sst [smem:[#allocation35_spill]] %s6420_s2 }
   0x3   :  { %9 = vsyncpa [#allocation3], 0 }
   0x4   :  { %11 = vsyncpa [#allocation3 + $0x1], 0 }
   0x5   :  { %12 = vsyncpa [#allocation6], 0 }
   0x6   :  { %13 = vsyncpa [#allocation4], 0 }
   0x7   :  { %15 = vsyncpa [#allocation4 + $0x1], 0  ;;  %s4751_s15 = smov 0   ;;  %s4753_s16 = smov 0  }
   0x8   :  { %s4755_s17 = smov 0   ;;  %s4757_s18 = smov 0  }
   0x9 LB: > { %s4772_s19 = sadd.s32 1, %s4713_s18   ;;  %s28_s20 = sadd.s32 1, %s4709_s17  ;;  %s4713_s18 = sphi %s4757_s18, %s6545_s18   ;;  %s4709_s17 = sphi %s4755_s17, %s6544_s17   ;;  %s4705_s16 = sphi %s4753_s16, %s6543_s16   ;;  %s4701_s15 = sphi %s4751_s15, %s6542_s15  }
   0xa   : > { %s25_s21 = ssub.s32 %s4713_s18, %s4772_s19  ;;  %p6423_p0 = scmp.ne.s32.totalorder %s4709_s17, %s4705_s16 }
   0xb   : > { %p26_p1 = scmp.eq.s32.totalorder %s25_s21, 0  ;;  %p36_p2 = scmp.eq.s32.totalorder %s4713_s18, 0 }
   0xc   : > { %p4455_p4 = scmp.lt.s32.totalorder %s4713_s18, 2  ;;  %s177_s23 = sand.u32 1, %s4713_s18  }
   0xd   : > { %s4783_s22 = scalar_select %p26_p1, %s4709_s17, %s28_s20  }
   0xe   : > { %p37_p5 = por %p36_p2, %p6423_p0  ;;  %s4790_s24 = sand.u32 1, %s4709_s17  }
   0xf   : > { %s4421_s25 = smul.u32 216, %s4790_s24  ;;  %s6465_s0 = sld [smem:[#allocation34_spill]] }
  0x10   : > { %p4793_p6 = pnand %p4455_p4, %p37_p5  ;;  %s4422_s27 = smul.u32 3456, %s4713_s18 }
  0x11   : > { %s181_s5 = scalar_lea.vmem [#allocation2], %s4421_s25  ;;  %s4805_s7 = scalar_lea.sflag [#allocation3], %s177_s23 }
  0x12   : > { %s6464_s26 = scalar_select %p4793_p6, 1, 0 }
  0x13   : > { %s188_s6 = sshll.u32 %s181_s5, 4  ;;  %p4811_p8 = pneg %p4793_p6  ;;  %s4803_s6 = int_to_ptr.vmem [resolvable:$true] %s188_s6 }
  0x15   : > { %s4801_s30 = scalar_lea.hbm %s6465_s0, %s4422_s27  ;;  %s4526_s12 = scalar_lea.hbm %s6465_s0, 6912 }
  0x16   : > { %s4521_s8 = scalar_lea.hbm %s4801_s30, 3456  ;;  %p4527_p11 = scmp.lt.u32.totalorder %s4801_s30, %s6465_s0 }
  0x17   : > { %p4522_p7 = scmp.ne.s32.totalorder %s4801_s30, %s4521_s8  ;;  %p4528_p12 = scmp.lt.u32.totalorder %s4526_s12, %s4521_s8 }
  0x18   : > { %s6466_s9 = scalar_select %p4811_p8, 1, 0 }
  0x19   : > { %p4524_p9 = pnand %p4811_p8, %p4522_p7  ;;  %p4529_p13 = por %p4528_p12, %p4527_p11 }
  0x1a   : > { %p4530_p1 = scmp.lt.u32.totalorder %s4521_s8, %s4801_s30 }
  0x1b   : > { %p4525_p10 = pneg %p4524_p9 }
  0x1c   : > { %p4531_p2 = por %p4530_p1, %p4529_p13 }
  0x1e   : > { %p4532_p4 = pnand %p4531_p2, %p4525_p10 }
  0x20   : > { %4535 = shalt.err (!%p4532_p4)
}
  0x21   : > { %s4536_s20 = scalar_lea.vmem %s4803_s6, 3456  ;;  %s4715_s21 = smov [#allocation2]  }
  0x22   : > { %p4537_p5 = scmp.ne.s32.totalorder %s4803_s6, %s4536_s20  ;;  %s4541_s23 = sshll.u32 %s4715_s21, 4  ;;  %s4542_s23 = int_to_ptr.vmem [resolvable:$false] %s4541_s23 }
  0x23   : > { %s4543_s25 = scalar_lea.vmem %s4542_s23, 6912  ;;  %p4544_p3 = scmp.lt.s32.totalorder %s4803_s6, %s4542_s23 }
  0x24   : > { %p4539_p7 = pnand %p4537_p5, %p4811_p8  ;;  %p4545_p0 = scmp.lt.s32.totalorder %s4543_s25, %s4536_s20 }
  0x26   : > { %p4540_p9 = pneg %p4539_p7  ;;  %p4546_p11 = por %p4545_p0, %p4544_p3 }
  0x28   : > { %p4547_p12 = pnand %p4546_p11, %p4540_p9 }
  0x2a   : > { %4550 = shalt.err (!%p4547_p12)
}
  0x2b   : > { %s4716_s27 = smov 64   ;;  %s4717_s28 = smov 4  }
  0x2c   : > { %4443 = dma.hbm_to_vmem [thread:$0]  (!%p4793_p6), %s4801_s30, 3456, %s4803_s6, %s4805_s7, %s4716_s27, %s4716_s27, %s4717_s28  }
  0x2d   : > { %s3467_s29 = sshll.u32 %s4713_s18, 4  ;;  %s6467_s2 = sld [smem:[#allocation35_spill]] }
  0x2e   : > { %s201_s11 = scalar_lea.vmem [#allocation7], %s4790_s24 }
  0x2f   : > { %s208_s12 = sshll.u32 %s201_s11, 4  ;;  %s209_s12 = int_to_ptr.vmem [resolvable:$true] %s208_s12 }
  0x33   : > { %s4841_s10 = scalar_lea.hbm %s6467_s2, %s3467_s29  ;;  %s4556_s14 = scalar_lea.hbm %s6467_s2, 32 }
  0x34   : > { %s4551_s13 = scalar_lea.hbm %s4841_s10, 16  ;;  %p4557_p13 = scmp.lt.u32.totalorder %s4841_s10, %s6467_s2 }
  0x35   : > { %p4552_p0 = scmp.ne.s32.totalorder %s4841_s10, %s4551_s13  ;;  %p4558_p1 = scmp.lt.u32.totalorder %s4556_s14, %s4551_s13 }
  0x36   : > { %p4560_p4 = scmp.lt.u32.totalorder %s4551_s13, %s4841_s10 }
  0x37   : > { %p4554_p3 = pnand %p4552_p0, %p4811_p8  ;;  %p4559_p2 = por %p4558_p1, %p4557_p13 }
  0x39   : > { %p4555_p10 = pneg %p4554_p3  ;;  %p4561_p5 = por %p4560_p4, %p4559_p2 }
  0x3b   : > { %p4562_p7 = pnand %p4561_p5, %p4555_p10 }
  0x3d   : > { %4565 = shalt.err (!%p4562_p7)
}
  0x3e   : > { %s4566_s23 = scalar_lea.vmem %s209_s12, 16  ;;  %s4718_s25 = smov [#allocation7]  }
  0x3f   : > { %p4567_p9 = scmp.ne.s32.totalorder %s209_s12, %s4566_s23  ;;  %s4571_s27 = sshll.u32 %s4718_s25, 4  ;;  %s4572_s27 = int_to_ptr.vmem [resolvable:$false] %s4571_s27 }
  0x40   : > { %s4573_s28 = scalar_lea.vmem %s4572_s27, 32  ;;  %p4574_p0 = scmp.lt.s32.totalorder %s209_s12, %s4572_s27 }
  0x41   : > { %p4569_p11 = pnand %p4567_p9, %p4811_p8  ;;  %p4575_p3 = scmp.lt.s32.totalorder %s4573_s28, %s4566_s23 }
  0x43   : > { %p4570_p12 = pneg %p4569_p11  ;;  %p4576_p6 = por %p4575_p3, %p4574_p0 }
  0x45   : > { %p4577_p1 = pnand %p4576_p6, %p4570_p12 }
  0x47   : > { %4580 = shalt.err (!%p4577_p1)
}
  0x48   : > { %p6468_p13 = scmp.ne.s32.totalorder %s6464_s26, 0  ;;  %s4863_s5 = sadd.s32 4294967295, %s4713_s18  }
  0x49   : > { %s3462_s8 = sadd.s32 4294967294, %s4713_s18   ;;  %p41_p6 = scmp.ne.s32.totalorder %s4705_s16, %s4701_s15 }
  0x4a   : > { %4446 = dma.hbm_to_vmem [thread:$0]  (!%p6468_p13), %s4841_s10, 16, %s209_s12, %s4805_s7  }
  0x4b   : > { %p6426_p10 = scmp.eq.s32.totalorder %s4863_s5, 0  ;;  %p138_p2 = scmp.eq.s32.totalorder %s4863_s5, 1 }
  0x4c   : > { %p144_p4 = scmp.eq.s32.totalorder %s3462_s8, 1  ;;  %p3463_p5 = scmp.ge.s32.totalorder %s4713_s18, 1 }
  0x4d   : > { %p4873_p7 = por %p6426_p10, %p41_p6  ;;  %p6470_p9 = scmp.ne.s32.totalorder %s4709_s17, %s4705_s16 }
  0x4e   : > { %p4884_p12 = por %p144_p4, %p41_p6  ;;  %p151_p0 = scmp.lt.s32.totalorder %s4713_s18, 3 }
  0x4f   : > { %s6469_s11 = scalar_select %p4873_p7, 1, 0 }
  0x50   : > { %p4880_p11 = por %p138_p2, %p6470_p9  ;;  %p4889_p3 = pnand %p3463_p5, %p151_p0 }
  0x51   : > { %s6472_s12 = scalar_select %p4884_p12, 1, 0 }
  0x52   : > { %s6471_s10 = scalar_select %p4880_p11, 1, 0 }
  0x53   : > { %s6473_s13 = scalar_select %p4889_p3, 1, 0 }
  0x54   : > { %s4719_s30 = smov [#allocation5]   ;;  %p4436_p1 = pneg %p4889_p3 }
  0x55   : > { %s163_s6 = sshll.u32 %s4719_s30, 4  ;;  %s218_s20 = scalar_lea.vmem [#allocation8], %s4790_s24  ;;  %s4893_s6 = int_to_ptr.vmem [resolvable:$true] %s163_s6 }
  0x56   : > { %p4899_p2 = pnand %p4436_p1, %p6426_p10  ;;  %s225_s21 = sshll.u32 %s218_s20, 4  ;;  %s4911_s21 = int_to_ptr.vmem [resolvable:$true] %s225_s21 }
  0x57   : > { %s4909_s27 = scalar_lea.hbm %s6421_s3, %s3467_s29  ;;  %s4581_s30 = scalar_lea.hbm %s6419_s1, 288 }
  0x58   : > { %p4582_p6 = scmp.ne.s32.totalorder %s6419_s1, %s4581_s30  ;;  %p4583_p4 = pneg %p4899_p2 }
  0x59   : > { %p4588_p0 = scmp.lt.u32.totalorder %s4581_s30, %s6419_s1 }
  0x5a   : > { %p4584_p5 = pnand %p4583_p4, %p4582_p6 }
  0x5c   : > { %p4585_p9 = pneg %p4584_p5 }
  0x5e   : > { %p4590_p1 = pnand %p4588_p0, %p4585_p9 }
  0x60   : > { %4593 = shalt.err (!%p4590_p1)
}
  0x61   : > { %s4594_s29 = scalar_lea.vmem %s4893_s6, 288  ;;  %p4602_p7 = scmp.lt.s32.totalorder %s4893_s6, %s4893_s6 }
  0x62   : > { %p4595_p10 = scmp.ne.s32.totalorder %s4893_s6, %s4594_s29  ;;  %p4603_p3 = scmp.lt.s32.totalorder %s4594_s29, %s4594_s29 }
  0x64   : > { %p4597_p12 = pnand %p4595_p10, %p4583_p4  ;;  %p4604_p13 = por %p4603_p3, %p4602_p7 }
  0x66   : > { %p4598_p11 = pneg %p4597_p12 }
  0x68   : > { %p4605_p8 = pnand %p4604_p13, %p4598_p11 }
  0x6a   : > { %4608 = shalt.err (!%p4605_p8)
}
  0x6b   : > { %s4720_s0 = smov 32   ;;  %s4721_s2 = smov 2  }
  0x6c   : > { %4439 = dma.hbm_to_vmem [thread:$0]  (!%p4899_p2), %s6419_s1, 288, %s4893_s6, [#allocation6], %s4720_s0, %s4720_s0, %s4721_s2  }
  0x6d   : > { %s4609_s28 = scalar_lea.hbm %s4909_s27, 16  ;;  %p6475_p12 = scmp.ne.s32.totalorder %s6466_s9, 0 }
  0x6e   : > { %p4610_p10 = scmp.ne.s32.totalorder %s4909_s27, %s4609_s28  ;;  %s4614_s24 = scalar_lea.hbm %s6421_s3, 32 }
  0x6f   : > { %p4615_p8 = scmp.lt.u32.totalorder %s4909_s27, %s6421_s3  ;;  %p4616_p11 = scmp.lt.u32.totalorder %s4614_s24, %s4609_s28 }
  0x70   : > { %p4612_p7 = pnand %p4610_p10, %p6475_p12  ;;  %p4618_p6 = scmp.lt.u32.totalorder %s4609_s28, %s4909_s27 }
  0x71   : > { %p4617_p3 = por %p4616_p11, %p4615_p8 }
  0x72   : > { %p4613_p13 = pneg %p4612_p7 }
  0x73   : > { %p4619_p4 = por %p4618_p6, %p4617_p3 }
  0x75   : > { %p4620_p5 = pnand %p4619_p4, %p4613_p13 }
  0x77   : > { %4623 = shalt.err (!%p4620_p5)
}
  0x78   : > { %s4624_s6 = scalar_lea.vmem %s4911_s21, 16  ;;  %s4722_s14 = smov [#allocation8]  }
  0x79   : > { %p4625_p2 = scmp.ne.s32.totalorder %s4911_s21, %s4624_s6  ;;  %s4629_s0 = sshll.u32 %s4722_s14, 4  ;;  %s4630_s0 = int_to_ptr.vmem [resolvable:$false] %s4629_s0 }
  0x7a   : > { %s4631_s2 = scalar_lea.vmem %s4630_s0, 32  ;;  %p4632_p1 = scmp.lt.s32.totalorder %s4911_s21, %s4630_s0 }
  0x7b   : > { %p4627_p9 = pnand %p4625_p2, %p6475_p12  ;;  %p4633_p10 = scmp.lt.s32.totalorder %s4631_s2, %s4624_s6 }
  0x7d   : > { %p4628_p0 = pneg %p4627_p9  ;;  %p4634_p7 = por %p4633_p10, %p4632_p1 }
  0x7f   : > { %p4635_p8 = pnand %p4634_p7, %p4628_p0 }
  0x81   : > { %4638 = shalt.err (!%p4635_p8)
}
  0x82   : > { %p6476_p13 = scmp.ne.s32.totalorder %s6464_s26, 0  ;;  %p6477_p11 = scmp.ne.s32.totalorder %s6473_s13, 0 }
  0x84   : > { %4449 = dma.hbm_to_vmem [thread:$0]  (!%p6476_p13), %s4909_s27, 16, %s4911_s21, %s4805_s7  }
  0x85   : > { %234 = sbr.rel (%p6477_p11) target bundleno = 786 (0x312), region = 36 }
  0x8c   : > { %s236_s9 = sand.u32 1, %s4863_s5   ;;  %s4960_s23 = sand.u32 1, %s4705_s16  }
  0x8d   : > { %s4423_s25 = smul.u32 216, %s4960_s23  ;;  %s237_s28 = scalar_lea.sflag [#allocation3], %s236_s9 }
  0x8e   : > { %p6478_p12 = scmp.ne.s32.totalorder %s6469_s11, 0 }
  0x8f   : > { %s4963_s8 = scalar_lea.vmem [#allocation2], %s4423_s25 }
  0x90   : > { %4684 = dma.done.wait (%p6478_p12), %s237_s28, 3456  }
  0x91   : > { %4686 = vsyncadd (%p6478_p12), %s237_s28, 4294963840  ;;  %p6479_p3 = scmp.eq.s32.totalorder %s4863_s5, 0 }
  0x93   : > { %4688 = dma.done.wait (%p6479_p3), [#allocation6], 288   ;;  %p6480_p6 = pmov %p6479_p3 }
  0x94   : > { %s252_s26 = scalar_lea.vmem [#allocation7], %s4960_s23 }
  0x95   : > { %4690 = vsyncadd (%p6480_p6), [#allocation6], 4294967008 }
  0x96   : > { %4692 = dma.done.wait (%p6478_p12), %s237_s28, 32  }
  0x97   : > { %4694 = vsyncadd (%p6478_p12), %s237_s28, 4294967264  ;;  %vm835_vm0 = vcmask 1041408   ;;  %vm349_vm1 = vsmask.f32 3328  ;;  %vm350_vm2 = vsmask.f32 7440 }
  0x98   : > { %v737_v0 = vld [vmem:[#allocation5 + $0x2] sm:$0x3]  ;;  %v1948_v1 = vld [vmem:[#allocation5 + $0x8] sm:$0x3]  ;;  %v4988_v5 = vld [vmem:[%s4963_s8 + $0x4] sm:$0xf] }
  0x99   : > { %v4979_v2 = vld [vmem:[%s4963_s8] sm:$0xf]  ;;  %4411 = vmatprep.subr.msk.bf16.mxu1 %vm835_vm0, %v737_v0  ;;  %4415 = vmatprep.subr.msk.bf16.mxu0 %vm835_vm0, %v1948_v1  ;;  %v837_v3 = vsel %vm835_vm0, %v737_v0, 0  ;;  %v4985_v4 = vsel %vm835_vm0, %v1948_v1, 0  ;;  %v296_v6 = vld [vmem:[%s4963_s8 + $0x8] sm:$0x1]  ;;  %vm5017_vm4 = vmor %vm349_vm1, %vm350_vm2 }
  0x9a   : > { %6481 = vst [vmem:[#allocation14_spill] sm:$0xff] %v4985_v4  ;;  %3848 = vmatpush3.bf16.msra.mxu1 %v837_v3  ;;  %3984 = vmatpush3.bf16.msra.mxu0 %v4985_v4  ;;  %v353_v7 = vshrl.u32 %v4979_v2, 16  ;;  %v356_v8 = vshll.u32 %v4979_v2, 16  ;;  %v362_v9 = vshll.u32 %v4988_v5, 16  ;;  %v366_v10 = vshrl.u32 %v4988_v5, 16  ;;  %s260_s7 = scalar_lea.vmem [#allocation8], %s4960_s23 }
  0x9b   : > { %v348_v11 = vld [vmem:[#allocation5] sm:$0x3]  ;;  %v372_v12 = vshll.u32 %v296_v6, 16  ;;  %vm786_vm3 = vcmask 31744   ;;  %v4998_v13 = vld [vmem:[%s4963_s8 + $0xc] sm:$0xf] }
  0x9c   : > { %4412 = vmatprep.subr.msk.bf16.mxu1 %vm835_vm0, %v348_v11  ;;  %v5001_v14 = vld [vmem:[%s4963_s8 + $0x10] sm:$0xf]  ;;  %v355_v15 = vrot.slane %v353_v7, 4  ;;  %v358_v16 = vrot.slane %v356_v8, 5  ;;  %v364_v17 = vrot.slane %v362_v9, 5  ;;  %v368_v18 = vrot.slane %v366_v10, 4 }
  0x9d   : > { %v5004_v19 = vld [vmem:[%s4963_s8 + $0x14] sm:$0x1]  ;;  %v374_v20 = vrot.slane %v372_v12, 5  ;;  %v377_v21 = vshrl.u32 %v4998_v13, 16  ;;  %v380_v22 = vshll.u32 %v4998_v13, 16  ;;  %v386_v23 = vshll.u32 %v5001_v14, 16 }
  0x9e   : > { %v2160_v24 = vld [vmem:[#allocation5 + $0xa] sm:$0x3]  ;;  %v359_v25 = vor.u32 %v358_v16, %v355_v15  ;;  %v369_v26 = vor.u32 %v368_v18, %v364_v17  ;;  %v390_v27 = vshrl.u32 %v5001_v14, 16  ;;  %v396_v28 = vshll.u32 %v5004_v19, 16  ;;  %v5026_v39 = vld [vmem:[%s4963_s8 + $0x1c] sm:$0xf] }
  0x9f   : > { %4417 = vmatprep.subr.msk.bf16.mxu0 %vm835_vm0, %v2160_v24  ;;  %v5013_v29 = vld [vmem:[%s4963_s8 + $0x18] sm:$0xf]  ;;  %v379_v31 = vrot.slane %v377_v21, 4  ;;  %v382_v32 = vrot.slane %v380_v22, 5  ;;  %v388_v33 = vrot.slane %v386_v23, 5  ;;  %v5023_v34 = vcombine.low %v4998_v13, %v5001_v14  ;;  %s3471_s11 = sshll.u32 %s4960_s23, 8 }
  0xa0   : > { %v360_v35 = vrot.slane %v359_v25, 4  ;;  %v370_v36 = vrot.slane %v369_v26, 4  ;;  %v392_v37 = vrot.slane %v390_v27, 4  ;;  %v398_v38 = vrot.slane %v396_v28, 5  ;;  %v5031_v43 = vld [vmem:[%s4963_s8 + $0x20] sm:$0x1] }
  0xa1   : > { %v383_v40 = vor.u32 %v382_v32, %v379_v31  ;;  %v1323_v41 = vrot.slane %v5004_v19, 5  ;;  %v1129_v42 = vsel %vm835_vm0, %v348_v11, 0  ;;  %v401_v44 = vshrl.u32 %v5013_v29, 16  ;;  %v5043_v57 = vld [vmem:[%s4963_s8 + $0x24] sm:$0xf]  ;;  %s6083_s13 = scalar_lea.vmem [#allocation9], %s3471_s11 }
  0xa2   : > { %v365_v45 = vsel %vm5017_vm4, %v360_v35, %v364_v17  ;;  %v375_v46 = vsel %vm5017_vm4, %v370_v36, %v374_v20  ;;  %v393_v47 = vor.u32 %v392_v37, %v388_v33  ;;  %v404_v48 = vshll.u32 %v5013_v29, 16  ;;  %v5051_v62 = vld [vmem:[%s4963_s8 + $0x28] sm:$0xf]  ;;  %v5056_v6 = vld [vmem:[%s4963_s8 + $0x2c] sm:$0x1]  ;;  %s3693_s21 = sshll.u32 %s4863_s5, 12 }
  0xa3   : > { %v3472_v49 = vcombine.low %v365_v45, %v375_v46  ;;  %v384_v50 = vrot.slane %v383_v40, 4  ;;  %v403_v51 = vrot.slane %v401_v44, 4  ;;  %v410_v52 = vshll.u32 %v5026_v39, 16  ;;  %v5059_v7 = vld [vmem:[%s4963_s8 + $0x30] sm:$0xf]  ;;  %s3345_s27 = sshll.u32 %s6083_s13, 4  ;;  %s6336_s24 = scalar_lea.hbm %s6422_s4, %s3693_s21  ;;  %s6338_s27 = int_to_ptr.vmem [resolvable:$true] %s3345_s27 }
  0xa4   : > { %v394_v53 = vrot.slane %v393_v47, 4  ;;  %v406_v54 = vrot.slane %v404_v48, 5  ;;  %v414_v55 = vshrl.u32 %v5026_v39, 16  ;;  %v420_v56 = vshll.u32 %v5031_v43, 16  ;;  %v5070_v22 = vld [vmem:[%s4963_s8 + $0x34] sm:$0xf] }
  0xa5   : > { %3849 = vmatprep.mubr.msk.bf16.mxu1 %vm786_vm3, %v3472_v49  ;;  %v389_v58 = vsel %vm5017_vm4, %v384_v50, %v388_v33  ;;  %v412_v59 = vrot.slane %v410_v52, 5  ;;  %v1327_v60 = vrot.slane %v5026_v39, 5  ;;  %v1330_v61 = vrot.slane %v5031_v43, 5  ;;  %v5076_v28 = vld [vmem:[%s4963_s8 + $0x38] sm:$0x1]  ;;  %s3332_s20 = scalar_lea.sflag [#allocation4], %s4960_s23 }
  0xa6   : > { %v399_v63 = vsel %vm5017_vm4, %v394_v53, %v398_v38  ;;  %v407_v0 = vor.u32 %v406_v54, %v403_v51  ;;  %v416_v1 = vrot.slane %v414_v55, 4  ;;  %v422_v3 = vrot.slane %v420_v56, 5  ;;  %v5080_v36 = vld [vmem:[%s4963_s8 + $0x3c] sm:$0xf]  ;;  %v5090_v48 = vld [vmem:[%s4963_s8 + $0x40] sm:$0xf] }
  0xa7   : > { %v3473_v8 = vcombine.low %v389_v58, %v399_v63  ;;  %v2168_v9 = vsel %vm835_vm0, %v2160_v24, 0  ;;  %v425_v10 = vshrl.u32 %v5043_v57, 16  ;;  %v428_v11 = vshll.u32 %v5043_v57, 16  ;;  %v5093_v52 = vld [vmem:[%s4963_s8 + $0x44] sm:$0x1]  ;;  %s4639_s29 = scalar_lea.vmem %s6338_s27, 4096 }
  0xa8   : > { %v408_v12 = vrot.slane %v407_v0, 4  ;;  %v417_v15 = vor.u32 %v416_v1, %v412_v59  ;;  %v434_v16 = vshll.u32 %v5051_v62, 16  ;;  %v438_v17 = vshrl.u32 %v5051_v62, 16  ;;  %v5106_v63 = vld [vmem:[#allocation5 + $0xc] sm:$0x3]  ;;  %p4640_p4 = scmp.ne.s32.totalorder %s6338_s27, %s4639_s29  ;;  %p6539_p5 = scmp.ne.s32.totalorder %s6471_s10, 0 }
  0xa9   : > { %3985 = vmatprep.mubr.msk.bf16.mxu0 %vm786_vm3, %v3473_v8  ;;  %3850 = vmatmul.mubr.msk.bf16.vlgmr.msra.gmra.mrb[0].mxu1 %vm786_vm3, %v3473_v8  ;;  %v427_v18 = vrot.slane %v425_v10, 4  ;;  %v430_v20 = vrot.slane %v428_v11, 5  ;;  %v444_v21 = vshll.u32 %v5056_v6, 16  ;;  %v449_v23 = vshrl.u32 %v5059_v7, 16  ;;  %s4723_s6 = smov [#allocation9]  }
  0xaa   : > { %3882 = vmatpush3.bf16.msra.mxu1 %v1129_v42  ;;  %v413_v24 = vsel %vm5017_vm4, %v408_v12, %v412_v59  ;;  %v418_v25 = vrot.slane %v417_v15, 4  ;;  %v436_v26 = vrot.slane %v434_v16, 5  ;;  %v440_v27 = vrot.slane %v438_v17, 4  ;;  %v5104_v59 = vld [vmem:[%s4963_s8 + $0x48] sm:$0xf]  ;;  %p4641_p2 = pnand %p4640_p4, %p6539_p5  ;;  %s4643_s14 = sshll.u32 %s4723_s6, 4  ;;  %s4644_s14 = int_to_ptr.vmem [resolvable:$false] %s4643_s14 }
  0xab   : > { %v431_v31 = vor.u32 %v430_v20, %v427_v18  ;;  %v446_v32 = vrot.slane %v444_v21, 5  ;;  %v451_v33 = vrot.slane %v449_v23, 4  ;;  %v452_v35 = vshll.u32 %v5059_v7, 16  ;;  %v5115_v16 = vld [vmem:[%s4963_s8 + $0x4c] sm:$0xf]  ;;  %s4645_s0 = scalar_lea.vmem %s4644_s14, 8192  ;;  %p4646_p0 = scmp.lt.s32.totalorder %s6338_s27, %s4644_s14 }
  0xac   : > { %v423_v37 = vsel %vm5017_vm4, %v418_v25, %v422_v3  ;;  %v441_v38 = vor.u32 %v440_v27, %v436_v26  ;;  %v458_v40 = vshll.u32 %v5070_v22, 16  ;;  %v462_v42 = vshrl.u32 %v5070_v22, 16  ;;  %v5128_v25 = vld [vmem:[%s4963_s8 + $0x50] sm:$0x1]  ;;  %v5132_v27 = vld [vmem:[%s4963_s8 + $0x54] sm:$0xf]  ;;  %p4642_p9 = pneg %p4641_p2  ;;  %p4647_p1 = scmp.lt.s32.totalorder %s4645_s0, %s4639_s29 }
  0xad   : > { %v5086_v44 = vcombine.low %v413_v24, %v423_v37  ;;  %v432_v45 = vrot.slane %v431_v31, 4  ;;  %v454_v46 = vrot.slane %v452_v35, 5  ;;  %v468_v47 = vshll.u32 %v5076_v28, 16 }
  0xae   : > { %v442_v49 = vrot.slane %v441_v38, 4  ;;  %v460_v50 = vrot.slane %v458_v40, 5  ;;  %v464_v51 = vrot.slane %v462_v42, 4  ;;  %v473_v53 = vshrl.u32 %v5080_v36, 16  ;;  %p4648_p10 = por %p4647_p1, %p4646_p0 }
  0xaf   : > { %6484 = vst [vmem:[#allocation15_spill] sm:$0xff] %v5086_v44  ;;  %3986 = vmatmul.mubr.msk.bf16.vlgmr.msra.gmra.mrb[0].mxu0 %vm786_vm3, %v5086_v44  ;;  %3853 = vmatprep.mubr.msk.bf16.mxu1 %vm786_vm3, %v5086_v44  ;;  %v437_v54 = vsel %vm5017_vm4, %v432_v45, %v436_v26  ;;  %v455_v55 = vor.u32 %v454_v46, %v451_v33  ;;  %v470_v56 = vrot.slane %v468_v47, 5  ;;  %v476_v58 = vshll.u32 %v5080_v36, 16  ;;  %v5140_v45 = vld [vmem:[%s4963_s8 + $0x58] sm:$0xf] }
  0xb0   : > { %4018 = vmatpush3.bf16.msra.mxu0 %v2168_v9  ;;  %v447_v0 = vsel %vm5017_vm4, %v442_v49, %v446_v32  ;;  %v465_v1 = vor.u32 %v464_v51, %v460_v50  ;;  %v475_v3 = vrot.slane %v473_v53, 4  ;;  %v482_v8 = vshll.u32 %v5090_v48, 16  ;;  %p4649_p7 = pnand %p4648_p10, %p4642_p9 }
  0xb1   : > { %v5111_v10 = vcombine.low %v437_v54, %v447_v0  ;;  %v456_v11 = vrot.slane %v455_v55, 4  ;;  %v478_v12 = vrot.slane %v476_v58, 5  ;;  %v486_v15 = vshrl.u32 %v5090_v48, 16  ;;  %4418 = vmatprep.subr.msk.bf16.mxu0 %vm835_vm0, %v5106_v63  ;;  %v5152_v55 = vld [vmem:[%s4963_s8 + $0x5c] sm:$0x1] }
  0xb2   : > { %v466_v9 = vrot.slane %v465_v1, 4  ;;  %v484_v17 = vrot.slane %v482_v8, 5  ;;  %v492_v18 = vshll.u32 %v5093_v52, 16  ;;  %v497_v20 = vshrl.u32 %v5104_v59, 16  ;;  %v5157_v8 = vld [vmem:[%s4963_s8 + $0x60] sm:$0xf] }
  0xb3   : > { %6485 = vst [vmem:[#allocation16_spill] sm:$0xff] %v5111_v10  ;;  %3989 = vmatprep.mubr.msk.bf16.mxu0 %vm786_vm3, %v5111_v10  ;;  %3854 = vmatmul.mubr.msk.bf16.gmra.mrb[4].mxu1 %vm786_vm3, %v5111_v10  ;;  %v461_v21 = vsel %vm5017_vm4, %v456_v11, %v460_v50  ;;  %v479_v23 = vor.u32 %v478_v12, %v475_v3  ;;  %v488_v24 = vrot.slane %v486_v15, 4  ;;  %v500_v26 = vshll.u32 %v5104_v59, 16 }
  0xb4   : > { %v471_v31 = vsel %vm5017_vm4, %v466_v9, %v470_v56  ;;  %v494_v32 = vrot.slane %v492_v18, 5  ;;  %v499_v33 = vrot.slane %v497_v20, 4  ;;  %v506_v35 = vshll.u32 %v5115_v16, 16 }
  0xb5   : > { %vm1308_vm5 = vcmask 1042432   ;;  %vm1309_vm6 = vcmask 1046532   ;;  %v5137_v37 = vcombine.low %v461_v21, %v471_v31  ;;  %v480_v38 = vrot.slane %v479_v23, 4 }
  0xb6   : > { %v489_v40 = vor.u32 %v488_v24, %v484_v17  ;;  %v502_v42 = vrot.slane %v500_v26, 5  ;;  %v508_v46 = vrot.slane %v506_v35, 5  ;;  %v510_v47 = vshrl.u32 %v5115_v16, 16  ;;  %vm5195_vm7 = vmor %vm1308_vm5, %vm1309_vm6 }
  0xb7   : > { %6486 = vst [vmem:[#allocation17_spill] sm:$0xff] %v5137_v37  ;;  %v516_v49 = vshll.u32 %v5128_v25, 16  ;;  %v521_v50 = vshrl.u32 %v5132_v27, 16  ;;  %3990 = vmatmul.mubr.msk.bf16.gmra.mrb[4].mxu0 %vm786_vm3, %v5137_v37  ;;  %3857 = vmatprep.mubr.msk.bf16.mxu1 %vm786_vm3, %v5137_v37  ;;  %v485_v51 = vsel %vm5017_vm4, %v480_v38, %v484_v17  ;;  %v524_v56 = vshll.u32 %v5132_v27, 16  ;;  %v5163_v17 = vld [vmem:[%s4963_s8 + $0x64] sm:$0xf] }
  0xb8   : > { %v490_v53 = vrot.slane %v489_v40, 4  ;;  %v503_v54 = vor.u32 %v502_v42, %v499_v33  ;;  %v512_v58 = vrot.slane %v510_v47, 4  ;;  %v530_v3 = vshll.u32 %v5140_v45, 16  ;;  %v5171_v33 = vld [vmem:[%s4963_s8 + $0x68] sm:$0x1] }
  0xb9   : > { %v518_v0 = vrot.slane %v516_v49, 5  ;;  %v523_v1 = vrot.slane %v521_v50, 4  ;;  %v526_v15 = vrot.slane %v524_v56, 5  ;;  %v534_v9 = vshrl.u32 %v5140_v45, 16 }
  0xba   : > { %v495_v11 = vsel %vm5017_vm4, %v490_v53, %v494_v32  ;;  %v504_v12 = vrot.slane %v503_v54, 4  ;;  %v513_v20 = vor.u32 %v512_v58, %v508_v46  ;;  %v532_v21 = vrot.slane %v530_v3, 5 }
  0xbb   : > { %v5165_v18 = vcombine.low %v485_v51, %v495_v11  ;;  %v540_v23 = vshll.u32 %v5152_v55, 16  ;;  %v527_v26 = vor.u32 %v526_v15, %v523_v1  ;;  %v536_v31 = vrot.slane %v534_v9, 4  ;;  %v5182_v51 = vld [vmem:[%s4963_s8 + $0x6c] sm:$0xf]  ;;  %v5187_v1 = vld [vmem:[#allocation5 + $0x4] sm:$0x3] }
  0xbc   : > { %v509_v24 = vsel %vm5017_vm4, %v504_v12, %v508_v46  ;;  %v545_v32 = vshrl.u32 %v5157_v8, 16  ;;  %v514_v35 = vrot.slane %v513_v20, 4  ;;  %v548_v40 = vshll.u32 %v5157_v8, 16  ;;  %4413 = vmatprep.subr.msk.bf16.mxu1 %vm835_vm0, %v5187_v1 }
  0xbd   : > { %6487 = vst [vmem:[#allocation18_spill] sm:$0xff] %v5165_v18  ;;  %3993 = vmatprep.mubr.msk.bf16.mxu0 %vm786_vm3, %v5165_v18  ;;  %3858 = vmatmul.mubr.msk.bf16.gmra.mrb[8].mxu1 %vm786_vm3, %v5165_v18  ;;  %v542_v38 = vrot.slane %v540_v23, 5  ;;  %v554_v42 = vshll.u32 %v5163_v17, 16  ;;  %v528_v47 = vrot.slane %v527_v26, 4  ;;  %v537_v46 = vor.u32 %v536_v31, %v532_v21  ;;  %v5204_v26 = vld [vmem:[%s4963_s8 + $0x70] sm:$0xf] }
  0xbe   : > { %v547_v49 = vrot.slane %v545_v32, 4  ;;  %v558_v50 = vshrl.u32 %v5163_v17, 16  ;;  %v519_v53 = vsel %vm5017_vm4, %v514_v35, %v518_v0  ;;  %v550_v54 = vrot.slane %v548_v40, 5  ;;  %v5213_v32 = vld [vmem:[%s4963_s8 + $0x74] sm:$0x1] }
  0xbf   : > { %v556_v56 = vrot.slane %v554_v42, 5  ;;  %v564_v58 = vshll.u32 %v5171_v33, 16  ;;  %v5189_v3 = vcombine.low %v509_v24, %v519_v53  ;;  %v533_v11 = vsel %vm5017_vm4, %v528_v47, %v532_v21 }
  0xc0   : > { %v538_v12 = vrot.slane %v537_v46, 4  ;;  %v560_v15 = vrot.slane %v558_v50, 4  ;;  %v551_v0 = vor.u32 %v550_v54, %v547_v49  ;;  %v3537_v23 = vrot.slane %v4998_v13, 9 }
  0xc1   : > { %6488 = vst [vmem:[#allocation19_spill] sm:$0xff] %v5189_v3  ;;  %v566_v20 = vrot.slane %v564_v58, 5  ;;  %v1320_v24 = vrot.slane %v5001_v14, 5  ;;  %3994 = vmatmul.mubr.msk.bf16.gmra.mrb[8].mxu0 %vm786_vm3, %v5189_v3  ;;  %3861 = vmatprep.mubr.msk.bf16.mxu1 %vm786_vm3, %v5189_v3  ;;  %v569_v35 = vshrl.u32 %v5182_v51, 16  ;;  %v572_v13 = vshll.u32 %v5182_v51, 16 }
  0xc2   : > { %v543_v21 = vsel %vm5017_vm4, %v538_v12, %v542_v38  ;;  %v561_v31 = vor.u32 %v560_v15, %v556_v56  ;;  %v552_v40 = vrot.slane %v551_v0, 4  ;;  %v578_v38 = vshll.u32 %v5204_v26, 16  ;;  %v5235_v12 = vld [vmem:[%s4963_s8 + $0x78] sm:$0xf] }
  0xc3   : > { %v5217_v14 = vcombine.low %v533_v11, %v543_v21  ;;  %v1321_v42 = vsel %vm5195_vm7, %v3537_v23, %v1320_v24  ;;  %v1322_v47 = vrot.slane %v1320_v24, 4  ;;  %v571_v49 = vrot.slane %v569_v35, 4 }
  0xc4   : > { %v562_v46 = vrot.slane %v561_v31, 4  ;;  %v574_v50 = vrot.slane %v572_v13, 5  ;;  %v557_v53 = vsel %vm5017_vm4, %v552_v40, %v556_v56  ;;  %v582_v58 = vshrl.u32 %v5204_v26, 16  ;;  %v5242_v56 = vld [vmem:[%s4963_s8 + $0x7c] sm:$0xf] }
  0xc5   : > { %6491 = vst [vmem:[#allocation20_spill] sm:$0xff] %v5217_v14  ;;  %3997 = vmatprep.mubr.msk.bf16.mxu0 %vm786_vm3, %v5217_v14  ;;  %3862 = vmatmul.mubr.msk.bf16.gmra.mrb[12].mxu1 %vm786_vm3, %v5217_v14  ;;  %v1324_v54 = vsel %vm5195_vm7, %v1322_v47, %v1323_v41  ;;  %v588_v11 = vshll.u32 %v5213_v32, 16  ;;  %v580_v24 = vrot.slane %v578_v38, 5  ;;  %v3538_v31 = vrot.slane %v5013_v29, 9 }
  0xc6   : > { %v567_v15 = vsel %vm5017_vm4, %v562_v46, %v566_v20  ;;  %v5239_v0 = vcombine.low %v1321_v42, %v1324_v54  ;;  %v575_v23 = vor.u32 %v574_v50, %v571_v49  ;;  %v584_v21 = vrot.slane %v582_v58, 4  ;;  %v5259_v46 = vld [vmem:[%s4963_s8 + $0x80] sm:$0x1]  ;;  %v5273_v54 = vld [vmem:[%s4963_s8 + $0x84] sm:$0xf] }
  0xc7   : > { %v5244_v19 = vcombine.low %v557_v53, %v567_v15  ;;  %v590_v41 = vrot.slane %v588_v11, 5  ;;  %v1329_v13 = vrot.slane %v1327_v60, 4  ;;  %v2374_v20 = vsel %vm835_vm0, %v5106_v63, 0 }
  0xc8   : > { %6492 = vst [vmem:[#allocation21_spill] sm:$0xff] %v5239_v0  ;;  %v576_v35 = vrot.slane %v575_v23, 4  ;;  %v593_v40 = vshrl.u32 %v5235_v12, 16  ;;  %v585_v42 = vor.u32 %v584_v21, %v580_v24  ;;  %v1328_v47 = vsel %vm5195_vm7, %v3538_v31, %v1327_v60 }
  0xc9   : > { %6493 = vst [vmem:[#allocation22_spill] sm:$0xff] %v5244_v19  ;;  %3865 = vmatprep.mubr.msk.bf16.mxu1 %vm786_vm3, %v5244_v19  ;;  %v596_v49 = vshll.u32 %v5235_v12, 16  ;;  %v602_v50 = vshll.u32 %v5242_v56, 16  ;;  %3998 = vmatmul.mubr.msk.bf16.gmra.mrb[12].mxu0 %vm786_vm3, %v5244_v19  ;;  %v1331_v38 = vsel %vm5195_vm7, %v1329_v13, %v1330_v61  ;;  %v606_v60 = vshrl.u32 %v5242_v56, 16 }
  0xca   : > { %v581_v63 = vsel %vm5017_vm4, %v576_v35, %v580_v24  ;;  %v595_v53 = vrot.slane %v593_v40, 4  ;;  %4019 = vmatprep.mubr.msk.bf16.mxu0 %vm786_vm3, %v5239_v0  ;;  %v586_v58 = vrot.slane %v585_v42, 4  ;;  %v5277_v11 = vcombine.low %v1328_v47, %v1331_v38  ;;  %v5286_v40 = vld [vmem:[%s4963_s8 + $0x88] sm:$0xf]  ;;  %v5289_v42 = vld [vmem:[%s4963_s8 + $0x8c] sm:$0x1] }
  0xcb   : > { %v598_v15 = vrot.slane %v596_v49, 5  ;;  %v604_v23 = vrot.slane %v602_v50, 5  ;;  %v608_v24 = vrot.slane %v606_v60, 4  ;;  %v612_v43 = vshll.u32 %v5259_v46, 16 }
  0xcc   : > { %6494 = vst [vmem:[#allocation23_spill] sm:$0xff] %v5277_v11  ;;  %v3539_v61 = vrot.slane %v5043_v57, 9  ;;  %v1334_v21 = vrot.slane %v5051_v62, 5  ;;  %v591_v31 = vsel %vm5017_vm4, %v586_v58, %v590_v41  ;;  %v1337_v13 = vrot.slane %v5056_v6, 5 }
  0xcd   : > { %v599_v35 = vor.u32 %v598_v15, %v595_v53  ;;  %v617_v47 = vshrl.u32 %v5273_v54, 16  ;;  %v5292_v49 = vcombine.low %v581_v63, %v591_v31  ;;  %v609_v50 = vor.u32 %v608_v24, %v604_v23  ;;  %v5308_v31 = vld [vmem:[%s4963_s8 + $0x90] sm:$0xf] }
  0xce   : > { %v614_v38 = vrot.slane %v612_v43, 5  ;;  %v1335_v60 = vsel %vm5195_vm7, %v3539_v61, %v1334_v21  ;;  %v1336_v19 = vrot.slane %v1334_v21, 4  ;;  %v620_v53 = vshll.u32 %v5273_v54, 16 }
  0xcf   : > { %6495 = vst [vmem:[#allocation24_spill] sm:$0xff] %v5292_v49  ;;  %v600_v4 = vrot.slane %v599_v35, 4  ;;  %v619_v41 = vrot.slane %v617_v47, 4  ;;  %3866 = vmatmul.mubr.msk.bf16.gmra.mrb[16].mxu1 %vm786_vm3, %v5292_v49  ;;  %v610_v6 = vrot.slane %v609_v50, 4  ;;  %v626_v58 = vshll.u32 %v5286_v40, 16 }
  0xd0   : > { %v630_v63 = vshrl.u32 %v5286_v40, 16  ;;  %v636_v15 = vshll.u32 %v5289_v42, 16  ;;  %v1338_v43 = vsel %vm5195_vm7, %v1336_v19, %v1337_v13  ;;  %v622_v61 = vrot.slane %v620_v53, 5  ;;  %v5310_v35 = vld [vmem:[#allocation5 + $0xe] sm:$0x3] }
  0xd1   : > { %v605_v24 = vsel %vm5017_vm4, %v600_v4, %v604_v23  ;;  %v3540_v21 = vrot.slane %v5059_v7, 9  ;;  %6496 = vst [vmem:[#allocation25_spill] sm:$0xff] %v5310_v35  ;;  %4020 = vmatmul.mubr.msk.bf16.vlgmr.msra.gmra.mrb[0].mxu0 %vm786_vm3, %v5277_v11  ;;  %v615_v47 = vsel %vm5017_vm4, %v610_v6, %v614_v38  ;;  %v5316_v50 = vcombine.low %v1335_v60, %v1338_v43  ;;  %v5319_v49 = vld [vmem:[%s4963_s8 + $0x94] sm:$0xf]  ;;  %v5328_v38 = vld [vmem:[%s4963_s8 + $0x98] sm:$0x1] }
  0xd2   : > { %v628_v4 = vrot.slane %v626_v58, 5  ;;  %v632_v23 = vrot.slane %v630_v63, 4  ;;  %4052 = vmatpush3.bf16.msra.mxu0 %v2374_v20  ;;  %v5321_v19 = vcombine.low %v605_v24, %v615_v47  ;;  %v623_v13 = vor.u32 %v622_v61, %v619_v41 }
  0xd3   : > { %6497 = vst [vmem:[#allocation26_spill] sm:$0xff] %v5316_v50  ;;  %v638_v53 = vrot.slane %v636_v15, 5  ;;  %v1341_v14 = vrot.slane %v5070_v22, 5  ;;  %4023 = vmatprep.mubr.msk.bf16.mxu0 %vm786_vm3, %v5316_v50  ;;  %v1344_v18 = vrot.slane %v5076_v28, 5  ;;  %v641_v60 = vshrl.u32 %v5308_v31, 16  ;;  %4419 = vmatprep.subr.msk.bf16.mxu0 %vm835_vm0, %v5310_v35 }
  0xd4   : > { %6498 = vst [vmem:[#allocation27_spill] sm:$0xff] %v5321_v19  ;;  %v633_v3 = vor.u32 %v632_v23, %v628_v4  ;;  %v644_v6 = vshll.u32 %v5308_v31, 16  ;;  %3869 = vmatprep.mubr.msk.bf16.mxu1 %vm786_vm3, %v5321_v19  ;;  %v624_v20 = vrot.slane %v623_v13, 4  ;;  %v650_v28 = vshll.u32 %v5319_v49, 16  ;;  %v5353_v19 = vld [vmem:[%s4963_s8 + $0xa0] sm:$0xf] }
  0xd5   : > { %v1342_v41 = vsel %vm5195_vm7, %v3540_v21, %v1341_v14  ;;  %v1343_v58 = vrot.slane %v1341_v14, 4  ;;  %v643_v15 = vrot.slane %v641_v60, 4  ;;  %v654_v43 = vshrl.u32 %v5319_v49, 16  ;;  %v5346_v21 = vld [vmem:[%s4963_s8 + $0x9c] sm:$0xf] }
  0xd6   : > { %v634_v63 = vrot.slane %v633_v3, 4  ;;  %v646_v24 = vrot.slane %v644_v6, 5  ;;  %v629_v61 = vsel %vm5017_vm4, %v624_v20, %v628_v4  ;;  %v652_v23 = vrot.slane %v650_v28, 5  ;;  %v5419_v50 = vld [vmem:[%s4963_s8 + $0xb8] sm:$0xf] }
  0xd7   : > { %v1345_v47 = vsel %vm5195_vm7, %v1343_v58, %v1344_v18  ;;  %v660_v13 = vshll.u32 %v5328_v38, 16  ;;  %v656_v6 = vrot.slane %v654_v43, 4  ;;  %v3541_v18 = vrot.slane %v5080_v36, 9 }
  0xd8   : > { %v639_v14 = vsel %vm5017_vm4, %v634_v63, %v638_v53  ;;  %v5350_v3 = vcombine.low %v1342_v41, %v1345_v47  ;;  %v647_v60 = vor.u32 %v646_v24, %v643_v15  ;;  %v1348_v20 = vrot.slane %v5090_v48, 5  ;;  %v5363_v41 = vld [vmem:[%s4963_s8 + $0xa4] sm:$0x1] }
  0xd9   : > { %v5355_v37 = vcombine.low %v629_v61, %v639_v14  ;;  %v662_v4 = vrot.slane %v660_v13, 5  ;;  %v657_v28 = vor.u32 %v656_v6, %v652_v23  ;;  %v1351_v53 = vrot.slane %v5093_v52, 5 }
  0xda   : > { %6499 = vst [vmem:[#allocation28_spill] sm:$0xff] %v5350_v3  ;;  %4024 = vmatmul.mubr.msk.bf16.gmra.mrb[4].mxu0 %vm786_vm3, %v5350_v3  ;;  %v648_v58 = vrot.slane %v647_v60, 4  ;;  %v665_v63 = vshrl.u32 %v5346_v21, 16  ;;  %v1349_v15 = vsel %vm5195_vm7, %v3541_v18, %v1348_v20  ;;  %v1350_v24 = vrot.slane %v1348_v20, 4  ;;  %v5379_v20 = vld [vmem:[%s4963_s8 + $0xa8] sm:$0xf] }
  0xdb   : > { %6500 = vst [vmem:[#allocation29_spill] sm:$0xff] %v5355_v37  ;;  %3870 = vmatmul.mubr.msk.bf16.gmra.mrb[20].mxu1 %vm786_vm3, %v5355_v37  ;;  %v668_v43 = vshll.u32 %v5346_v21, 16  ;;  %v674_v61 = vshll.u32 %v5353_v19, 16  ;;  %v658_v47 = vrot.slane %v657_v28, 4  ;;  %v678_v14 = vshrl.u32 %v5353_v19, 16 }
  0xdc   : > { %v653_v52 = vsel %vm5017_vm4, %v648_v58, %v652_v23  ;;  %v667_v13 = vrot.slane %v665_v63, 4  ;;  %v1352_v60 = vsel %vm5195_vm7, %v1350_v24, %v1351_v53  ;;  %v684_v18 = vshll.u32 %v5363_v41, 16  ;;  %v5387_v28 = vld [vmem:[%s4963_s8 + $0xac] sm:$0xf] }
  0xdd   : > { %v670_v6 = vrot.slane %v668_v43, 5  ;;  %v676_v37 = vrot.slane %v674_v61, 5  ;;  %v663_v10 = vsel %vm5017_vm4, %v658_v47, %v662_v4  ;;  %v5383_v44 = vcombine.low %v1349_v15, %v1352_v60  ;;  %v5396_v4 = vld [vmem:[%s4963_s8 + $0xb0] sm:$0x1] }
  0xde   : > { %v680_v23 = vrot.slane %v678_v14, 4  ;;  %v3542_v58 = vrot.slane %v5104_v59, 9  ;;  %v5389_v63 = vcombine.low %v653_v52, %v663_v10  ;;  %v686_v24 = vrot.slane %v684_v18, 5 }
  0xdf   : > { %6501 = vst [vmem:[#allocation30_spill] sm:$0xff] %v5383_v44  ;;  %v671_v53 = vor.u32 %v670_v6, %v667_v13  ;;  %v1355_v43 = vrot.slane %v5115_v16, 5  ;;  %4027 = vmatprep.mubr.msk.bf16.mxu0 %vm786_vm3, %v5383_v44  ;;  %v1358_v3 = vrot.slane %v5128_v25, 5  ;;  %v689_v15 = vshrl.u32 %v5379_v20, 16 }
  0xe0   : > { %6502 = vst [vmem:[#allocation31_spill] sm:$0xff] %v5389_v63  ;;  %v681_v61 = vor.u32 %v680_v23, %v676_v37  ;;  %v692_v47 = vshll.u32 %v5379_v20, 16  ;;  %3873 = vmatprep.mubr.msk.bf16.mxu1 %vm786_vm3, %v5389_v63  ;;  %v698_v14 = vshll.u32 %v5387_v28, 16  ;;  %v702_v18 = vshrl.u32 %v5387_v28, 16 }
  0xe1   : > { %v672_v10 = vrot.slane %v671_v53, 4  ;;  %v1356_v52 = vsel %vm5195_vm7, %v3542_v58, %v1355_v43  ;;  %v1357_v13 = vrot.slane %v1355_v43, 4  ;;  %v691_v25 = vrot.slane %v689_v15, 4  ;;  %v5412_v58 = vld [vmem:[%s4963_s8 + $0xb4] sm:$0xf] }
  0xe2   : > { %v682_v60 = vrot.slane %v681_v61, 4  ;;  %v694_v6 = vrot.slane %v692_v47, 5  ;;  %v700_v63 = vrot.slane %v698_v14, 5  ;;  %v708_v53 = vshll.u32 %v5396_v4, 16 }
  0xe3   : > { %v677_v23 = vsel %vm5017_vm4, %v672_v10, %v676_v37  ;;  %v1359_v44 = vsel %vm5195_vm7, %v1357_v13, %v1358_v3  ;;  %v704_v47 = vrot.slane %v702_v18, 4  ;;  %v3543_v3 = vrot.slane %v5132_v27, 9 }
  0xe4   : > { %v687_v43 = vsel %vm5017_vm4, %v682_v60, %v686_v24  ;;  %v5416_v61 = vcombine.low %v1356_v52, %v1359_v44  ;;  %v695_v15 = vor.u32 %v694_v6, %v691_v25  ;;  %v710_v37 = vrot.slane %v708_v53, 5  ;;  %v5429_v44 = vld [vmem:[%s4963_s8 + $0xbc] sm:$0x1] }
  0xe5   : > { %v5421_v11 = vcombine.low %v677_v23, %v687_v43  ;;  %v1362_v10 = vrot.slane %v5140_v45, 5  ;;  %v705_v14 = vor.u32 %v704_v47, %v700_v63  ;;  %v1365_v24 = vrot.slane %v5152_v55, 5 }
  0xe6   : > { %6503 = vst [vmem:[#allocation32_spill] sm:$0xff] %v5416_v61  ;;  %4028 = vmatmul.mubr.msk.bf16.gmra.mrb[8].mxu0 %vm786_vm3, %v5416_v61  ;;  %v696_v13 = vrot.slane %v695_v15, 4  ;;  %v713_v52 = vshrl.u32 %v5412_v58, 16  ;;  %v716_v6 = vshll.u32 %v5412_v58, 16  ;;  %v722_v18 = vshll.u32 %v5419_v50, 16 }
  0xe7   : > { %6504 = vst [vmem:[#allocation33_spill] sm:$0xff] %v5421_v11  ;;  %3874 = vmatmul.mubr.msk.bf16.gmra.mrb[24].mxu1 %vm786_vm3, %v5421_v11  ;;  %v1363_v60 = vsel %vm5195_vm7, %v3543_v3, %v1362_v10  ;;  %v1364_v25 = vrot.slane %v1362_v10, 4  ;;  %v706_v53 = vrot.slane %v705_v14, 4  ;;  %v726_v43 = vshrl.u32 %v5419_v50, 16 }
  0xe8   : > { %v701_v23 = vsel %vm5017_vm4, %v696_v13, %v700_v63  ;;  %v715_v55 = vrot.slane %v713_v52, 4  ;;  %v718_v47 = vrot.slane %v716_v6, 5  ;;  %v724_v11 = vrot.slane %v722_v18, 5 }
  0xe9   : > { %v1366_v15 = vsel %vm5195_vm7, %v1364_v25, %v1365_v24  ;;  %v732_v61 = vshll.u32 %v5429_v44, 16  ;;  %v711_v3 = vsel %vm5017_vm4, %v706_v53, %v710_v37  ;;  %v728_v0 = vrot.slane %v726_v43, 4 }
  0xea   : > { %v5446_v10 = vcombine.low %v1363_v60, %v1366_v15  ;;  %v3544_v35 = vrot.slane %v5157_v8, 9  ;;  %v5449_v63 = vcombine.low %v701_v23, %v711_v3  ;;  %v719_v13 = vor.u32 %v718_v47, %v715_v55 }
  0xeb   : > { %v734_v14 = vrot.slane %v732_v61, 5  ;;  %v1369_v52 = vrot.slane %v5163_v17, 5  ;;  %v729_v24 = vor.u32 %v728_v0, %v724_v11  ;;  %v1372_v25 = vrot.slane %v5171_v33, 5 }
  0xec   : > { %4031 = vmatprep.mubr.msk.bf16.mxu0 %vm786_vm3, %v5446_v10  ;;  %v3545_v6 = vrot.slane %v5182_v51, 9  ;;  %v1376_v37 = vrot.slane %v5204_v26, 5  ;;  %3877 = vmatprep.mubr.msk.bf16.mxu1 %vm786_vm3, %v5449_v63  ;;  %v720_v60 = vrot.slane %v719_v13, 4  ;;  %v1379_v23 = vrot.slane %v5213_v32, 5 }
  0xed   : > { %v1370_v18 = vsel %vm5195_vm7, %v3544_v35, %v1369_v52  ;;  %v1371_v61 = vrot.slane %v1369_v52, 4  ;;  %v730_v53 = vrot.slane %v729_v24, 4  ;;  %v3504_v0 = vcombine.low %v4979_v2, %v4988_v5 }
  0xee   : > { %v1377_v33 = vsel %vm5195_vm7, %v3545_v6, %v1376_v37  ;;  %v1378_v55 = vrot.slane %v1376_v37, 4  ;;  %v725_v43 = vsel %vm5017_vm4, %v720_v60, %v724_v11  ;;  %v3546_v47 = vrot.slane %v5235_v12, 9 }
  0xef   : > { %v1373_v15 = vsel %vm5195_vm7, %v1371_v61, %v1372_v25  ;;  %v1383_v35 = vrot.slane %v5242_v56, 5  ;;  %v735_v32 = vsel %vm5017_vm4, %v730_v53, %v734_v14  ;;  %v1386_v5 = vrot.slane %v5259_v46, 5 }
  0xf0   : > { %v5474_v3 = vcombine.low %v1370_v18, %v1373_v15  ;;  %v1380_v2 = vsel %vm5195_vm7, %v1378_v55, %v1379_v23  ;;  %v5479_v13 = vcombine.low %v725_v43, %v735_v32  ;;  %v3547_v14 = vrot.slane %v5273_v54, 9 }
  0xf1   : > { %v5481_v11 = vcombine.low %v1377_v33, %v1380_v2  ;;  %v1385_v52 = vrot.slane %v1383_v35, 4  ;;  %v1384_v24 = vsel %vm5195_vm7, %v3546_v47, %v1383_v35  ;;  %v1390_v25 = vrot.slane %v5286_v40, 5 }
  0xf2   : > { %4032 = vmatmul.mubr.msk.bf16.gmra.mrb[12].mxu0 %vm786_vm3, %v5474_v3  ;;  %v1393_v6 = vrot.slane %v5289_v42, 5  ;;  %3878 = vmatmul.mubr.msk.bf16.gmra.mrb[28].mxu1 %vm786_vm3, %v5479_v13  ;;  %v1397_v37 = vrot.slane %v5319_v49, 5  ;;  %v3548_v42 = vrot.slane %v5308_v31, 9  ;;  %v1400_v33 = vrot.slane %v5328_v38, 5 }
  0xf3   : > { %4035 = vmatprep.mubr.msk.bf16.mxu0 %vm786_vm3, %v5481_v11  ;;  %v1387_v46 = vsel %vm5195_vm7, %v1385_v52, %v1386_v5  ;;  %3883 = vmatprep.mubr.msk.bf16.mxu1 %vm786_vm3, %v3504_v0  ;;  %v1391_v60 = vsel %vm5195_vm7, %v3547_v14, %v1390_v25  ;;  %v1392_v18 = vrot.slane %v1390_v25, 4  ;;  %v1404_v55 = vrot.slane %v5353_v19, 5 }
  0xf4   : > { %v5500_v61 = vcombine.low %v1384_v24, %v1387_v46  ;;  %v1399_v53 = vrot.slane %v1397_v37, 4  ;;  %v5511_v0 = vcombine.low %v5013_v29, %v5026_v39  ;;  %v3549_v15 = vrot.slane %v5346_v21, 9  ;;  %v5524_v39 = vld [vmem:[#allocation5 + $0x6] sm:$0x3] }
  0xf5   : > { %v1394_v23 = vsel %vm5195_vm7, %v1392_v18, %v1393_v6  ;;  %v1406_v47 = vrot.slane %v1404_v55, 4  ;;  %v1407_v35 = vrot.slane %v5363_v41, 5  ;;  %v1522_v32 = vsel %vm835_vm0, %v5187_v1, 0 }
  0xf6   : > { %v5507_v43 = vcombine.low %v1391_v60, %v1394_v23  ;;  %v1411_v2 = vrot.slane %v5387_v28, 5  ;;  %v1398_v38 = vsel %vm5195_vm7, %v3548_v42, %v1397_v37  ;;  %v1401_v29 = vsel %vm5195_vm7, %v1399_v53, %v1400_v33 }
  0xf7   : > { %v1418_v1 = vrot.slane %v5419_v50, 5  ;;  %v5535_v41 = vcombine.low %v5043_v57, %v5051_v62  ;;  %v1405_v5 = vsel %vm5195_vm7, %v3549_v15, %v1404_v55  ;;  %v1408_v52 = vsel %vm5195_vm7, %v1406_v47, %v1407_v35 }
  0xf8   : > { %v3550_v24 = vrot.slane %v5379_v20, 9  ;;  %v5542_v14 = vcombine.low %v1398_v38, %v1401_v29  ;;  %v1413_v25 = vrot.slane %v1411_v2, 4  ;;  %v1414_v6 = vrot.slane %v5396_v4, 5 }
  0xf9   : > { %v5547_v46 = vcombine.low %v5182_v51, %v5204_v26  ;;  %v3551_v57 = vrot.slane %v5412_v58, 9  ;;  %v1421_v62 = vrot.slane %v5429_v44, 5  ;;  %v5555_v37 = vcombine.low %v5235_v12, %v5242_v56  ;;  %v5564_v26 = vld [vmem:[%s4963_s8 + $0xc4] sm:$0xf] }
  0xfa   : > { %4036 = vmatmul.mubr.msk.bf16.gmra.mrb[16].mxu0 %vm786_vm3, %v5500_v61  ;;  %3884 = vmatmul.mubr.msk.bf16.vlgmr.msra.gmra.mrb[0].mxu1 %vm786_vm3, %v5023_v34  ;;  %v5559_v60 = vcombine.low %v5273_v54, %v5286_v40  ;;  %v5561_v4 = vcombine.low %v1405_v5, %v1408_v52  ;;  %v1420_v51 = vrot.slane %v1418_v1, 4  ;;  %v5568_v18 = vcombine.low %v5308_v31, %v5319_v49  ;;  %v5591_v49 = vld [vmem:[%s4963_s8 + $0xc0] sm:$0xf] }
  0xfb   : > { %4039 = vmatprep.mubr.msk.bf16.mxu0 %vm786_vm3, %v5507_v43  ;;  %3916 = vmatpush3.bf16.msra.mxu1 %v1522_v32  ;;  %v5572_v44 = vcombine.low %v5346_v21, %v5353_v19  ;;  %v5576_v12 = vcombine.low %v5059_v7, %v5070_v22  ;;  %v5580_v56 = vcombine.low %v5379_v20, %v5387_v28  ;;  %v2154_v31 = vrot.slane %v5564_v26, 5  ;;  %v344_v19 = vld [vmem:[%s4963_s8 + $0xc8] sm:$0x1] }
  0xfc   : > { %3887 = vmatprep.mubr.msk.bf16.mxu1 %vm786_vm3, %v5511_v0  ;;  %4414 = vmatprep.subr.msk.bf16.mxu1 %vm835_vm0, %v5524_v39  ;;  %v5584_v54 = vcombine.low %v5412_v58, %v5419_v50  ;;  %v1412_v40 = vsel %vm5195_vm7, %v3550_v24, %v1411_v2  ;;  %v1415_v7 = vsel %vm5195_vm7, %v1413_v25, %v1414_v6  ;;  %v3618_v20 = vrot.slane %v5591_v49, 9 }
  0xfd   : > { %v1419_v22 = vsel %vm5195_vm7, %v3551_v57, %v1418_v1  ;;  %v1422_v50 = vsel %vm5195_vm7, %v1420_v51, %v1421_v62  ;;  %v5609_v21 = vcombine.low %v5080_v36, %v5090_v48  ;;  %v5612_v28 = vcombine.low %v1412_v40, %v1415_v7 }
  0xfe   : > { %v5614_v58 = vcombine.low %v1419_v22, %v1422_v50  ;;  %v2156_v42 = vrot.slane %v2154_v31, 4  ;;  %v2157_v23 = vrot.slane %v344_v19, 5  ;;  %v1924_v53 = vshrl.u32 %v5591_v49, 16  ;;  %v4519_v22 = vld [vmem:[%s4963_s8] sm:$0xf] }
  0xff   : > { %v1927_v33 = vshll.u32 %v5591_v49, 16  ;;  %v1933_v55 = vshll.u32 %v5564_v26, 16  ;;  %v1937_v15 = vshrl.u32 %v5564_v26, 16  ;;  %v5622_v36 = vcombine.low %v5104_v59, %v5115_v16 }
 0x100   : > { %v1926_v48 = vrot.slane %v1924_v53, 4  ;;  %v2155_v2 = vsel %vm5195_vm7, %v3618_v20, %v2154_v31  ;;  %v2158_v59 = vsel %vm5195_vm7, %v2156_v42, %v2157_v23  ;;  %v1943_v29 = vshll.u32 %v344_v19, 16  ;;  %v4518_v31 = vld [vmem:[%s4963_s8 + $0x8] sm:$0x1] }
 0x101   : > { %v1929_v47 = vrot.slane %v1927_v33, 5  ;;  %v1935_v35 = vrot.slane %v1933_v55, 5  ;;  %v1939_v32 = vrot.slane %v1937_v15, 4  ;;  %v5636_v24 = vcombine.low %v2155_v2, %v2158_v59  ;;  %v6506_v33 = vld [vmem:[#allocation21_spill] sm:$0xff]  ;;  %v6507_v55 = vld [vmem:[#allocation23_spill] sm:$0xff]  ;;  %v6511_v59 = vld [vmem:[#allocation32_spill] sm:$0xff] }
 0x102   : > { %4040 = vmatmul.mubr.msk.bf16.gmra.mrb[20].mxu0 %vm786_vm3, %v5542_v14  ;;  %3888 = vmatmul.mubr.msk.bf16.gmra.mrb[4].mxu1 %vm786_vm3, %v5535_v41  ;;  %v1945_v52 = vrot.slane %v1943_v29, 5  ;;  %v5640_v25 = vcombine.low %v5132_v27, %v5140_v45  ;;  %v5648_v62 = vcombine.low %v5157_v8, %v5163_v17  ;;  %v6505_v27 = vld [vmem:[#allocation25_spill] sm:$0xff]  ;;  %v1316_v7 = vrot.slane %v4518_v31, 5  ;;  %v4520_v15 = vld [vmem:[#allocation5 + $0x8] sm:$0x3]  ;;  %v6522_v31 = vld [vmem:[#allocation31_spill] sm:$0xff] }
 0x103   : > { %4043 = vmatprep.mubr.msk.bf16.mxu0 %vm786_vm3, %v5561_v4  ;;  %3891 = vmatprep.mubr.msk.bf16.mxu1 %vm786_vm3, %v5576_v12  ;;  %v1930_v16 = vor.u32 %v1929_v47, %v1926_v48  ;;  %v1940_v38 = vor.u32 %v1939_v32, %v1935_v35  ;;  %v2602_v45 = vsel %vm835_vm0, %v6505_v27, 0  ;;  %v2806_v8 = vld [vmem:[#allocation5 + $0x10] sm:$0x3]  ;;  %v4517_v17 = vld [vmem:[%s4963_s8 + $0x4] sm:$0xf]  ;;  %v3536_v50 = vrot.slane %v4519_v22, 9 }
 0x104   : > { %v1313_v40 = vrot.slane %v4517_v17, 5  ;;  %v1728_v53 = vsel %vm835_vm0, %v5524_v39, 0  ;;  %v6508_v39 = vld [vmem:[#allocation26_spill] sm:$0xff]  ;;  %v6509_v48 = vld [vmem:[#allocation28_spill] sm:$0xff]  ;;  %v5722_v47 = vcombine.low %v5591_v49, %v5564_v26  ;;  %v6512_v49 = vld [vmem:[#allocation15_spill] sm:$0xff] }
 0x105   : > { %v1931_v1 = vrot.slane %v1930_v16, 4  ;;  %v1941_v5 = vrot.slane %v1940_v38, 4  ;;  %v5731_v32 = vld [vmem:[%s4963_s8 + $0xcc] sm:$0xf]  ;;  %v5734_v2 = vld [vmem:[%s4963_s8 + $0xd0] sm:$0xf] }
 0x106   : > { %v1315_v19 = vrot.slane %v1313_v40, 4  ;;  %v1314_v20 = vsel %vm5195_vm7, %v3536_v50, %v1313_v40  ;;  %v3636_v26 = vcombine.low %v5731_v32, %v5734_v2  ;;  %v2814_v16 = vsel %vm835_vm0, %v2806_v8, 0  ;;  %v6513_v38 = vld [vmem:[#allocation16_spill] sm:$0xff]  ;;  %v6514_v29 = vld [vmem:[#allocation17_spill] sm:$0xff]  ;;  %v6520_v27 = vld [vmem:[#allocation27_spill] sm:$0xff] }
 0x107   : > { %v1936_v6 = vsel %vm5017_vm4, %v1931_v1, %v1935_v35  ;;  %v1946_v57 = vsel %vm5017_vm4, %v1941_v5, %v1945_v52  ;;  %v6510_v35 = vld [vmem:[#allocation30_spill] sm:$0xff]  ;;  %v6516_v5 = vld [vmem:[#allocation19_spill] sm:$0xff]  ;;  %v6517_v52 = vld [vmem:[#allocation20_spill] sm:$0xff]  ;;  %v2573_v17 = vshll.u32 %v5731_v32, 16  ;;  %v2583_v40 = vshrl.u32 %v5734_v2, 16 }
 0x108   : > { %v5650_v51 = vcombine.low %v1936_v6, %v1946_v57  ;;  %v1317_v42 = vsel %vm5195_vm7, %v1315_v19, %v1316_v7  ;;  %v6515_v1 = vld [vmem:[#allocation18_spill] sm:$0xff]  ;;  %v6519_v57 = vld [vmem:[#allocation24_spill] sm:$0xff]  ;;  %v2579_v7 = vshll.u32 %v5734_v2, 16  ;;  %v2800_v30 = vrot.slane %v5734_v2, 5 }
 0x109   : > { %v3552_v23 = vcombine.low %v1314_v20, %v1317_v42  ;;  %v6518_v6 = vld [vmem:[#allocation22_spill] sm:$0xff]  ;;  %v2575_v50 = vrot.slane %v2573_v17, 5  ;;  %v2585_v20 = vrot.slane %v2583_v40, 4 }
 0x10a   : > { %4044 = vmatmul.mubr.msk.bf16.gmra.mrb[24].mxu0 %vm786_vm3, %v5612_v28  ;;  %3892 = vmatmul.mubr.msk.bf16.gmra.mrb[8].mxu1 %vm786_vm3, %v5609_v21  ;;  %v6523_v22 = vld [vmem:[#allocation14_spill] sm:$0xff]  ;;  %v2581_v19 = vrot.slane %v2579_v7, 5 }
 0x10b   : > { %4047 = vmatprep.mubr.msk.bf16.mxu0 %vm786_vm3, %v5614_v58  ;;  %3895 = vmatprep.mubr.msk.bf16.mxu1 %vm786_vm3, %v5622_v36  ;;  %v347_v42 = vld [vmem:[%s4963_s8 + $0xd4] sm:$0x1] }
 0x112   : > { %4048 = vmatmul.mubr.msk.bf16.gmra.mrb[28].mxu0 %vm786_vm3, %v5636_v24  ;;  %3896 = vmatmul.mubr.msk.bf16.gmra.mrb[12].mxu1 %vm786_vm3, %v5640_v25 }
 0x113   : > { %4053 = vmatprep.mubr.msk.bf16.mxu0 %vm786_vm3, %v5511_v0  ;;  %3899 = vmatprep.mubr.msk.bf16.mxu1 %vm786_vm3, %v5648_v62 }
 0x11a   : > { %4054 = vmatmul.mubr.msk.bf16.vlgmr.msra.gmra.mrb[0].mxu0 %vm786_vm3, %v5535_v41  ;;  %3900 = vmatmul.mubr.msk.bf16.gmra.mrb[16].mxu1 %vm786_vm3, %v5547_v46 }
 0x11b   : > { %4086 = vmatpush3.bf16.msra.mxu0 %v2602_v45  ;;  %3903 = vmatprep.mubr.msk.bf16.mxu1 %vm786_vm3, %v5555_v37  ;;  %v6521_v45 = vld [vmem:[#allocation29_spill] sm:$0xff] }
 0x11c   : > { %4057 = vmatprep.mubr.msk.bf16.mxu0 %vm786_vm3, %v5576_v12  ;;  %4420 = vmatprep.subr.msk.bf16.mxu0 %vm835_vm0, %v2806_v8  ;;  %v2570_v8 = vshrl.u32 %v5731_v32, 16 }
 0x122   : > { %4058 = vmatmul.mubr.msk.bf16.gmra.mrb[4].mxu0 %vm786_vm3, %v5609_v21  ;;  %3904 = vmatmul.mubr.msk.bf16.gmra.mrb[20].mxu1 %vm786_vm3, %v5559_v60 }
 0x123   : > { %4061 = vmatprep.mubr.msk.bf16.mxu0 %vm786_vm3, %v5622_v36  ;;  %3907 = vmatprep.mubr.msk.bf16.mxu1 %vm786_vm3, %v5568_v18 }
 0x12a   : > { %4062 = vmatmul.mubr.msk.bf16.gmra.mrb[8].mxu0 %vm786_vm3, %v5640_v25  ;;  %3908 = vmatmul.mubr.msk.bf16.gmra.mrb[24].mxu1 %vm786_vm3, %v5572_v44 }
 0x12b   : > { %4065 = vmatprep.mubr.msk.bf16.mxu0 %vm786_vm3, %v5648_v62  ;;  %3911 = vmatprep.mubr.msk.bf16.mxu1 %vm786_vm3, %v5580_v56 }
 0x132   : > { %4066 = vmatmul.mubr.msk.bf16.gmra.mrb[12].mxu0 %vm786_vm3, %v5547_v46  ;;  %3912 = vmatmul.mubr.msk.bf16.gmra.mrb[28].mxu1 %vm786_vm3, %v5584_v54 }
 0x133   : > { %4069 = vmatprep.mubr.msk.bf16.mxu0 %vm786_vm3, %v5555_v37  ;;  %3917 = vmatprep.mubr.msk.bf16.mxu1 %vm786_vm3, %v3552_v23  ;;  %v6524_v23 = vld [vmem:[#allocation33_spill] sm:$0xff] }
 0x13a   : > { %4070 = vmatmul.mubr.msk.bf16.gmra.mrb[16].mxu0 %vm786_vm3, %v5559_v60  ;;  %3918 = vmatmul.mubr.msk.bf16.vlgmr.msra.gmra.mrb[0].mxu1 %vm786_vm3, %v6506_v33  ;;  %v2589_v33 = vshll.u32 %v347_v42, 16 }
 0x13b   : > { %4073 = vmatprep.mubr.msk.bf16.mxu0 %vm786_vm3, %v5568_v18  ;;  %3950 = vmatpush3.bf16.msra.mxu1 %v1728_v53  ;;  %v2586_v53 = vor.u32 %v2585_v20, %v2581_v19 }
 0x13c   : > { %3921 = vmatprep.mubr.msk.bf16.mxu1 %vm786_vm3, %v6507_v55  ;;  %4416 = vmatprep.subr.msk.bf16.mxu1 %vm835_vm0, %v4520_v15 }
 0x13d   : > { %v2587_v15 = vrot.slane %v2586_v53, 4 }
 0x142   : > { %4074 = vmatmul.mubr.msk.bf16.gmra.mrb[20].mxu0 %vm786_vm3, %v5572_v44  ;;  %3922 = vmatmul.mubr.msk.bf16.gmra.mrb[4].mxu1 %vm786_vm3, %v6508_v39 }
 0x143   : > { %4077 = vmatprep.mubr.msk.bf16.mxu0 %vm786_vm3, %v5580_v56  ;;  %3925 = vmatprep.mubr.msk.bf16.mxu1 %vm786_vm3, %v6509_v48 }
 0x14a   : > { %4078 = vmatmul.mubr.msk.bf16.gmra.mrb[24].mxu0 %vm786_vm3, %v5584_v54  ;;  %3926 = vmatmul.mubr.msk.bf16.gmra.mrb[8].mxu1 %vm786_vm3, %v6510_v35 }
 0x14b   : > { %4081 = vmatprep.mubr.msk.bf16.mxu0 %vm786_vm3, %v5722_v47  ;;  %3929 = vmatprep.mubr.msk.bf16.mxu1 %vm786_vm3, %v6511_v59 }
 0x152   : > { %4082 = vmatmul.mubr.msk.bf16.gmra.mrb[28].mxu0 %vm786_vm3, %v3636_v26  ;;  %3930 = vmatmul.mubr.msk.bf16.gmra.mrb[12].mxu1 %vm786_vm3, %v5446_v10  ;;  %v2591_v26 = vrot.slane %v2589_v33, 5 }
 0x153   : > { %4087 = vmatprep.mubr.msk.bf16.mxu0 %vm786_vm3, %v6512_v49  ;;  %3933 = vmatprep.mubr.msk.bf16.mxu1 %vm786_vm3, %v5474_v3 }
 0x154   : > { %v2592_v49 = vsel %vm5017_vm4, %v2587_v15, %v2591_v26 }
 0x15a   : > { %4088 = vmatmul.mubr.msk.bf16.vlgmr.msra.gmra.mrb[0].mxu0 %vm786_vm3, %v6513_v38  ;;  %3934 = vmatmul.mubr.msk.bf16.gmra.mrb[16].mxu1 %vm786_vm3, %v5481_v11 }
 0x15b   : > { %4120 = vmatpush3.bf16.msra.mxu0 %v2814_v16  ;;  %3937 = vmatprep.mubr.msk.bf16.mxu1 %vm786_vm3, %v5500_v61 }
 0x15c   : > { %4091 = vmatprep.mubr.msk.bf16.mxu0 %vm786_vm3, %v6514_v29 }
 0x162   : > { %4092 = vmatmul.mubr.msk.bf16.gmra.mrb[4].mxu0 %vm786_vm3, %v6515_v1  ;;  %3938 = vmatmul.mubr.msk.bf16.gmra.mrb[20].mxu1 %vm786_vm3, %v5507_v43 }
 0x163   : > { %4095 = vmatprep.mubr.msk.bf16.mxu0 %vm786_vm3, %v6516_v5  ;;  %3941 = vmatprep.mubr.msk.bf16.mxu1 %vm786_vm3, %v5542_v14 }
 0x16a   : > { %4096 = vmatmul.mubr.msk.bf16.gmra.mrb[8].mxu0 %vm786_vm3, %v6517_v52  ;;  %3942 = vmatmul.mubr.msk.bf16.gmra.mrb[24].mxu1 %vm786_vm3, %v5561_v4 }
 0x16b   : > { %4099 = vmatprep.mubr.msk.bf16.mxu0 %vm786_vm3, %v6518_v6  ;;  %3945 = vmatprep.mubr.msk.bf16.mxu1 %vm786_vm3, %v5612_v28 }
 0x172   : > { %4100 = vmatmul.mubr.msk.bf16.gmra.mrb[12].mxu0 %vm786_vm3, %v6519_v57  ;;  %3946 = vmatmul.mubr.msk.bf16.gmra.mrb[28].mxu1 %vm786_vm3, %v5614_v58 }
 0x173   : > { %4103 = vmatprep.mubr.msk.bf16.mxu0 %vm786_vm3, %v6520_v27  ;;  %3951 = vmatprep.mubr.msk.bf16.mxu1 %vm786_vm3, %v5023_v34  ;;  %v2572_v34 = vrot.slane %v2570_v8, 4 }
 0x17a   : > { %4104 = vmatmul.mubr.msk.bf16.gmra.mrb[16].mxu0 %vm786_vm3, %v6521_v45  ;;  %3952 = vmatmul.mubr.msk.bf16.vlgmr.msra.gmra.mrb[0].mxu1 %vm786_vm3, %v5511_v0  ;;  %v2576_v0 = vor.u32 %v2575_v50, %v2572_v34 }
 0x17b   : > { %4107 = vmatprep.mubr.msk.bf16.mxu0 %vm786_vm3, %v6522_v31  ;;  %4154 = vmatpush3.bf16.msra.mxu1 %v6523_v22 }
 0x17c   : > { %3955 = vmatprep.mubr.msk.bf16.mxu1 %vm786_vm3, %v5535_v41  ;;  %v2577_v41 = vrot.slane %v2576_v0, 4 }
 0x182   : > { %4108 = vmatmul.mubr.msk.bf16.gmra.mrb[20].mxu0 %vm786_vm3, %v6524_v23  ;;  %3956 = vmatmul.mubr.msk.bf16.gmra.mrb[4].mxu1 %vm786_vm3, %v5576_v12  ;;  %v2582_v12 = vsel %vm5017_vm4, %v2577_v41, %v2581_v19 }
 0x183   : > { %4111 = vmatprep.mubr.msk.bf16.mxu0 %vm786_vm3, %v5449_v63  ;;  %3959 = vmatprep.mubr.msk.bf16.mxu1 %vm786_vm3, %v5609_v21  ;;  %v3653_v21 = vcombine.low %v2582_v12, %v2592_v49 }
 0x18a   : > { %4112 = vmatmul.mubr.msk.bf16.gmra.mrb[24].mxu0 %vm786_vm3, %v5479_v13  ;;  %3960 = vmatmul.mubr.msk.bf16.gmra.mrb[8].mxu1 %vm786_vm3, %v5622_v36 }
 0x18b   : > { %4115 = vmatprep.mubr.msk.bf16.mxu0 %vm786_vm3, %v5650_v51  ;;  %3963 = vmatprep.mubr.msk.bf16.mxu1 %vm786_vm3, %v5640_v25 }
 0x192   : > { %4116 = vmatmul.mubr.msk.bf16.gmra.mrb[28].mxu0 %vm786_vm3, %v3653_v21  ;;  %3964 = vmatmul.mubr.msk.bf16.gmra.mrb[12].mxu1 %vm786_vm3, %v5648_v62 }
 0x193   : > { %4121 = vmatprep.mubr.msk.bf16.mxu0 %vm786_vm3, %v6507_v55  ;;  %3967 = vmatprep.mubr.msk.bf16.mxu1 %vm786_vm3, %v5547_v46 }
 0x19a   : > { %4122 = vmatmul.mubr.msk.bf16.vlgmr.msra.gmra.mrb[0].mxu0 %vm786_vm3, %v6508_v39  ;;  %3968 = vmatmul.mubr.msk.bf16.gmra.mrb[16].mxu1 %vm786_vm3, %v5555_v37 }
 0x19b   : > { %4125 = vmatprep.mubr.msk.bf16.mxu0 %vm786_vm3, %v6509_v48  ;;  %3971 = vmatprep.mubr.msk.bf16.mxu1 %vm786_vm3, %v5559_v60 }
 0x1a2   : > { %4126 = vmatmul.mubr.msk.bf16.gmra.mrb[4].mxu0 %vm786_vm3, %v6510_v35  ;;  %3972 = vmatmul.mubr.msk.bf16.gmra.mrb[20].mxu1 %vm786_vm3, %v5568_v18 }
 0x1a3   : > { %4129 = vmatprep.mubr.msk.bf16.mxu0 %vm786_vm3, %v6511_v59  ;;  %3975 = vmatprep.mubr.msk.bf16.mxu1 %vm786_vm3, %v5572_v44 }
 0x1aa   : > { %4130 = vmatmul.mubr.msk.bf16.gmra.mrb[8].mxu0 %vm786_vm3, %v5446_v10  ;;  %3976 = vmatmul.mubr.msk.bf16.gmra.mrb[24].mxu1 %vm786_vm3, %v5580_v56  ;;  %v3670_v10 = vrot.slane %v5731_v32, 9 }
 0x1ab   : > { %4133 = vmatprep.mubr.msk.bf16.mxu0 %vm786_vm3, %v5474_v3  ;;  %3979 = vmatprep.mubr.msk.bf16.mxu1 %vm786_vm3, %v5584_v54  ;;  %v2802_v3 = vrot.slane %v2800_v30, 4 }
 0x1b2   : > { %4134 = vmatmul.mubr.msk.bf16.gmra.mrb[12].mxu0 %vm786_vm3, %v5481_v11  ;;  %3980 = vmatmul.mubr.msk.bf16.gmra.mrb[28].mxu1 %vm786_vm3, %v5722_v47  ;;  %v2803_v11 = vrot.slane %v347_v42, 5 }
 0x1b3   : > { %4137 = vmatprep.mubr.msk.bf16.mxu0 %vm786_vm3, %v5500_v61  ;;  %4001 = vmatprep.mubr.msk.bf16.mxu1 %vm786_vm3, %v6519_v57  ;;  %v2801_v61 = vsel %vm5195_vm7, %v3670_v10, %v2800_v30 }
 0x1ba   : > { %4138 = vmatmul.mubr.msk.bf16.gmra.mrb[16].mxu0 %vm786_vm3, %v5507_v43  ;;  %4002 = vmatmul.mubr.msk.bf16.vlgmr.msra.gmra.mrb[16].mxu1 %vm786_vm3, %v6520_v27  ;;  %v2804_v43 = vsel %vm5195_vm7, %v2802_v3, %v2803_v11 }
 0x1bb   : > { %4141 = vmatprep.mubr.msk.bf16.mxu0 %vm786_vm3, %v5542_v14  ;;  %4005 = vmatprep.mubr.msk.bf16.mxu1 %vm786_vm3, %v6521_v45  ;;  %v3671_v14 = vcombine.low %v2801_v61, %v2804_v43 }
 0x1c2   : > { %4142 = vmatmul.mubr.msk.bf16.gmra.mrb[20].mxu0 %vm786_vm3, %v5561_v4  ;;  %4006 = vmatmul.mubr.msk.bf16.gmra.mrb[20].mxu1 %vm786_vm3, %v6522_v31 }
 0x1c3   : > { %4145 = vmatprep.mubr.msk.bf16.mxu0 %vm786_vm3, %v5612_v28  ;;  %4009 = vmatprep.mubr.msk.bf16.mxu1 %vm786_vm3, %v6524_v23 }
 0x1ca   : > { %4146 = vmatmul.mubr.msk.bf16.gmra.mrb[24].mxu0 %vm786_vm3, %v5614_v58  ;;  %4010 = vmatmul.mubr.msk.bf16.gmra.mrb[24].mxu1 %vm786_vm3, %v5449_v63 }
 0x1cb   : > { %4149 = vmatprep.mubr.msk.bf16.mxu0 %vm786_vm3, %v5636_v24  ;;  %4013 = vmatprep.mubr.msk.bf16.mxu1 %vm786_vm3, %v5479_v13 }
 0x1d2   : > { %4150 = vmatmul.mubr.msk.bf16.gmra.mrb[28].mxu0 %vm786_vm3, %v3671_v14  ;;  %4014 = vmatmul.mubr.msk.bf16.gmra.mrb[28].mxu1 %vm786_vm3, %v5650_v51 }
 0x24d   : > { %v3953_v46 = vpop.f32.mrb[0].mxu1 }
 0x24e   : > { %v1764_v63 = vpop.f32.mrb[1].mxu1 }
 0x24f   : > { %v3954_v37 = vpop.f32.mrb[2].mxu1 }
 0x250   : > { %v1767_v60 = vpop.f32.mrb[3].mxu1 }
 0x255   : > { %v3957_v4 = vpop.f32.mrb[4].mxu1 }
 0x256   : > { %v1780_v18 = vpop.f32.mrb[5].mxu1 }
 0x257   : > { %v3958_v44 = vpop.f32.mrb[6].mxu1 }
 0x258   : > { %v1783_v56 = vpop.f32.mrb[7].mxu1 }
 0x25d   : > { %v3961_v54 = vpop.f32.mrb[8].mxu1 }
 0x25e   : > { %v1796_v9 = vpop.f32.mrb[9].mxu1 }
 0x25f   : > { %v3962_v28 = vpop.f32.mrb[10].mxu1 }
 0x260   : > { %v1799_v58 = vpop.f32.mrb[11].mxu1 }
 0x265   : > { %v3965_v36 = vpop.f32.mrb[12].mxu1 }
 0x266   : > { %v1812_v13 = vpop.f32.mrb[13].mxu1 }
 0x267   : > { %v5886_v24 = vpop.f32.mrb[14].mxu1 }
 0x268   : > { %v5888_v25 = vpop.f32.mrb[15].mxu1 }
 0x26d   : > { %v4123_v62 = vpop.f32.mrb[0].mxu0 }
 0x26e   : > { %v5890_v51 = vadd.f32 %v4123_v62, %v3953_v46  ;;  %v2850_v55 = vpop.f32.mrb[1].mxu0 }
 0x26f   : > { %v5892_v39 = vadd.f32 %v2850_v55, %v1764_v63  ;;  %v4124_v48 = vpop.f32.mrb[2].mxu0 }
 0x270   : > { %v5894_v47 = vadd.f32 %v4124_v48, %v3954_v37  ;;  %v2853_v35 = vpop.f32.mrb[3].mxu0  ;;  %v3049_v38 = vmul.f32 %v5890_v51, %v5890_v51 }
 0x271   : > { %v5896_v32 = vadd.f32 %v2853_v35, %v1767_v60  ;;  %v3047_v2 = vmul.f32 %v5892_v39, %v5892_v39 }
 0x272   : > { %v3050_v57 = vmul.f32 %v5894_v47, %v5894_v47 }
 0x273   : > { %v3009_v59 = vadd.f32 %v5896_v32, %v5892_v39  ;;  %v3048_v16 = vmul.f32 %v5896_v32, %v5896_v32 }
 0x275   : > { %v3010_v29 = vadd.f32 %v5890_v51, %v3009_v59  ;;  %v3079_v1 = vadd.f32 %v3048_v16, %v3047_v2  ;;  %v4127_v5 = vpop.f32.mrb[4].mxu0 }
 0x276   : > { %v5907_v52 = vadd.f32 %v4127_v5, %v3957_v4  ;;  %v2866_v6 = vpop.f32.mrb[5].mxu0 }
 0x277   : > { %v3080_v27 = vadd.f32 %v3079_v1, %v3049_v38  ;;  %v5911_v45 = vadd.f32 %v2866_v6, %v1780_v18  ;;  %v3011_v8 = vadd.f32 %v5894_v47, %v3010_v29  ;;  %v4128_v17 = vpop.f32.mrb[6].mxu0 }
 0x278   : > { %v5914_v40 = vadd.f32 %v4128_v17, %v3958_v44  ;;  %v2869_v31 = vpop.f32.mrb[7].mxu0  ;;  %v3053_v23 = vmul.f32 %v5907_v52, %v5907_v52 }
 0x279   : > { %v3012_v7 = vadd.f32 %v5911_v45, %v3011_v8  ;;  %v3051_v22 = vmul.f32 %v5911_v45, %v5911_v45  ;;  %v3081_v34 = vadd.f32 %v3080_v27, %v3050_v57  ;;  %v5919_v50 = vadd.f32 %v2869_v31, %v1783_v56 }
 0x27a   : > { %v3054_v26 = vmul.f32 %v5914_v40, %v5914_v40 }
 0x27b   : > { %v3082_v19 = vadd.f32 %v3081_v34, %v3051_v22  ;;  %v3013_v20 = vadd.f32 %v5919_v50, %v3012_v7  ;;  %v3052_v42 = vmul.f32 %v5919_v50, %v5919_v50 }
 0x27d   : > { %v3014_v0 = vadd.f32 %v5907_v52, %v3013_v20  ;;  %v3083_v53 = vadd.f32 %v3082_v19, %v3052_v42  ;;  %v4131_v33 = vpop.f32.mrb[8].mxu0 }
 0x27e   : > { %v5927_v41 = vadd.f32 %v4131_v33, %v3961_v54  ;;  %v2882_v15 = vpop.f32.mrb[9].mxu0 }
 0x27f   : > { %v3084_v12 = vadd.f32 %v3083_v53, %v3053_v23  ;;  %v5931_v49 = vadd.f32 %v2882_v15, %v1796_v9  ;;  %v3015_v21 = vadd.f32 %v5914_v40, %v3014_v0  ;;  %v4132_v30 = vpop.f32.mrb[10].mxu0 }
 0x280   : > { %v5934_v10 = vadd.f32 %v4132_v30, %v3962_v28  ;;  %v2885_v3 = vpop.f32.mrb[11].mxu0  ;;  %v3057_v60 = vmul.f32 %v5927_v41, %v5927_v41 }
 0x281   : > { %v3016_v11 = vadd.f32 %v5931_v49, %v3015_v21  ;;  %v3055_v61 = vmul.f32 %v5931_v49, %v5931_v49  ;;  %v3085_v43 = vadd.f32 %v3084_v12, %v3054_v26  ;;  %v5939_v14 = vadd.f32 %v2885_v3, %v1799_v58 }
 0x282   : > { %v3058_v9 = vmul.f32 %v5934_v10, %v5934_v10 }
 0x283   : > { %v3086_v46 = vadd.f32 %v3085_v43, %v3055_v61  ;;  %v3017_v63 = vadd.f32 %v5939_v14, %v3016_v11  ;;  %v3056_v37 = vmul.f32 %v5939_v14, %v5939_v14 }
 0x285   : > { %v3018_v4 = vadd.f32 %v5927_v41, %v3017_v63  ;;  %v3087_v18 = vadd.f32 %v3086_v46, %v3056_v37  ;;  %v4135_v44 = vpop.f32.mrb[12].mxu0 }
 0x286   : > { %v5947_v56 = vadd.f32 %v4135_v44, %v3965_v36  ;;  %v2898_v54 = vpop.f32.mrb[13].mxu0 }
 0x287   : > { %v3088_v28 = vadd.f32 %v3087_v18, %v3057_v60  ;;  %v5951_v58 = vadd.f32 %v2898_v54, %v1812_v13  ;;  %v3019_v62 = vadd.f32 %v5934_v10, %v3018_v4  ;;  %v4136_v55 = vpop.f32.mrb[14].mxu0 }
 0x288   : > { %v5955_v48 = vadd.f32 %v4136_v55, %v5886_v24  ;;  %v2901_v35 = vpop.f32.mrb[15].mxu0  ;;  %v3061_v24 = vmul.f32 %v5947_v56, %v5947_v56 }
 0x289   : > { %v3020_v2 = vadd.f32 %v5951_v58, %v3019_v62  ;;  %v3059_v36 = vmul.f32 %v5951_v58, %v5951_v58  ;;  %v3089_v59 = vadd.f32 %v3088_v28, %v3058_v9  ;;  %v5961_v16 = vadd.f32 %v2901_v35, %v5888_v25 }
 0x28a   : > { %v3062_v8 = vmul.f32 %v5955_v48, %v5955_v48 }
 0x28b   : > { %v3090_v38 = vadd.f32 %v3089_v59, %v3059_v36  ;;  %v3021_v13 = vadd.f32 %v5961_v16, %v3020_v2  ;;  %v3060_v29 = vmul.f32 %v5961_v16, %v5961_v16 }
 0x28d   : > { %v3022_v1 = vadd.f32 %v5947_v56, %v3021_v13  ;;  %v3091_v5 = vadd.f32 %v3090_v38, %v3060_v29  ;;  %v4139_v6 = vpop.f32.mrb[16].mxu0  ;;  %v4003_v57 = vpop.f32.mrb[16].mxu1 }
 0x28e   : > { %v2914_v27 = vpop.f32.mrb[17].mxu0  ;;  %v5971_v17 = vadd.f32 %v4139_v6, %v4003_v57  ;;  %v2056_v31 = vpop.f32.mrb[17].mxu1 }
 0x28f   : > { %v3092_v25 = vadd.f32 %v3091_v5, %v3061_v24  ;;  %v3023_v7 = vadd.f32 %v5955_v48, %v3022_v1  ;;  %v4140_v22 = vpop.f32.mrb[18].mxu0  ;;  %v5974_v34 = vadd.f32 %v2914_v27, %v2056_v31  ;;  %v4004_v19 = vpop.f32.mrb[18].mxu1 }
 0x290   : > { %v2917_v20 = vpop.f32.mrb[19].mxu0  ;;  %v5976_v23 = vadd.f32 %v4140_v22, %v4004_v19  ;;  %v2059_v0 = vpop.f32.mrb[19].mxu1  ;;  %v3065_v3 = vmul.f32 %v5971_v17, %v5971_v17 }
 0x291   : > { %v3093_v42 = vadd.f32 %v3092_v25, %v3062_v8  ;;  %v3024_v53 = vadd.f32 %v5974_v34, %v3023_v7  ;;  %v3063_v33 = vmul.f32 %v5974_v34, %v5974_v34  ;;  %v5981_v15 = vadd.f32 %v2917_v20, %v2059_v0 }
 0x292   : > { %v3066_v4 = vmul.f32 %v5976_v23, %v5976_v23 }
 0x293   : > { %v3094_v26 = vadd.f32 %v3093_v42, %v3063_v33  ;;  %v3025_v12 = vadd.f32 %v5981_v15, %v3024_v53  ;;  %v3064_v21 = vmul.f32 %v5981_v15, %v5981_v15 }
 0x295   : > { %v4143_v30 = vpop.f32.mrb[20].mxu0  ;;  %v3026_v11 = vadd.f32 %v5971_v17, %v3025_v12  ;;  %v3095_v61 = vadd.f32 %v3094_v26, %v3064_v21  ;;  %v4007_v43 = vpop.f32.mrb[20].mxu1 }
 0x296   : > { %v2930_v46 = vpop.f32.mrb[21].mxu0  ;;  %v5989_v63 = vadd.f32 %v4143_v30, %v4007_v43  ;;  %v2072_v37 = vpop.f32.mrb[21].mxu1 }
 0x297   : > { %v4144_v60 = vpop.f32.mrb[22].mxu0  ;;  %v3096_v18 = vadd.f32 %v3095_v61, %v3065_v3  ;;  %v5993_v44 = vadd.f32 %v2930_v46, %v2072_v37  ;;  %v3027_v54 = vadd.f32 %v5976_v23, %v3026_v11  ;;  %v4008_v9 = vpop.f32.mrb[22].mxu1 }
 0x298   : > { %v2933_v28 = vpop.f32.mrb[23].mxu0  ;;  %v5996_v62 = vadd.f32 %v4144_v60, %v4008_v9  ;;  %v2075_v55 = vpop.f32.mrb[23].mxu1  ;;  %v3069_v1 = vmul.f32 %v5989_v63, %v5989_v63 }
 0x299   : > { %v3028_v35 = vadd.f32 %v5993_v44, %v3027_v54  ;;  %v3067_v2 = vmul.f32 %v5993_v44, %v5993_v44  ;;  %v3097_v36 = vadd.f32 %v3096_v18, %v3066_v4  ;;  %v6001_v59 = vadd.f32 %v2933_v28, %v2075_v55 }
 0x29a   : > { %v3070_v7 = vmul.f32 %v5996_v62, %v5996_v62 }
 0x29b   : > { %v3098_v38 = vadd.f32 %v3097_v36, %v3067_v2  ;;  %v3029_v13 = vadd.f32 %v6001_v59, %v3028_v35  ;;  %v3068_v29 = vmul.f32 %v6001_v59, %v6001_v59 }
 0x29d   : > { %v4147_v24 = vpop.f32.mrb[24].mxu0  ;;  %v3030_v5 = vadd.f32 %v5989_v63, %v3029_v13  ;;  %v3099_v6 = vadd.f32 %v3098_v38, %v3068_v29  ;;  %v4011_v57 = vpop.f32.mrb[24].mxu1 }
 0x29e   : > { %v2946_v27 = vpop.f32.mrb[25].mxu0  ;;  %v6009_v8 = vadd.f32 %v4147_v24, %v4011_v57  ;;  %v2088_v25 = vpop.f32.mrb[25].mxu1 }
 0x29f   : > { %v4148_v31 = vpop.f32.mrb[26].mxu0  ;;  %v3100_v22 = vadd.f32 %v3099_v6, %v3069_v1  ;;  %v6013_v19 = vadd.f32 %v2946_v27, %v2088_v25  ;;  %v3031_v20 = vadd.f32 %v5996_v62, %v3030_v5  ;;  %v4012_v42 = vpop.f32.mrb[26].mxu1 }
 0x2a0   : > { %v2949_v0 = vpop.f32.mrb[27].mxu0  ;;  %v6016_v53 = vadd.f32 %v4148_v31, %v4012_v42  ;;  %v2091_v33 = vpop.f32.mrb[27].mxu1  ;;  %v3073_v46 = vmul.f32 %v6009_v8, %v6009_v8 }
 0x2a1   : > { %v3032_v26 = vadd.f32 %v6013_v19, %v3031_v20  ;;  %v3071_v12 = vmul.f32 %v6013_v19, %v6013_v19  ;;  %v3101_v21 = vadd.f32 %v3100_v22, %v3070_v7  ;;  %v6021_v30 = vadd.f32 %v2949_v0, %v2091_v33 }
 0x2a2   : > { %v3074_v55 = vmul.f32 %v6016_v53, %v6016_v53 }
 0x2a3   : > { %v3102_v3 = vadd.f32 %v3101_v21, %v3071_v12  ;;  %v3033_v11 = vadd.f32 %v6021_v30, %v3032_v26  ;;  %v3072_v61 = vmul.f32 %v6021_v30, %v6021_v30 }
 0x2a5   : > { %v4151_v43 = vpop.f32.mrb[28].mxu0  ;;  %v3034_v37 = vadd.f32 %v6009_v8, %v3033_v11  ;;  %v3103_v60 = vadd.f32 %v3102_v3, %v3072_v61  ;;  %v4015_v4 = vpop.f32.mrb[28].mxu1 }
 0x2a6   : > { %v2962_v18 = vpop.f32.mrb[29].mxu0  ;;  %v6029_v54 = vadd.f32 %v4151_v43, %v4015_v4  ;;  %v2104_v9 = vpop.f32.mrb[29].mxu1 }
 0x2a7   : > { %v4152_v28 = vpop.f32.mrb[30].mxu0  ;;  %v3104_v35 = vadd.f32 %v3103_v60, %v3073_v46  ;;  %v6033_v2 = vadd.f32 %v2962_v18, %v2104_v9  ;;  %v3035_v36 = vadd.f32 %v6016_v53, %v3034_v37  ;;  %v4016_v38 = vpop.f32.mrb[30].mxu1 }
 0x2a8   : > { %v2965_v13 = vpop.f32.mrb[31].mxu0  ;;  %v6036_v29 = vadd.f32 %v4152_v28, %v4016_v38  ;;  %v2107_v24 = vpop.f32.mrb[31].mxu1  ;;  %v3077_v7 = vmul.f32 %v6029_v54, %v6029_v54 }
 0x2a9   : > { %v3036_v1 = vadd.f32 %v6033_v2, %v3035_v36  ;;  %v3075_v5 = vmul.f32 %v6033_v2, %v6033_v2  ;;  %v3105_v6 = vadd.f32 %v3104_v35, %v3074_v55  ;;  %v4186_v57 = vadd.f32 %v2965_v13, %v2107_v24 }
 0x2aa   : > { %v3078_v42 = vmul.f32 %v6036_v29, %v6036_v29  ;;  %v3128_v24 = vlaneseq }
 0x2ab   : > { %v3106_v27 = vadd.f32 %v3105_v6, %v3075_v5  ;;  %v3037_v25 = vadd.f32 %v4186_v57, %v3036_v1  ;;  %v3076_v31 = vmul.f32 %v4186_v57, %v4186_v57  ;;  %v3122_v5 = vld [vmem:[%s252_s26] sm:$0x1] }
 0x2ac   : > { %v3129_v1 = vshrl.u32 %v3128_v24, 7 }
 0x2ad   : > { %v3038_v22 = vadd.f32 %v6029_v54, %v3037_v25  ;;  %v3107_v20 = vadd.f32 %v3106_v27, %v3076_v31  ;;  %v3124_v31 = vld [vmem:[%s260_s7] sm:$0x1] }
 0x2ae   : > { %v3130_v6 = vsub.s32 0, %v3129_v1 }
 0x2af   : > { %v3039_v0 = vadd.f32 %v6036_v29, %v3038_v22  ;;  %v3108_v33 = vadd.f32 %v3107_v20, %v3077_v7 }
 0x2b1   : > { %v3040_v26 = vrot.slane %v3039_v0, 4  ;;  %v3109_v12 = vadd.f32 %v3108_v33, %v3078_v42 }
 0x2b3   : > { %v3041_v21 = vadd.f32 %v3040_v26, %v3039_v0  ;;  %v3110_v3 = vrot.slane %v3109_v12, 4 }
 0x2b5   : > { %v3042_v11 = vrot.slane %v3041_v21, 2  ;;  %v3111_v61 = vadd.f32 %v3110_v3, %v3109_v12 }
 0x2b7   : > { %v3043_v43 = vadd.f32 %v3042_v11, %v3041_v21  ;;  %v3112_v46 = vrot.slane %v3111_v61, 2 }
 0x2b9   : > { %v3044_v37 = vrot.slane %v3043_v43, 1  ;;  %v3113_v60 = vadd.f32 %v3112_v46, %v3111_v61 }
 0x2bb   : > { %v3045_v4 = vadd.f32 %v3044_v37, %v3043_v43  ;;  %v3114_v18 = vrot.slane %v3113_v60, 1 }
 0x2bd   : > { %v3046_v9 = vmul.f32 0.00390625, %v3045_v4  ;;  %v3115_v28 = vadd.f32 %v3114_v18, %v3113_v60 }
 0x2bf   : > { %v3116_v55 = vmul.f32 0.00390625, %v3115_v28  ;;  %v3117_v35 = vmul.f32 %v3046_v9, %v3046_v9 }
 0x2c1   : > { %v3118_v36 = vsub.f32 %v3116_v55, %v3117_v35 }
 0x2c3   : > { %v3119_v38 = vmax.f32 %v3118_v36, 0.0 }
 0x2c5   : > { %v3120_v13 = vadd.f32 1e-08, %v3119_v38 }
 0x2c7   : > { %4515 = vrsqrt.f32 %v3120_v13 }
 0x2d1   : > { %v4516_v27 = vpop.eup %4515 }
 0x2d2   : > { %v3123_v25 = vmul.f32 %v4516_v27, %v3122_v5 }
 0x2d4   : > { %v3125_v7 = vmul.f32 %v3123_v25, %v3046_v9  ;;  %v3131_v22 = vrot.slane %v3123_v25, %v3130_v6 }
 0x2d6   : > { %v3126_v20 = vsub.f32 %v3124_v31, %v3125_v7  ;;  %v3162_v42 = vmul.f32 %v4186_v57, %v3131_v22  ;;  %v3133_v0 = vmul.f32 %v5892_v39, %v3131_v22  ;;  %v3134_v33 = vmul.f32 %v5896_v32, %v3131_v22 }
 0x2d7   : > { %v3135_v26 = vmul.f32 %v5890_v51, %v3131_v22  ;;  %v3136_v12 = vmul.f32 %v5894_v47, %v3131_v22  ;;  %v3137_v21 = vmul.f32 %v5911_v45, %v3131_v22  ;;  %v3138_v3 = vmul.f32 %v5919_v50, %v3131_v22 }
 0x2d8   : > { %v6056_v11 = vrot.slane %v3126_v20, %v3130_v6  ;;  %v3139_v61 = vmul.f32 %v5907_v52, %v3131_v22  ;;  %v3140_v43 = vmul.f32 %v5914_v40, %v3131_v22  ;;  %v3141_v57 = vmul.f32 %v5931_v49, %v3131_v22 }
 0x2d9   : > { %v3142_v39 = vmul.f32 %v5939_v14, %v3131_v22  ;;  %v3143_v32 = vmul.f32 %v5927_v41, %v3131_v22  ;;  %v3144_v51 = vmul.f32 %v5934_v10, %v3131_v22  ;;  %v3145_v47 = vmul.f32 %v5951_v58, %v3131_v22 }
 0x2da   : > { %v3200_v45 = vadd.f32 %v6056_v11, %v3162_v42  ;;  %v3146_v50 = vmul.f32 %v5961_v16, %v3131_v22  ;;  %v3147_v46 = vmul.f32 %v5947_v56, %v3131_v22  ;;  %v3148_v52 = vmul.f32 %v5955_v48, %v3131_v22 }
 0x2db   : > { %v3149_v40 = vmul.f32 %v5974_v34, %v3131_v22  ;;  %v3150_v49 = vmul.f32 %v5981_v15, %v3131_v22  ;;  %v3151_v14 = vmul.f32 %v5971_v17, %v3131_v22  ;;  %v3152_v41 = vmul.f32 %v5976_v23, %v3131_v22 }
 0x2dc   : > { %vm3232_vm8 = vcmp.ge.f32.partialorder %v3200_v45, 0.0  ;;  %v3264_v10 = vmul.f32 0.2, %v3200_v45  ;;  %v3153_v58 = vmul.f32 %v5993_v44, %v3131_v22  ;;  %v3154_v37 = vmul.f32 %v6001_v59, %v3131_v22 }
 0x2dd   : > { %v3155_v16 = vmul.f32 %v5989_v63, %v3131_v22  ;;  %v3156_v56 = vmul.f32 %v5996_v62, %v3131_v22  ;;  %v3157_v48 = vmul.f32 %v6013_v19, %v3131_v22  ;;  %v3158_v34 = vmul.f32 %v6021_v30, %v3131_v22 }
 0x2de   : > { %v3296_v60 = vsel %vm3232_vm8, %v3200_v45, %v3264_v10  ;;  %v3159_v15 = vmul.f32 %v6009_v8, %v3131_v22  ;;  %v3160_v17 = vmul.f32 %v6016_v53, %v3131_v22  ;;  %v3161_v23 = vmul.f32 %v6033_v2, %v3131_v22 }
 0x2df   : > { %3328 = vst [vmem:[%s6083_s13 + $0xe8] sm:$0xff] %v3296_v60  ;;  %v3163_v44 = vmul.f32 %v6029_v54, %v3131_v22  ;;  %v3164_v63 = vmul.f32 %v6036_v29, %v3131_v22  ;;  %v6089_v62 = vadd.f32 %v6056_v11, %v3133_v0  ;;  %v6092_v59 = vadd.f32 %v6056_v11, %v3134_v33 }
 0x2e0   : > { %v6095_v8 = vadd.f32 %v6056_v11, %v3135_v26  ;;  %v6098_v19 = vadd.f32 %v6056_v11, %v3136_v12  ;;  %v6101_v53 = vadd.f32 %v6056_v11, %v3137_v21  ;;  %v6104_v30 = vadd.f32 %v6056_v11, %v3138_v3 }
 0x2e1   : > { %v6107_v54 = vadd.f32 %v6056_v11, %v3139_v61  ;;  %v6110_v2 = vadd.f32 %v6056_v11, %v3140_v43  ;;  %v6113_v29 = vadd.f32 %v6056_v11, %v3141_v57  ;;  %v6116_v4 = vadd.f32 %v6056_v11, %v3142_v39 }
 0x2e2   : > { %v6119_v18 = vadd.f32 %v6056_v11, %v3143_v32  ;;  %v6122_v9 = vadd.f32 %v6056_v11, %v3144_v51  ;;  %v6125_v28 = vadd.f32 %v6056_v11, %v3145_v47  ;;  %v6128_v55 = vadd.f32 %v6056_v11, %v3146_v50 }
 0x2e3   : > { %v6131_v35 = vadd.f32 %v6056_v11, %v3147_v46  ;;  %v6134_v36 = vadd.f32 %v6056_v11, %v3148_v52  ;;  %v6137_v38 = vadd.f32 %v6056_v11, %v3149_v40  ;;  %v6140_v13 = vadd.f32 %v6056_v11, %v3150_v49 }
 0x2e4   : > { %v6143_v24 = vadd.f32 %v6056_v11, %v3151_v14  ;;  %v6146_v1 = vadd.f32 %v6056_v11, %v3152_v41  ;;  %v6149_v5 = vadd.f32 %v6056_v11, %v3153_v58  ;;  %v6152_v6 = vadd.f32 %v6056_v11, %v3154_v37 }
 0x2e5   : > { %v6155_v27 = vadd.f32 %v6056_v11, %v3155_v16  ;;  %v6158_v25 = vadd.f32 %v6056_v11, %v3156_v56  ;;  %v6161_v31 = vadd.f32 %v6056_v11, %v3157_v48  ;;  %v6164_v7 = vadd.f32 %v6056_v11, %v3158_v34 }
 0x2e6   : > { %v6167_v22 = vadd.f32 %v6056_v11, %v3159_v15  ;;  %v6170_v20 = vadd.f32 %v6056_v11, %v3160_v17  ;;  %v6173_v42 = vadd.f32 %v6056_v11, %v3161_v23  ;;  %v6176_v0 = vadd.f32 %v6056_v11, %v3163_v44 }
 0x2e7   : > { %v6179_v33 = vadd.f32 %v6056_v11, %v3164_v63  ;;  %vm3203_vm9 = vcmp.ge.f32.partialorder %v6089_v62, 0.0  ;;  %vm3204_vm10 = vcmp.ge.f32.partialorder %v6092_v59, 0.0  ;;  %vm3205_vm11 = vcmp.ge.f32.partialorder %v6095_v8, 0.0 }
 0x2e8   : > { %vm3206_vm12 = vcmp.ge.f32.partialorder %v6098_v19, 0.0  ;;  %vm3207_vm13 = vcmp.ge.f32.partialorder %v6101_v53, 0.0  ;;  %vm3208_vm14 = vcmp.ge.f32.partialorder %v6104_v30, 0.0  ;;  %vm3209_vm15 = vcmp.ge.f32.partialorder %v6107_v54, 0.0 }
 0x2e9   : > { %vm3210_vm0 = vcmp.ge.f32.partialorder %v6110_v2, 0.0  ;;  %vm3211_vm1 = vcmp.ge.f32.partialorder %v6113_v29, 0.0  ;;  %v3235_v26 = vmul.f32 0.2, %v6089_v62  ;;  %v3236_v12 = vmul.f32 0.2, %v6092_v59 }
 0x2ea   : > { %v3237_v21 = vmul.f32 0.2, %v6095_v8  ;;  %vm3219_vm2 = vcmp.ge.f32.partialorder %v6137_v38, 0.0  ;;  %vm3220_vm3 = vcmp.ge.f32.partialorder %v6140_v13, 0.0  ;;  %v3238_v3 = vmul.f32 0.2, %v6098_v19 }
 0x2eb   : > { %v3239_v11 = vmul.f32 0.2, %v6101_v53  ;;  %v3240_v61 = vmul.f32 0.2, %v6104_v30  ;;  %vm3225_vm8 = vcmp.ge.f32.partialorder %v6155_v27, 0.0  ;;  %v3267_v32 = vsel %vm3203_vm9, %v6089_v62, %v3235_v26 }
 0x2ec   : > { %v3241_v43 = vmul.f32 0.2, %v6107_v54  ;;  %v3242_v57 = vmul.f32 0.2, %v6110_v2  ;;  %v3243_v39 = vmul.f32 0.2, %v6113_v29  ;;  %v3268_v50 = vsel %vm3204_vm10, %v6092_v59, %v3236_v12  ;;  %3299 = vst [vmem:[%s6083_s13] sm:$0xff] %v3267_v32 }
 0x2ed   : > { %vm3226_vm4 = vcmp.ge.f32.partialorder %v6158_v25, 0.0  ;;  %v3244_v51 = vmul.f32 0.2, %v6116_v4  ;;  %v3245_v47 = vmul.f32 0.2, %v6119_v18  ;;  %vm3230_vm9 = vcmp.ge.f32.partialorder %v6170_v20, 0.0 }
 0x2ee   : > { %v3246_v45 = vmul.f32 0.2, %v6122_v9  ;;  %vm3231_vm7 = vcmp.ge.f32.partialorder %v6173_v42, 0.0  ;;  %vm3233_vm6 = vcmp.ge.f32.partialorder %v6176_v0, 0.0  ;;  %vm3234_vm5 = vcmp.ge.f32.partialorder %v6179_v33, 0.0  ;;  %3300 = vst [vmem:[%s6083_s13 + $0x8] sm:$0xff] %v3268_v50 }
 0x2ef   : > { %v3247_v46 = vmul.f32 0.2, %v6125_v28  ;;  %v3248_v52 = vmul.f32 0.2, %v6128_v55  ;;  %v3249_v40 = vmul.f32 0.2, %v6131_v35  ;;  %v3269_v49 = vsel %vm3205_vm11, %v6095_v8, %v3237_v21 }
 0x2f0   : > { %v3250_v14 = vmul.f32 0.2, %v6134_v36  ;;  %v3251_v41 = vmul.f32 0.2, %v6137_v38  ;;  %v3252_v10 = vmul.f32 0.2, %v6140_v13  ;;  %v3270_v58 = vsel %vm3206_vm12, %v6098_v19, %v3238_v3 }
 0x2f1   : > { %3301 = vst [vmem:[%s6083_s13 + $0x10] sm:$0xff] %v3269_v49  ;;  %v3253_v37 = vmul.f32 0.2, %v6143_v24  ;;  %v3254_v16 = vmul.f32 0.2, %v6146_v1  ;;  %v3271_v48 = vsel %vm3207_vm13, %v6101_v53, %v3239_v11  ;;  %3302 = vst [vmem:[%s6083_s13 + $0x18] sm:$0xff] %v3270_v58  ;;  %v3272_v17 = vsel %vm3208_vm14, %v6104_v30, %v3240_v61 }
 0x2f2   : > { %v3255_v56 = vmul.f32 0.2, %v6149_v5  ;;  %v3256_v34 = vmul.f32 0.2, %v6152_v6  ;;  %v3257_v60 = vmul.f32 0.2, %v6155_v27  ;;  %v3273_v62 = vsel %vm3209_vm15, %v6107_v54, %v3241_v43 }
 0x2f3   : > { %v3258_v15 = vmul.f32 0.2, %v6158_v25  ;;  %3303 = vst [vmem:[%s6083_s13 + $0x20] sm:$0xff] %v3271_v48  ;;  %v3259_v23 = vmul.f32 0.2, %v6161_v31  ;;  %3304 = vst [vmem:[%s6083_s13 + $0x28] sm:$0xff] %v3272_v17  ;;  %v3274_v53 = vsel %vm3210_vm0, %v6110_v2, %v3242_v57  ;;  %v3275_v54 = vsel %vm3211_vm1, %v6113_v29, %v3243_v39 }
 0x2f4   : > { %v3260_v44 = vmul.f32 0.2, %v6164_v7  ;;  %v3261_v63 = vmul.f32 0.2, %v6167_v22  ;;  %v3262_v59 = vmul.f32 0.2, %v6170_v20 }
 0x2f5   : > { %v3263_v8 = vmul.f32 0.2, %v6173_v42  ;;  %v3265_v19 = vmul.f32 0.2, %v6176_v0  ;;  %3305 = vst [vmem:[%s6083_s13 + $0x30] sm:$0xff] %v3273_v62  ;;  %vm6525_vm10 = vcmp.ge.f32.partialorder %v6116_v4, 0.0 }
 0x2f6   : > { %v3266_v30 = vmul.f32 0.2, %v6179_v33  ;;  %v3276_v26 = vsel %vm6525_vm10, %v6116_v4, %v3244_v51  ;;  %vm6526_vm11 = vcmp.ge.f32.partialorder %v6119_v18, 0.0  ;;  %3306 = vst [vmem:[%s6083_s13 + $0x38] sm:$0xff] %v3274_v53  ;;  %vm6527_vm12 = vcmp.ge.f32.partialorder %v6122_v9, 0.0  ;;  %3307 = vst [vmem:[%s6083_s13 + $0x40] sm:$0xff] %v3275_v54 }
 0x2f7   : > { %v3277_v12 = vsel %vm6526_vm11, %v6119_v18, %v3245_v47  ;;  %v3278_v2 = vsel %vm6527_vm12, %v6122_v9, %v3246_v45  ;;  %vm6528_vm13 = vcmp.ge.f32.partialorder %v6125_v28, 0.0  ;;  %vm6529_vm14 = vcmp.ge.f32.partialorder %v6128_v55, 0.0  ;;  %3308 = vst [vmem:[%s6083_s13 + $0x48] sm:$0xff] %v3276_v26 }
 0x2f8   : > { %v3279_v29 = vsel %vm6528_vm13, %v6125_v28, %v3247_v46  ;;  %v3280_v4 = vsel %vm6529_vm14, %v6128_v55, %v3248_v52  ;;  %vm6530_vm15 = vcmp.ge.f32.partialorder %v6131_v35, 0.0  ;;  %3309 = vst [vmem:[%s6083_s13 + $0x50] sm:$0xff] %v3277_v12  ;;  %vm6531_vm0 = vcmp.ge.f32.partialorder %v6134_v36, 0.0  ;;  %3310 = vst [vmem:[%s6083_s13 + $0x58] sm:$0xff] %v3278_v2 }
 0x2f9   : > { %v3281_v18 = vsel %vm6530_vm15, %v6131_v35, %v3249_v40  ;;  %v3282_v9 = vsel %vm6531_vm0, %v6134_v36, %v3250_v14  ;;  %v3283_v28 = vsel %vm3219_vm2, %v6137_v38, %v3251_v41  ;;  %v3284_v55 = vsel %vm3220_vm3, %v6140_v13, %v3252_v10  ;;  %3311 = vst [vmem:[%s6083_s13 + $0x60] sm:$0xff] %v3279_v29 }
 0x2fa   : > { %vm6532_vm1 = vcmp.ge.f32.partialorder %v6143_v24, 0.0  ;;  %3312 = vst [vmem:[%s6083_s13 + $0x68] sm:$0xff] %v3280_v4  ;;  %3313 = vst [vmem:[%s6083_s13 + $0x70] sm:$0xff] %v3281_v18  ;;  %vm6533_vm10 = vcmp.ge.f32.partialorder %v6146_v1, 0.0  ;;  %vm6534_vm2 = vcmp.ge.f32.partialorder %v6149_v5, 0.0  ;;  %vm6535_vm3 = vcmp.ge.f32.partialorder %v6152_v6, 0.0 }
 0x2fb   : > { %v3285_v35 = vsel %vm6532_vm1, %v6143_v24, %v3253_v37  ;;  %v3286_v36 = vsel %vm6533_vm10, %v6146_v1, %v3254_v16  ;;  %v3287_v38 = vsel %vm6534_vm2, %v6149_v5, %v3255_v56  ;;  %v3288_v13 = vsel %vm6535_vm3, %v6152_v6, %v3256_v34  ;;  %3314 = vst [vmem:[%s6083_s13 + $0x78] sm:$0xff] %v3282_v9 }
 0x2fc   : > { %v3289_v24 = vsel %vm3225_vm8, %v6155_v27, %v3257_v60  ;;  %3315 = vst [vmem:[%s6083_s13 + $0x80] sm:$0xff] %v3283_v28  ;;  %3316 = vst [vmem:[%s6083_s13 + $0x88] sm:$0xff] %v3284_v55  ;;  %v3290_v1 = vsel %vm3226_vm4, %v6158_v25, %v3258_v15  ;;  %vm6536_vm8 = vcmp.ge.f32.partialorder %v6161_v31, 0.0  ;;  %vm6537_vm11 = vcmp.ge.f32.partialorder %v6164_v7, 0.0 }
 0x2fd   : > { %3317 = vst [vmem:[%s6083_s13 + $0x90] sm:$0xff] %v3285_v35  ;;  %v3291_v5 = vsel %vm6536_vm8, %v6161_v31, %v3259_v23  ;;  %v3292_v6 = vsel %vm6537_vm11, %v6164_v7, %v3260_v44  ;;  %vm6538_vm12 = vcmp.ge.f32.partialorder %v6167_v22, 0.0  ;;  %3318 = vst [vmem:[%s6083_s13 + $0x98] sm:$0xff] %v3286_v36  ;;  %v3294_v25 = vsel %vm3230_vm9, %v6170_v20, %v3262_v59 }
 0x2fe   : > { %v3293_v27 = vsel %vm6538_vm12, %v6167_v22, %v3261_v63  ;;  %3319 = vst [vmem:[%s6083_s13 + $0xa0] sm:$0xff] %v3287_v38  ;;  %3320 = vst [vmem:[%s6083_s13 + $0xa8] sm:$0xff] %v3288_v13  ;;  %v3295_v31 = vsel %vm3231_vm7, %v6173_v42, %v3263_v8  ;;  %v3297_v7 = vsel %vm3233_vm6, %v6176_v0, %v3265_v19 }
 0x2ff   : > { %3321 = vst [vmem:[%s6083_s13 + $0xb0] sm:$0xff] %v3289_v24  ;;  %v3298_v22 = vsel %vm3234_vm5, %v6179_v33, %v3266_v30  ;;  %3322 = vst [vmem:[%s6083_s13 + $0xb8] sm:$0xff] %v3290_v1 }
 0x300   : > { %3323 = vst [vmem:[%s6083_s13 + $0xc0] sm:$0xff] %v3291_v5  ;;  %3324 = vst [vmem:[%s6083_s13 + $0xc8] sm:$0xff] %v3292_v6 }
 0x301   : > { %3325 = vst [vmem:[%s6083_s13 + $0xd0] sm:$0xff] %v3293_v27  ;;  %3326 = vst [vmem:[%s6083_s13 + $0xd8] sm:$0xff] %v3294_v25 }
 0x302   : > { %3327 = vst [vmem:[%s6083_s13 + $0xe0] sm:$0xff] %v3295_v31  ;;  %3329 = vst [vmem:[%s6083_s13 + $0xf0] sm:$0xff] %v3297_v7 }
 0x303   : > { %3330 = vst [vmem:[%s6083_s13 + $0xf8] sm:$0xff] %v3298_v22 }
 0x304   : > { %4652 = shalt.err (!%p4649_p7)
}
 0x305   : > { %s4653_s2 = scalar_lea.hbm %s6336_s24, 4096  ;;  %s4657_s28 = scalar_lea.hbm %s6422_s4, 8192 }
 0x306   : > { %p4654_p8 = scmp.ne.s32.totalorder %s6336_s24, %s4653_s2  ;;  %p4658_p12 = scmp.lt.u32.totalorder %s6336_s24, %s6422_s4 }
 0x307   : > { %p4659_p3 = scmp.lt.u32.totalorder %s4657_s28, %s4653_s2  ;;  %p4661_p4 = scmp.lt.u32.totalorder %s4653_s2, %s6336_s24 }
 0x308   : > { %p4655_p13 = pnand %p4654_p8, %p6539_p5 }
 0x309   : > { %p4660_p6 = por %p4659_p3, %p4658_p12 }
 0x30a   : > { %p4656_p11 = pneg %p4655_p13 }
 0x30b   : > { %p4662_p2 = por %p4661_p4, %p4660_p6 }
 0x30d   : > { %p4663_p9 = pnand %p4662_p2, %p4656_p11 }
 0x30f   : > { %4666 = shalt.err (!%p4663_p9)
}
 0x310   : > { %s4724_s7 = smov 128   ;;  %s4725_s11 = smov 8  }
 0x311   : > { %4434 = dma.vmem_to_hbm [thread:$0]  (%p6539_p5), %s6338_s27, 4096, %s6336_s24, %s3332_s20, %s4724_s7, %s4724_s7, %s4725_s11  }
 0x312 PF: > { %s3360_s13 = sand.u32 1, %s4701_s15   ;;  %p6540_p0 = scmp.ne.s32.totalorder %s6472_s12, 0 }
 0x313   : > { %p6541_p1 = scmp.ge.s32.totalorder %s4713_s18, 2  ;;  %s3361_s21 = scalar_lea.sflag [#allocation4], %s3360_s13 }
 0x315   : > { %p4451_p10 = pnand %p6541_p1, %p6540_p0 }
 0x317   : > { %4696 = dma.done.wait (!%p4451_p10), %s3361_s21, 4096  }
 0x318   : > { %4698 = vsyncadd (!%p4451_p10), %s3361_s21, 4294963200  ;;  %p18_p7 = scmp.ge.s32.totalorder %s4772_s19, 4   ;;  %s6542_s15 = smov %s4705_s16 }
 0x319   : > { %s6543_s16 = smov %s4709_s17  ;;  %s6544_s17 = smov %s4783_s22 }
 0x31a   : > { %s6545_s18 = smov %s4772_s19  ;;  %20 = sbr.rel (!%p18_p7) target bundleno = 9 (0x9), region = 115 }
 0x321   :  { %3366 = vsyncpa [#allocation3], 1 }
 0x322   :  { %3368 = vsyncpa [#allocation3 + $0x1], 1 }
 0x323   :  { %3369 = vsyncpa [#allocation6], 1 }
 0x324   :  { %3370 = vsyncpa [#allocation4], 1 }
 0x325   :  { %3372 = vsyncpa [#allocation4 + $0x1], 1 }

// kernel: style_block.3
= control target key start
LH: loop header
LB: loop body
LE: loop exit
PB: predicated region body
PF: predicated region fallthrough
CT: control target
= control target key end

     0   :  { %s6101_s0 = inlined_call_operand.hbm [shape: bf16[2,18,18,8], index: 0, kind: input, shape index: {}]   ;;  %s6102_s1 = inlined_call_operand.hbm [shape: bf16[9,8,128], index: 1, kind: input, shape index: {}]   ;;  %s6103_s2 = inlined_call_operand.hbm [shape: f32[2,1,128], index: 2, kind: input, shape index: {}]   ;;  %s6104_s3 = inlined_call_operand.hbm [shape: f32[2,1,128], index: 3, kind: input, shape index: {}]   ;;  %s6105_s4 = inlined_call_operand.hbm [shape: f32[2,256,128], index: 4, kind: output, shape index: {}]  }
   0x1   :  { %6146 = sst [smem:[#allocation34_spill]] %s6101_s0 }
   0x2   :  { %9 = vsyncpa [#allocation3], 0 }
   0x3   :  { %11 = vsyncpa [#allocation3 + $0x1], 0 }
   0x4   :  { %12 = vsyncpa [#allocation6], 0 }
   0x5   :  { %13 = vsyncpa [#allocation4], 0 }
   0x6   :  { %15 = vsyncpa [#allocation4 + $0x1], 0  ;;  %s4651_s15 = smov 0   ;;  %s4653_s16 = smov 0  }
   0x7   :  { %s4655_s17 = smov 0   ;;  %s4657_s18 = smov 0  }
   0x8 LB: > { %s4672_s19 = sadd.s32 1, %s4615_s18   ;;  %s28_s20 = sadd.s32 1, %s4611_s17  ;;  %s4615_s18 = sphi %s4657_s18, %s6215_s18   ;;  %s4611_s17 = sphi %s4655_s17, %s6214_s17   ;;  %s4607_s16 = sphi %s4653_s16, %s6213_s16   ;;  %s4603_s15 = sphi %s4651_s15, %s6212_s15  }
   0x9   : > { %s25_s21 = ssub.s32 %s4615_s18, %s4672_s19  ;;  %p6106_p0 = scmp.ne.s32.totalorder %s4611_s17, %s4607_s16 }
   0xa   : > { %p26_p1 = scmp.eq.s32.totalorder %s25_s21, 0  ;;  %p36_p2 = scmp.eq.s32.totalorder %s4615_s18, 0 }
   0xb   : > { %p4359_p5 = scmp.lt.s32.totalorder %s4615_s18, 2  ;;  %s177_s23 = sand.u32 1, %s4615_s18  }
   0xc   : > { %s4681_s22 = scalar_select %p26_p1, %s4611_s17, %s28_s20  }
   0xd   : > { %p37_p3 = por %p36_p2, %p6106_p0  ;;  %s4690_s24 = sand.u32 1, %s4611_s17  }
   0xe   : > { %s4325_s25 = smul.u32 216, %s4690_s24  ;;  %s6148_s0 = sld [smem:[#allocation34_spill]] }
   0xf   : > { %p4693_p6 = pnand %p4359_p5, %p37_p3  ;;  %s4326_s27 = smul.u32 3456, %s4615_s18 }
  0x10   : > { %s181_s5 = scalar_lea.vmem [#allocation2], %s4325_s25  ;;  %s3371_s7 = sshll.u32 %s4615_s18, 4 }
  0x11   : > { %s6147_s26 = scalar_select %p4693_p6, 1, 0 }
  0x12   : > { %s188_s6 = sshll.u32 %s181_s5, 4  ;;  %s4706_s8 = scalar_lea.sflag [#allocation3], %s177_s23  ;;  %s4703_s6 = int_to_ptr.vmem [resolvable:$true] %s188_s6 }
  0x13   : > { %p4712_p8 = pneg %p4693_p6 }
  0x14   : > { %s4701_s30 = scalar_lea.hbm %s6148_s0, %s4326_s27  ;;  %s4428_s13 = scalar_lea.hbm %s6148_s0, 6912 }
  0x15   : > { %s4423_s9 = scalar_lea.hbm %s4701_s30, 3456  ;;  %p4429_p11 = scmp.lt.u32.totalorder %s4701_s30, %s6148_s0 }
  0x16   : > { %p4424_p7 = scmp.ne.s32.totalorder %s4701_s30, %s4423_s9  ;;  %p4430_p12 = scmp.lt.u32.totalorder %s4428_s13, %s4423_s9 }
  0x17   : > { %p4432_p1 = scmp.lt.u32.totalorder %s4423_s9, %s4701_s30 }
  0x18   : > { %p4426_p9 = pnand %p4712_p8, %p4424_p7  ;;  %p4431_p13 = por %p4430_p12, %p4429_p11 }
  0x1a   : > { %p4427_p10 = pneg %p4426_p9  ;;  %p4433_p2 = por %p4432_p1, %p4431_p13 }
  0x1c   : > { %p4434_p3 = pnand %p4433_p2, %p4427_p10 }
  0x1e   : > { %4437 = shalt.err (!%p4434_p3)
}
  0x1f   : > { %s4438_s21 = scalar_lea.vmem %s4703_s6, 3456  ;;  %s4617_s23 = smov [#allocation2]  }
  0x20   : > { %p4439_p5 = scmp.ne.s32.totalorder %s4703_s6, %s4438_s21  ;;  %s4443_s25 = sshll.u32 %s4617_s23, 4  ;;  %s4444_s25 = int_to_ptr.vmem [resolvable:$false] %s4443_s25 }
  0x21   : > { %s4445_s27 = scalar_lea.vmem %s4444_s25, 6912  ;;  %p4446_p4 = scmp.lt.s32.totalorder %s4703_s6, %s4444_s25 }
  0x22   : > { %p4441_p7 = pnand %p4439_p5, %p4712_p8  ;;  %p4447_p0 = scmp.lt.s32.totalorder %s4445_s27, %s4438_s21 }
  0x24   : > { %p4442_p9 = pneg %p4441_p7  ;;  %p4448_p11 = por %p4447_p0, %p4446_p4 }
  0x26   : > { %p4449_p12 = pnand %p4448_p11, %p4442_p9 }
  0x28   : > { %4452 = shalt.err (!%p4449_p12)
}
  0x29   : > { %s6109_s28 = smov 64   ;;  %s6110_s29 = smov 4  }
  0x2a   : > { %4347 = dma.hbm_to_vmem [thread:$0]  (!%p4693_p6), %s4701_s30, 3456, %s4703_s6, %s4706_s8, %s6109_s28, %s6109_s28, %s6110_s29  }
  0x2b   : > { %s4744_s11 = scalar_lea.hbm %s6103_s2, %s3371_s7  ;;  %s201_s12 = scalar_lea.vmem [#allocation7], %s4690_s24 }
  0x2c   : > { %s208_s13 = sshll.u32 %s201_s12, 4  ;;  %s4453_s14 = scalar_lea.hbm %s4744_s11, 16  ;;  %s209_s13 = int_to_ptr.vmem [resolvable:$true] %s208_s13 }
  0x2d   : > { %p4454_p0 = scmp.ne.s32.totalorder %s4744_s11, %s4453_s14  ;;  %s4458_s6 = scalar_lea.hbm %s6103_s2, 32 }
  0x2e   : > { %p4459_p13 = scmp.lt.u32.totalorder %s4744_s11, %s6103_s2  ;;  %p4460_p1 = scmp.lt.u32.totalorder %s4458_s6, %s4453_s14 }
  0x2f   : > { %p4456_p4 = pnand %p4454_p0, %p4712_p8  ;;  %p4462_p3 = scmp.lt.u32.totalorder %s4453_s14, %s4744_s11 }
  0x30   : > { %p4461_p2 = por %p4460_p1, %p4459_p13 }
  0x31   : > { %p4457_p10 = pneg %p4456_p4 }
  0x32   : > { %p4463_p5 = por %p4462_p3, %p4461_p2 }
  0x34   : > { %p4464_p7 = pnand %p4463_p5, %p4457_p10 }
  0x36   : > { %4467 = shalt.err (!%p4464_p7)
}
  0x37   : > { %s4468_s25 = scalar_lea.vmem %s209_s13, 16  ;;  %s4620_s27 = smov [#allocation7]  }
  0x38   : > { %p4469_p9 = scmp.ne.s32.totalorder %s209_s13, %s4468_s25  ;;  %s4473_s5 = sshll.u32 %s4620_s27, 4  ;;  %s4474_s5 = int_to_ptr.vmem [resolvable:$false] %s4473_s5 }
  0x39   : > { %s4475_s9 = scalar_lea.vmem %s4474_s5, 32  ;;  %p4476_p0 = scmp.lt.s32.totalorder %s209_s13, %s4474_s5 }
  0x3a   : > { %p4471_p11 = pnand %p4469_p9, %p4712_p8  ;;  %p4477_p4 = scmp.lt.s32.totalorder %s4475_s9, %s4468_s25 }
  0x3c   : > { %p4472_p12 = pneg %p4471_p11  ;;  %p4478_p6 = por %p4477_p4, %p4476_p0 }
  0x3e   : > { %p4479_p1 = pnand %p4478_p6, %p4472_p12 }
  0x40   : > { %4482 = shalt.err (!%p4479_p1)
}
  0x41   : > { %p6150_p13 = scmp.ne.s32.totalorder %s6147_s26, 0  ;;  %s4766_s12 = sadd.s32 4294967295, %s4615_s18  }
  0x42   : > { %s3366_s14 = sadd.s32 4294967294, %s4615_s18   ;;  %p41_p6 = scmp.ne.s32.totalorder %s4607_s16, %s4603_s15 }
  0x43   : > { %4350 = dma.hbm_to_vmem [thread:$0]  (!%p6150_p13), %s4744_s11, 16, %s209_s13, %s4706_s8  }
  0x44   : > { %p6111_p10 = scmp.eq.s32.totalorder %s4766_s12, 0  ;;  %p138_p2 = scmp.eq.s32.totalorder %s4766_s12, 1 }
  0x45   : > { %p144_p3 = scmp.eq.s32.totalorder %s3366_s14, 1  ;;  %p3367_p5 = scmp.ge.s32.totalorder %s4615_s18, 1 }
  0x46   : > { %p4776_p7 = por %p6111_p10, %p41_p6  ;;  %p6152_p9 = scmp.ne.s32.totalorder %s4611_s17, %s4607_s16 }
  0x47   : > { %p4787_p12 = por %p144_p3, %p41_p6  ;;  %p151_p0 = scmp.lt.s32.totalorder %s4615_s18, 3 }
  0x48   : > { %s6151_s20 = scalar_select %p4776_p7, 1, 0 }
  0x49   : > { %p4783_p11 = por %p138_p2, %p6152_p9  ;;  %p4792_p4 = pnand %p3367_p5, %p151_p0 }
  0x4a   : > { %s6154_s13 = scalar_select %p4787_p12, 1, 0 }
  0x4b   : > { %s6153_s11 = scalar_select %p4783_p11, 1, 0 }
  0x4c   : > { %s6155_s30 = scalar_select %p4792_p4, 1, 0 }
  0x4d   : > { %s4621_s6 = smov [#allocation5]   ;;  %p4340_p1 = pneg %p4792_p4 }
  0x4e   : > { %s163_s21 = sshll.u32 %s4621_s6, 4  ;;  %s4803_s27 = scalar_lea.hbm %s6104_s3, %s3371_s7  ;;  %s4805_s21 = int_to_ptr.vmem [resolvable:$true] %s163_s21 }
  0x4f   : > { %s218_s5 = scalar_lea.vmem [#allocation8], %s4690_s24  ;;  %p4810_p6 = pnand %p4340_p1, %p6111_p10 }
  0x50   : > { %s225_s9 = sshll.u32 %s218_s5, 4  ;;  %s4483_s6 = scalar_lea.hbm %s4803_s27, 16  ;;  %s226_s9 = int_to_ptr.vmem [resolvable:$true] %s225_s9 }
  0x51   : > { %s6156_s14 = scalar_select %p4810_p6, 1, 0 }
  0x52   : > { %p4484_p2 = scmp.ne.s32.totalorder %s4803_s27, %s4483_s6  ;;  %s4488_s25 = scalar_lea.hbm %s6104_s3, 32 }
  0x53   : > { %p4489_p9 = scmp.lt.u32.totalorder %s4803_s27, %s6104_s3  ;;  %p4490_p0 = scmp.lt.u32.totalorder %s4488_s25, %s4483_s6 }
  0x54   : > { %p4486_p3 = pnand %p4484_p2, %p4712_p8  ;;  %p4492_p1 = scmp.lt.u32.totalorder %s4483_s6, %s4803_s27 }
  0x55   : > { %p4491_p12 = por %p4490_p0, %p4489_p9 }
  0x56   : > { %p4487_p5 = pneg %p4486_p3 }
  0x57   : > { %p4493_p10 = por %p4492_p1, %p4491_p12 }
  0x59   : > { %p4494_p11 = pnand %p4493_p10, %p4487_p5 }
  0x5b   : > { %4497 = shalt.err (!%p4494_p11)
}
  0x5c   : > { %s4498_s24 = scalar_lea.vmem %s226_s9, 16  ;;  %s4622_s5 = smov [#allocation8]  }
  0x5d   : > { %p4499_p7 = scmp.ne.s32.totalorder %s226_s9, %s4498_s24  ;;  %s4503_s0 = sshll.u32 %s4622_s5, 4  ;;  %s4504_s0 = int_to_ptr.vmem [resolvable:$false] %s4503_s0 }
  0x5e   : > { %s4505_s7 = scalar_lea.vmem %s4504_s0, 32  ;;  %p4506_p4 = scmp.lt.s32.totalorder %s226_s9, %s4504_s0 }
  0x5f   : > { %p4501_p2 = pnand %p4499_p7, %p4712_p8  ;;  %p4507_p6 = scmp.lt.s32.totalorder %s4505_s7, %s4498_s24 }
  0x61   : > { %p4502_p3 = pneg %p4501_p2  ;;  %p4508_p13 = por %p4507_p6, %p4506_p4 }
  0x63   : > { %p4509_p0 = pnand %p4508_p13, %p4502_p3 }
  0x65   : > { %4512 = shalt.err (!%p4509_p0)
}
  0x66   : > { %p6157_p9 = scmp.ne.s32.totalorder %s6147_s26, 0  ;;  %s4513_s10 = scalar_lea.hbm %s6102_s1, 576 }
  0x67   : > { %p4514_p8 = scmp.ne.s32.totalorder %s6102_s1, %s4513_s10  ;;  %p6158_p10 = scmp.ne.s32.totalorder %s6156_s14, 0 }
  0x68   : > { %4353 = dma.hbm_to_vmem [thread:$0]  (!%p6157_p9), %s4803_s27, 16, %s226_s9, %s4706_s8  }
  0x69   : > { %p4515_p7 = pneg %p6158_p10  ;;  %p4520_p13 = scmp.lt.u32.totalorder %s4513_s10, %s6102_s1 }
  0x6b   : > { %p4516_p11 = pnand %p4515_p7, %p4514_p8 }
  0x6d   : > { %p4517_p12 = pneg %p4516_p11 }
  0x6f   : > { %p4522_p4 = pnand %p4520_p13, %p4517_p12 }
  0x71   : > { %4525 = shalt.err (!%p4522_p4)
}
  0x72   : > { %s4526_s26 = scalar_lea.vmem %s4805_s21, 576  ;;  %p4534_p2 = scmp.lt.s32.totalorder %s4805_s21, %s4805_s21 }
  0x73   : > { %p4527_p6 = scmp.ne.s32.totalorder %s4805_s21, %s4526_s26  ;;  %p4535_p3 = scmp.lt.s32.totalorder %s4526_s26, %s4526_s26 }
  0x75   : > { %p4529_p5 = pnand %p4527_p6, %p4515_p7  ;;  %p4536_p0 = por %p4535_p3, %p4534_p2 }
  0x77   : > { %p4530_p1 = pneg %p4529_p5 }
  0x79   : > { %p4537_p9 = pnand %p4536_p0, %p4530_p1 }
  0x7b   : > { %4540 = shalt.err (!%p4537_p9)
}
  0x7c   : > { %s6159_s8 = smov 4   ;;  %s6160_s27 = smov 64  }
  0x7d   : > { %4343 = dma.hbm_to_vmem [thread:$0]  (!%p6158_p10), %s6102_s1, 576, %s4805_s21, [#allocation6], %s6160_s27, %s6160_s27, %s6159_s8  }
  0x7e   : > { %p6161_p8 = scmp.ne.s32.totalorder %s6155_s30, 0 }
  0x80   : > { %234 = sbr.rel (%p6161_p8) target bundleno = 762 (0x2fa), region = 36 }
  0x87   : > { %s236_s5 = sand.u32 1, %s4766_s12   ;;  %s4860_s7 = sand.u32 1, %s4607_s16  }
  0x88   : > { %s4327_s28 = smul.u32 216, %s4860_s7  ;;  %s237_s14 = scalar_lea.sflag [#allocation3], %s236_s5 }
  0x89   : > { %p6162_p7 = scmp.ne.s32.totalorder %s6151_s20, 0 }
  0x8a   : > { %s4863_s29 = scalar_lea.vmem [#allocation2], %s4327_s28 }
  0x8b   : > { %4586 = dma.done.wait (%p6162_p7), %s237_s14, 3456  }
  0x8c   : > { %4588 = vsyncadd (%p6162_p7), %s237_s14, 4294963840  ;;  %p6163_p10 = scmp.eq.s32.totalorder %s4766_s12, 0 }
  0x8e   : > { %4590 = dma.done.wait (%p6163_p10), [#allocation6], 576   ;;  %p6164_p11 = pmov %p6163_p10 }
  0x8f   : > { %s252_s30 = scalar_lea.vmem [#allocation7], %s4860_s7 }
  0x90   : > { %4592 = vsyncadd (%p6164_p11), [#allocation6], 4294966720 }
  0x91   : > { %4594 = dma.done.wait (%p6162_p7), %s237_s14, 32  }
  0x92   : > { %4596 = vsyncadd (%p6162_p7), %s237_s14, 4294967264  ;;  %vm835_vm0 = vcmask 1043456   ;;  %vm349_vm1 = vsmask.f32 3328  ;;  %vm350_vm2 = vsmask.f32 7440 }
  0x93   : > { %v737_v0 = vld [vmem:[#allocation5 + $0x4] sm:$0xf]  ;;  %v1948_v1 = vld [vmem:[#allocation5 + $0x10] sm:$0xf]  ;;  %v4888_v5 = vld [vmem:[%s4863_s29 + $0x4] sm:$0xf] }
  0x94   : > { %v4879_v2 = vld [vmem:[%s4863_s29] sm:$0xf]  ;;  %4315 = vmatprep.subr.msk.bf16.mxu1 %vm835_vm0, %v737_v0  ;;  %4319 = vmatprep.subr.msk.bf16.mxu0 %vm835_vm0, %v1948_v1  ;;  %v837_v3 = vsel %vm835_vm0, %v737_v0, 0  ;;  %v4885_v4 = vsel %vm835_vm0, %v1948_v1, 0  ;;  %v296_v6 = vld [vmem:[%s4863_s29 + $0x8] sm:$0x1]  ;;  %vm4917_vm4 = vmor %vm349_vm1, %vm350_vm2 }
  0x95   : > { %6165 = vst [vmem:[#allocation14_spill] sm:$0xff] %v4885_v4  ;;  %3752 = vmatpush3.bf16.msra.mxu1 %v837_v3  ;;  %3888 = vmatpush3.bf16.msra.mxu0 %v4885_v4  ;;  %v353_v7 = vshrl.u32 %v4879_v2, 16  ;;  %v356_v8 = vshll.u32 %v4879_v2, 16  ;;  %v362_v9 = vshll.u32 %v4888_v5, 16  ;;  %v366_v10 = vshrl.u32 %v4888_v5, 16  ;;  %s260_s20 = scalar_lea.vmem [#allocation8], %s4860_s7 }
  0x96   : > { %v348_v11 = vld [vmem:[#allocation5] sm:$0xf]  ;;  %v372_v12 = vshll.u32 %v296_v6, 16  ;;  %vm786_vm3 = vcmask 64512   ;;  %v4898_v13 = vld [vmem:[%s4863_s29 + $0xc] sm:$0xf] }
  0x97   : > { %4316 = vmatprep.subr.msk.bf16.mxu1 %vm835_vm0, %v348_v11  ;;  %v4901_v14 = vld [vmem:[%s4863_s29 + $0x10] sm:$0xf]  ;;  %v355_v15 = vrot.slane %v353_v7, 4  ;;  %v358_v16 = vrot.slane %v356_v8, 5  ;;  %v364_v17 = vrot.slane %v362_v9, 5  ;;  %v368_v18 = vrot.slane %v366_v10, 4 }
  0x98   : > { %v4904_v19 = vld [vmem:[%s4863_s29 + $0x14] sm:$0x1]  ;;  %v374_v20 = vrot.slane %v372_v12, 5  ;;  %v377_v21 = vshrl.u32 %v4898_v13, 16  ;;  %v380_v22 = vshll.u32 %v4898_v13, 16  ;;  %v386_v23 = vshll.u32 %v4901_v14, 16 }
  0x99   : > { %v2160_v24 = vld [vmem:[#allocation5 + $0x14] sm:$0xf]  ;;  %v359_v25 = vor.u32 %v358_v16, %v355_v15  ;;  %v369_v26 = vor.u32 %v368_v18, %v364_v17  ;;  %v390_v27 = vshrl.u32 %v4901_v14, 16  ;;  %v396_v28 = vshll.u32 %v4904_v19, 16  ;;  %v4913_v29 = vld [vmem:[%s4863_s29 + $0x18] sm:$0xf] }
  0x9a   : > { %4321 = vmatprep.subr.msk.bf16.mxu0 %vm835_vm0, %v2160_v24  ;;  %v379_v31 = vrot.slane %v377_v21, 4  ;;  %v382_v32 = vrot.slane %v380_v22, 5  ;;  %v388_v33 = vrot.slane %v386_v23, 5  ;;  %v4923_v34 = vcombine.low %v4898_v13, %v4901_v14  ;;  %v4926_v39 = vld [vmem:[%s4863_s29 + $0x1c] sm:$0xf]  ;;  %s3375_s21 = sshll.u32 %s4860_s7, 8 }
  0x9b   : > { %v360_v35 = vrot.slane %v359_v25, 4  ;;  %v370_v36 = vrot.slane %v369_v26, 4  ;;  %v392_v37 = vrot.slane %v390_v27, 4  ;;  %v398_v38 = vrot.slane %v396_v28, 5  ;;  %v4931_v43 = vld [vmem:[%s4863_s29 + $0x20] sm:$0x1] }
  0x9c   : > { %v383_v40 = vor.u32 %v382_v32, %v379_v31  ;;  %v1323_v41 = vrot.slane %v4904_v19, 5  ;;  %v1129_v42 = vsel %vm835_vm0, %v348_v11, 0  ;;  %v401_v44 = vshrl.u32 %v4913_v29, 16  ;;  %v4943_v57 = vld [vmem:[%s4863_s29 + $0x24] sm:$0xf]  ;;  %s5974_s10 = scalar_lea.vmem [#allocation9], %s3375_s21 }
  0x9d   : > { %v365_v45 = vsel %vm4917_vm4, %v360_v35, %v364_v17  ;;  %v375_v46 = vsel %vm4917_vm4, %v370_v36, %v374_v20  ;;  %v393_v47 = vor.u32 %v392_v37, %v388_v33  ;;  %v404_v48 = vshll.u32 %v4913_v29, 16  ;;  %v4951_v62 = vld [vmem:[%s4863_s29 + $0x28] sm:$0xf]  ;;  %v4956_v6 = vld [vmem:[%s4863_s29 + $0x2c] sm:$0x1]  ;;  %s3597_s6 = sshll.u32 %s4766_s12, 12 }
  0x9e   : > { %v3376_v49 = vcombine.low %v365_v45, %v375_v46  ;;  %v384_v50 = vrot.slane %v383_v40, 4  ;;  %v403_v51 = vrot.slane %v401_v44, 4  ;;  %v410_v52 = vshll.u32 %v4926_v39, 16  ;;  %v4959_v7 = vld [vmem:[%s4863_s29 + $0x30] sm:$0xf]  ;;  %s3249_s23 = sshll.u32 %s5974_s10, 4  ;;  %s6043_s25 = scalar_lea.hbm %s6105_s4, %s3597_s6  ;;  %s6045_s23 = int_to_ptr.vmem [resolvable:$true] %s3249_s23 }
  0x9f   : > { %v394_v53 = vrot.slane %v393_v47, 4  ;;  %v406_v54 = vrot.slane %v404_v48, 5  ;;  %v414_v55 = vshrl.u32 %v4926_v39, 16  ;;  %v420_v56 = vshll.u32 %v4931_v43, 16  ;;  %v4970_v22 = vld [vmem:[%s4863_s29 + $0x34] sm:$0xf] }
  0xa0   : > { %3753 = vmatprep.mubr.msk.bf16.mxu1 %vm786_vm3, %v3376_v49  ;;  %v389_v58 = vsel %vm4917_vm4, %v384_v50, %v388_v33  ;;  %v412_v59 = vrot.slane %v410_v52, 5  ;;  %v1327_v60 = vrot.slane %v4926_v39, 5  ;;  %v1330_v61 = vrot.slane %v4931_v43, 5  ;;  %v4976_v28 = vld [vmem:[%s4863_s29 + $0x38] sm:$0x1]  ;;  %s3236_s26 = scalar_lea.sflag [#allocation4], %s4860_s7 }
  0xa1   : > { %v399_v63 = vsel %vm4917_vm4, %v394_v53, %v398_v38  ;;  %v407_v0 = vor.u32 %v406_v54, %v403_v51  ;;  %v416_v1 = vrot.slane %v414_v55, 4  ;;  %v422_v3 = vrot.slane %v420_v56, 5  ;;  %v4980_v36 = vld [vmem:[%s4863_s29 + $0x3c] sm:$0xf]  ;;  %v4990_v48 = vld [vmem:[%s4863_s29 + $0x40] sm:$0xf] }
  0xa2   : > { %v3377_v8 = vcombine.low %v389_v58, %v399_v63  ;;  %v2168_v9 = vsel %vm835_vm0, %v2160_v24, 0  ;;  %v425_v10 = vshrl.u32 %v4943_v57, 16  ;;  %v428_v11 = vshll.u32 %v4943_v57, 16  ;;  %v4993_v52 = vld [vmem:[%s4863_s29 + $0x44] sm:$0x1]  ;;  %s4541_s8 = scalar_lea.vmem %s6045_s23, 4096 }
  0xa3   : > { %v408_v12 = vrot.slane %v407_v0, 4  ;;  %v417_v15 = vor.u32 %v416_v1, %v412_v59  ;;  %v434_v16 = vshll.u32 %v4951_v62, 16  ;;  %v438_v17 = vshrl.u32 %v4951_v62, 16  ;;  %v5006_v63 = vld [vmem:[#allocation5 + $0x18] sm:$0xf]  ;;  %p4542_p12 = scmp.ne.s32.totalorder %s6045_s23, %s4541_s8  ;;  %p6209_p13 = scmp.ne.s32.totalorder %s6153_s11, 0 }
  0xa4   : > { %3889 = vmatprep.mubr.msk.bf16.mxu0 %vm786_vm3, %v3377_v8  ;;  %3754 = vmatmul.mubr.msk.bf16.vlgmr.msra.gmra.mrb[0].mxu1 %vm786_vm3, %v3377_v8  ;;  %v427_v18 = vrot.slane %v425_v10, 4  ;;  %v430_v20 = vrot.slane %v428_v11, 5  ;;  %v444_v21 = vshll.u32 %v4956_v6, 16  ;;  %v449_v23 = vshrl.u32 %v4959_v7, 16  ;;  %s4623_s27 = smov [#allocation9]  }
  0xa5   : > { %3786 = vmatpush3.bf16.msra.mxu1 %v1129_v42  ;;  %v413_v24 = vsel %vm4917_vm4, %v408_v12, %v412_v59  ;;  %v418_v25 = vrot.slane %v417_v15, 4  ;;  %v436_v26 = vrot.slane %v434_v16, 5  ;;  %v440_v27 = vrot.slane %v438_v17, 4  ;;  %v5004_v59 = vld [vmem:[%s4863_s29 + $0x48] sm:$0xf]  ;;  %p4543_p4 = pnand %p4542_p12, %p6209_p13  ;;  %s4545_s9 = sshll.u32 %s4623_s27, 4  ;;  %s4546_s9 = int_to_ptr.vmem [resolvable:$false] %s4545_s9 }
  0xa6   : > { %v431_v31 = vor.u32 %v430_v20, %v427_v18  ;;  %v446_v32 = vrot.slane %v444_v21, 5  ;;  %v451_v33 = vrot.slane %v449_v23, 4  ;;  %v452_v35 = vshll.u32 %v4959_v7, 16  ;;  %v5015_v16 = vld [vmem:[%s4863_s29 + $0x4c] sm:$0xf]  ;;  %s4547_s24 = scalar_lea.vmem %s4546_s9, 8192  ;;  %p4548_p5 = scmp.lt.s32.totalorder %s6045_s23, %s4546_s9 }
  0xa7   : > { %v423_v37 = vsel %vm4917_vm4, %v418_v25, %v422_v3  ;;  %v441_v38 = vor.u32 %v440_v27, %v436_v26  ;;  %v458_v40 = vshll.u32 %v4970_v22, 16  ;;  %v462_v42 = vshrl.u32 %v4970_v22, 16  ;;  %v5028_v25 = vld [vmem:[%s4863_s29 + $0x50] sm:$0x1]  ;;  %v5032_v27 = vld [vmem:[%s4863_s29 + $0x54] sm:$0xf]  ;;  %p4544_p6 = pneg %p4543_p4  ;;  %p4549_p1 = scmp.lt.s32.totalorder %s4547_s24, %s4541_s8 }
  0xa8   : > { %v4986_v44 = vcombine.low %v413_v24, %v423_v37  ;;  %v432_v45 = vrot.slane %v431_v31, 4  ;;  %v454_v46 = vrot.slane %v452_v35, 5  ;;  %v468_v47 = vshll.u32 %v4976_v28, 16 }
  0xa9   : > { %v442_v49 = vrot.slane %v441_v38, 4  ;;  %v460_v50 = vrot.slane %v458_v40, 5  ;;  %v464_v51 = vrot.slane %v462_v42, 4  ;;  %v473_v53 = vshrl.u32 %v4980_v36, 16  ;;  %p4550_p2 = por %p4549_p1, %p4548_p5 }
  0xaa   : > { %6168 = vst [vmem:[#allocation15_spill] sm:$0xff] %v4986_v44  ;;  %3890 = vmatmul.mubr.msk.bf16.vlgmr.msra.gmra.mrb[0].mxu0 %vm786_vm3, %v4986_v44  ;;  %3757 = vmatprep.mubr.msk.bf16.mxu1 %vm786_vm3, %v4986_v44  ;;  %v437_v54 = vsel %vm4917_vm4, %v432_v45, %v436_v26  ;;  %v455_v55 = vor.u32 %v454_v46, %v451_v33  ;;  %v470_v56 = vrot.slane %v468_v47, 5  ;;  %v476_v58 = vshll.u32 %v4980_v36, 16  ;;  %v5040_v45 = vld [vmem:[%s4863_s29 + $0x58] sm:$0xf] }
  0xab   : > { %3922 = vmatpush3.bf16.msra.mxu0 %v2168_v9  ;;  %v447_v0 = vsel %vm4917_vm4, %v442_v49, %v446_v32  ;;  %v465_v1 = vor.u32 %v464_v51, %v460_v50  ;;  %v475_v3 = vrot.slane %v473_v53, 4  ;;  %v482_v8 = vshll.u32 %v4990_v48, 16  ;;  %p4551_p3 = pnand %p4550_p2, %p4544_p6 }
  0xac   : > { %v5011_v10 = vcombine.low %v437_v54, %v447_v0  ;;  %v456_v11 = vrot.slane %v455_v55, 4  ;;  %v478_v12 = vrot.slane %v476_v58, 5  ;;  %v486_v15 = vshrl.u32 %v4990_v48, 16  ;;  %4322 = vmatprep.subr.msk.bf16.mxu0 %vm835_vm0, %v5006_v63  ;;  %v5052_v55 = vld [vmem:[%s4863_s29 + $0x5c] sm:$0x1] }
  0xad   : > { %v466_v9 = vrot.slane %v465_v1, 4  ;;  %v484_v17 = vrot.slane %v482_v8, 5  ;;  %v492_v18 = vshll.u32 %v4993_v52, 16  ;;  %v497_v20 = vshrl.u32 %v5004_v59, 16  ;;  %v5057_v8 = vld [vmem:[%s4863_s29 + $0x60] sm:$0xf] }
  0xae   : > { %6169 = vst [vmem:[#allocation16_spill] sm:$0xff] %v5011_v10  ;;  %3893 = vmatprep.mubr.msk.bf16.mxu0 %vm786_vm3, %v5011_v10  ;;  %3758 = vmatmul.mubr.msk.bf16.gmra.mrb[4].mxu1 %vm786_vm3, %v5011_v10  ;;  %v461_v21 = vsel %vm4917_vm4, %v456_v11, %v460_v50  ;;  %v479_v23 = vor.u32 %v478_v12, %v475_v3  ;;  %v488_v24 = vrot.slane %v486_v15, 4  ;;  %v500_v26 = vshll.u32 %v5004_v59, 16 }
  0xaf   : > { %v471_v31 = vsel %vm4917_vm4, %v466_v9, %v470_v56  ;;  %v494_v32 = vrot.slane %v492_v18, 5  ;;  %v499_v33 = vrot.slane %v497_v20, 4  ;;  %v506_v35 = vshll.u32 %v5015_v16, 16 }
  0xb0   : > { %vm1308_vm5 = vcmask 1042432   ;;  %vm1309_vm6 = vcmask 1046532   ;;  %v5037_v37 = vcombine.low %v461_v21, %v471_v31  ;;  %v480_v38 = vrot.slane %v479_v23, 4 }
  0xb1   : > { %v489_v40 = vor.u32 %v488_v24, %v484_v17  ;;  %v502_v42 = vrot.slane %v500_v26, 5  ;;  %v508_v46 = vrot.slane %v506_v35, 5  ;;  %v510_v47 = vshrl.u32 %v5015_v16, 16  ;;  %vm5095_vm7 = vmor %vm1308_vm5, %vm1309_vm6 }
  0xb2   : > { %6170 = vst [vmem:[#allocation17_spill] sm:$0xff] %v5037_v37  ;;  %v516_v49 = vshll.u32 %v5028_v25, 16  ;;  %v521_v50 = vshrl.u32 %v5032_v27, 16  ;;  %3894 = vmatmul.mubr.msk.bf16.gmra.mrb[4].mxu0 %vm786_vm3, %v5037_v37  ;;  %3761 = vmatprep.mubr.msk.bf16.mxu1 %vm786_vm3, %v5037_v37  ;;  %v485_v51 = vsel %vm4917_vm4, %v480_v38, %v484_v17  ;;  %v524_v56 = vshll.u32 %v5032_v27, 16  ;;  %v5063_v17 = vld [vmem:[%s4863_s29 + $0x64] sm:$0xf] }
  0xb3   : > { %v490_v53 = vrot.slane %v489_v40, 4  ;;  %v503_v54 = vor.u32 %v502_v42, %v499_v33  ;;  %v512_v58 = vrot.slane %v510_v47, 4  ;;  %v530_v3 = vshll.u32 %v5040_v45, 16  ;;  %v5071_v33 = vld [vmem:[%s4863_s29 + $0x68] sm:$0x1] }
  0xb4   : > { %v518_v0 = vrot.slane %v516_v49, 5  ;;  %v523_v1 = vrot.slane %v521_v50, 4  ;;  %v526_v15 = vrot.slane %v524_v56, 5  ;;  %v534_v9 = vshrl.u32 %v5040_v45, 16 }
  0xb5   : > { %v495_v11 = vsel %vm4917_vm4, %v490_v53, %v494_v32  ;;  %v504_v12 = vrot.slane %v503_v54, 4  ;;  %v513_v20 = vor.u32 %v512_v58, %v508_v46  ;;  %v532_v21 = vrot.slane %v530_v3, 5 }
  0xb6   : > { %v5065_v18 = vcombine.low %v485_v51, %v495_v11  ;;  %v540_v23 = vshll.u32 %v5052_v55, 16  ;;  %v527_v26 = vor.u32 %v526_v15, %v523_v1  ;;  %v536_v31 = vrot.slane %v534_v9, 4  ;;  %v5082_v51 = vld [vmem:[%s4863_s29 + $0x6c] sm:$0xf]  ;;  %v5087_v1 = vld [vmem:[#allocation5 + $0x8] sm:$0xf] }
  0xb7   : > { %v509_v24 = vsel %vm4917_vm4, %v504_v12, %v508_v46  ;;  %v545_v32 = vshrl.u32 %v5057_v8, 16  ;;  %v514_v35 = vrot.slane %v513_v20, 4  ;;  %v548_v40 = vshll.u32 %v5057_v8, 16  ;;  %4317 = vmatprep.subr.msk.bf16.mxu1 %vm835_vm0, %v5087_v1 }
  0xb8   : > { %6171 = vst [vmem:[#allocation18_spill] sm:$0xff] %v5065_v18  ;;  %3897 = vmatprep.mubr.msk.bf16.mxu0 %vm786_vm3, %v5065_v18  ;;  %3762 = vmatmul.mubr.msk.bf16.gmra.mrb[8].mxu1 %vm786_vm3, %v5065_v18  ;;  %v542_v38 = vrot.slane %v540_v23, 5  ;;  %v554_v42 = vshll.u32 %v5063_v17, 16  ;;  %v528_v47 = vrot.slane %v527_v26, 4  ;;  %v537_v46 = vor.u32 %v536_v31, %v532_v21  ;;  %v5104_v26 = vld [vmem:[%s4863_s29 + $0x70] sm:$0xf] }
  0xb9   : > { %v547_v49 = vrot.slane %v545_v32, 4  ;;  %v558_v50 = vshrl.u32 %v5063_v17, 16  ;;  %v519_v53 = vsel %vm4917_vm4, %v514_v35, %v518_v0  ;;  %v550_v54 = vrot.slane %v548_v40, 5  ;;  %v5113_v32 = vld [vmem:[%s4863_s29 + $0x74] sm:$0x1] }
  0xba   : > { %v556_v56 = vrot.slane %v554_v42, 5  ;;  %v564_v58 = vshll.u32 %v5071_v33, 16  ;;  %v5089_v3 = vcombine.low %v509_v24, %v519_v53  ;;  %v533_v11 = vsel %vm4917_vm4, %v528_v47, %v532_v21 }
  0xbb   : > { %v538_v12 = vrot.slane %v537_v46, 4  ;;  %v560_v15 = vrot.slane %v558_v50, 4  ;;  %v551_v0 = vor.u32 %v550_v54, %v547_v49  ;;  %v3441_v23 = vrot.slane %v4898_v13, 9 }
  0xbc   : > { %6172 = vst [vmem:[#allocation19_spill] sm:$0xff] %v5089_v3  ;;  %v566_v20 = vrot.slane %v564_v58, 5  ;;  %v1320_v24 = vrot.slane %v4901_v14, 5  ;;  %3898 = vmatmul.mubr.msk.bf16.gmra.mrb[8].mxu0 %vm786_vm3, %v5089_v3  ;;  %3765 = vmatprep.mubr.msk.bf16.mxu1 %vm786_vm3, %v5089_v3  ;;  %v569_v35 = vshrl.u32 %v5082_v51, 16  ;;  %v572_v13 = vshll.u32 %v5082_v51, 16 }
  0xbd   : > { %v543_v21 = vsel %vm4917_vm4, %v538_v12, %v542_v38  ;;  %v561_v31 = vor.u32 %v560_v15, %v556_v56  ;;  %v552_v40 = vrot.slane %v551_v0, 4  ;;  %v578_v38 = vshll.u32 %v5104_v26, 16  ;;  %v5135_v12 = vld [vmem:[%s4863_s29 + $0x78] sm:$0xf] }
  0xbe   : > { %v5117_v14 = vcombine.low %v533_v11, %v543_v21  ;;  %v1321_v42 = vsel %vm5095_vm7, %v3441_v23, %v1320_v24  ;;  %v1322_v47 = vrot.slane %v1320_v24, 4  ;;  %v571_v49 = vrot.slane %v569_v35, 4 }
  0xbf   : > { %v562_v46 = vrot.slane %v561_v31, 4  ;;  %v574_v50 = vrot.slane %v572_v13, 5  ;;  %v557_v53 = vsel %vm4917_vm4, %v552_v40, %v556_v56  ;;  %v582_v58 = vshrl.u32 %v5104_v26, 16  ;;  %v5142_v56 = vld [vmem:[%s4863_s29 + $0x7c] sm:$0xf] }
  0xc0   : > { %6175 = vst [vmem:[#allocation20_spill] sm:$0xff] %v5117_v14  ;;  %3901 = vmatprep.mubr.msk.bf16.mxu0 %vm786_vm3, %v5117_v14  ;;  %3766 = vmatmul.mubr.msk.bf16.gmra.mrb[12].mxu1 %vm786_vm3, %v5117_v14  ;;  %v1324_v54 = vsel %vm5095_vm7, %v1322_v47, %v1323_v41  ;;  %v588_v11 = vshll.u32 %v5113_v32, 16  ;;  %v580_v24 = vrot.slane %v578_v38, 5  ;;  %v3442_v31 = vrot.slane %v4913_v29, 9 }
  0xc1   : > { %v567_v15 = vsel %vm4917_vm4, %v562_v46, %v566_v20  ;;  %v5139_v0 = vcombine.low %v1321_v42, %v1324_v54  ;;  %v575_v23 = vor.u32 %v574_v50, %v571_v49  ;;  %v584_v21 = vrot.slane %v582_v58, 4  ;;  %v5159_v46 = vld [vmem:[%s4863_s29 + $0x80] sm:$0x1]  ;;  %v5173_v54 = vld [vmem:[%s4863_s29 + $0x84] sm:$0xf] }
  0xc2   : > { %v5144_v19 = vcombine.low %v557_v53, %v567_v15  ;;  %v590_v41 = vrot.slane %v588_v11, 5  ;;  %v1329_v13 = vrot.slane %v1327_v60, 4  ;;  %v2374_v20 = vsel %vm835_vm0, %v5006_v63, 0 }
  0xc3   : > { %6176 = vst [vmem:[#allocation21_spill] sm:$0xff] %v5139_v0  ;;  %v576_v35 = vrot.slane %v575_v23, 4  ;;  %v593_v40 = vshrl.u32 %v5135_v12, 16  ;;  %v585_v42 = vor.u32 %v584_v21, %v580_v24  ;;  %v1328_v47 = vsel %vm5095_vm7, %v3442_v31, %v1327_v60 }
  0xc4   : > { %6177 = vst [vmem:[#allocation22_spill] sm:$0xff] %v5144_v19  ;;  %3769 = vmatprep.mubr.msk.bf16.mxu1 %vm786_vm3, %v5144_v19  ;;  %v596_v49 = vshll.u32 %v5135_v12, 16  ;;  %v602_v50 = vshll.u32 %v5142_v56, 16  ;;  %3902 = vmatmul.mubr.msk.bf16.gmra.mrb[12].mxu0 %vm786_vm3, %v5144_v19  ;;  %v1331_v38 = vsel %vm5095_vm7, %v1329_v13, %v1330_v61  ;;  %v606_v60 = vshrl.u32 %v5142_v56, 16 }
  0xc5   : > { %v581_v63 = vsel %vm4917_vm4, %v576_v35, %v580_v24  ;;  %v595_v53 = vrot.slane %v593_v40, 4  ;;  %3923 = vmatprep.mubr.msk.bf16.mxu0 %vm786_vm3, %v5139_v0  ;;  %v586_v58 = vrot.slane %v585_v42, 4  ;;  %v5177_v11 = vcombine.low %v1328_v47, %v1331_v38  ;;  %v5186_v40 = vld [vmem:[%s4863_s29 + $0x88] sm:$0xf]  ;;  %v5189_v42 = vld [vmem:[%s4863_s29 + $0x8c] sm:$0x1] }
  0xc6   : > { %v598_v15 = vrot.slane %v596_v49, 5  ;;  %v604_v23 = vrot.slane %v602_v50, 5  ;;  %v608_v24 = vrot.slane %v606_v60, 4  ;;  %v612_v43 = vshll.u32 %v5159_v46, 16 }
  0xc7   : > { %6178 = vst [vmem:[#allocation23_spill] sm:$0xff] %v5177_v11  ;;  %v3443_v61 = vrot.slane %v4943_v57, 9  ;;  %v1334_v21 = vrot.slane %v4951_v62, 5  ;;  %v591_v31 = vsel %vm4917_vm4, %v586_v58, %v590_v41  ;;  %v1337_v13 = vrot.slane %v4956_v6, 5 }
  0xc8   : > { %v599_v35 = vor.u32 %v598_v15, %v595_v53  ;;  %v617_v47 = vshrl.u32 %v5173_v54, 16  ;;  %v5192_v49 = vcombine.low %v581_v63, %v591_v31  ;;  %v609_v50 = vor.u32 %v608_v24, %v604_v23  ;;  %v5208_v31 = vld [vmem:[%s4863_s29 + $0x90] sm:$0xf] }
  0xc9   : > { %v614_v38 = vrot.slane %v612_v43, 5  ;;  %v1335_v60 = vsel %vm5095_vm7, %v3443_v61, %v1334_v21  ;;  %v1336_v19 = vrot.slane %v1334_v21, 4  ;;  %v620_v53 = vshll.u32 %v5173_v54, 16 }
  0xca   : > { %6179 = vst [vmem:[#allocation24_spill] sm:$0xff] %v5192_v49  ;;  %v600_v4 = vrot.slane %v599_v35, 4  ;;  %v619_v41 = vrot.slane %v617_v47, 4  ;;  %3770 = vmatmul.mubr.msk.bf16.gmra.mrb[16].mxu1 %vm786_vm3, %v5192_v49  ;;  %v610_v6 = vrot.slane %v609_v50, 4  ;;  %v626_v58 = vshll.u32 %v5186_v40, 16 }
  0xcb   : > { %v630_v63 = vshrl.u32 %v5186_v40, 16  ;;  %v636_v15 = vshll.u32 %v5189_v42, 16  ;;  %v1338_v43 = vsel %vm5095_vm7, %v1336_v19, %v1337_v13  ;;  %v622_v61 = vrot.slane %v620_v53, 5  ;;  %v5210_v35 = vld [vmem:[#allocation5 + $0x1c] sm:$0xf] }
  0xcc   : > { %v605_v24 = vsel %vm4917_vm4, %v600_v4, %v604_v23  ;;  %v3444_v21 = vrot.slane %v4959_v7, 9  ;;  %6180 = vst [vmem:[#allocation25_spill] sm:$0xff] %v5210_v35  ;;  %3924 = vmatmul.mubr.msk.bf16.vlgmr.msra.gmra.mrb[0].mxu0 %vm786_vm3, %v5177_v11  ;;  %v615_v47 = vsel %vm4917_vm4, %v610_v6, %v614_v38  ;;  %v5216_v50 = vcombine.low %v1335_v60, %v1338_v43  ;;  %v5219_v49 = vld [vmem:[%s4863_s29 + $0x94] sm:$0xf]  ;;  %v5228_v38 = vld [vmem:[%s4863_s29 + $0x98] sm:$0x1] }
  0xcd   : > { %v628_v4 = vrot.slane %v626_v58, 5  ;;  %v632_v23 = vrot.slane %v630_v63, 4  ;;  %3956 = vmatpush3.bf16.msra.mxu0 %v2374_v20  ;;  %v5221_v19 = vcombine.low %v605_v24, %v615_v47  ;;  %v623_v13 = vor.u32 %v622_v61, %v619_v41 }
  0xce   : > { %6181 = vst [vmem:[#allocation26_spill] sm:$0xff] %v5216_v50  ;;  %v638_v53 = vrot.slane %v636_v15, 5  ;;  %v1341_v14 = vrot.slane %v4970_v22, 5  ;;  %3927 = vmatprep.mubr.msk.bf16.mxu0 %vm786_vm3, %v5216_v50  ;;  %v1344_v18 = vrot.slane %v4976_v28, 5  ;;  %v641_v60 = vshrl.u32 %v5208_v31, 16  ;;  %4323 = vmatprep.subr.msk.bf16.mxu0 %vm835_vm0, %v5210_v35 }
  0xcf   : > { %6182 = vst [vmem:[#allocation27_spill] sm:$0xff] %v5221_v19  ;;  %v633_v3 = vor.u32 %v632_v23, %v628_v4  ;;  %v644_v6 = vshll.u32 %v5208_v31, 16  ;;  %3773 = vmatprep.mubr.msk.bf16.mxu1 %vm786_vm3, %v5221_v19  ;;  %v624_v20 = vrot.slane %v623_v13, 4  ;;  %v650_v28 = vshll.u32 %v5219_v49, 16  ;;  %v5253_v19 = vld [vmem:[%s4863_s29 + $0xa0] sm:$0xf] }
  0xd0   : > { %v1342_v41 = vsel %vm5095_vm7, %v3444_v21, %v1341_v14  ;;  %v1343_v58 = vrot.slane %v1341_v14, 4  ;;  %v643_v15 = vrot.slane %v641_v60, 4  ;;  %v654_v43 = vshrl.u32 %v5219_v49, 16  ;;  %v5246_v21 = vld [vmem:[%s4863_s29 + $0x9c] sm:$0xf] }
  0xd1   : > { %v634_v63 = vrot.slane %v633_v3, 4  ;;  %v646_v24 = vrot.slane %v644_v6, 5  ;;  %v629_v61 = vsel %vm4917_vm4, %v624_v20, %v628_v4  ;;  %v652_v23 = vrot.slane %v650_v28, 5  ;;  %v5319_v50 = vld [vmem:[%s4863_s29 + $0xb8] sm:$0xf] }
  0xd2   : > { %v1345_v47 = vsel %vm5095_vm7, %v1343_v58, %v1344_v18  ;;  %v660_v13 = vshll.u32 %v5228_v38, 16  ;;  %v656_v6 = vrot.slane %v654_v43, 4  ;;  %v3445_v18 = vrot.slane %v4980_v36, 9 }
  0xd3   : > { %v639_v14 = vsel %vm4917_vm4, %v634_v63, %v638_v53  ;;  %v5250_v3 = vcombine.low %v1342_v41, %v1345_v47  ;;  %v647_v60 = vor.u32 %v646_v24, %v643_v15  ;;  %v1348_v20 = vrot.slane %v4990_v48, 5  ;;  %v5263_v41 = vld [vmem:[%s4863_s29 + $0xa4] sm:$0x1] }
  0xd4   : > { %v5255_v37 = vcombine.low %v629_v61, %v639_v14  ;;  %v662_v4 = vrot.slane %v660_v13, 5  ;;  %v657_v28 = vor.u32 %v656_v6, %v652_v23  ;;  %v1351_v53 = vrot.slane %v4993_v52, 5 }
  0xd5   : > { %6183 = vst [vmem:[#allocation28_spill] sm:$0xff] %v5250_v3  ;;  %3928 = vmatmul.mubr.msk.bf16.gmra.mrb[4].mxu0 %vm786_vm3, %v5250_v3  ;;  %v648_v58 = vrot.slane %v647_v60, 4  ;;  %v665_v63 = vshrl.u32 %v5246_v21, 16  ;;  %v1349_v15 = vsel %vm5095_vm7, %v3445_v18, %v1348_v20  ;;  %v1350_v24 = vrot.slane %v1348_v20, 4  ;;  %v5279_v20 = vld [vmem:[%s4863_s29 + $0xa8] sm:$0xf] }
  0xd6   : > { %6184 = vst [vmem:[#allocation29_spill] sm:$0xff] %v5255_v37  ;;  %3774 = vmatmul.mubr.msk.bf16.gmra.mrb[20].mxu1 %vm786_vm3, %v5255_v37  ;;  %v668_v43 = vshll.u32 %v5246_v21, 16  ;;  %v674_v61 = vshll.u32 %v5253_v19, 16  ;;  %v658_v47 = vrot.slane %v657_v28, 4  ;;  %v678_v14 = vshrl.u32 %v5253_v19, 16 }
  0xd7   : > { %v653_v52 = vsel %vm4917_vm4, %v648_v58, %v652_v23  ;;  %v667_v13 = vrot.slane %v665_v63, 4  ;;  %v1352_v60 = vsel %vm5095_vm7, %v1350_v24, %v1351_v53  ;;  %v684_v18 = vshll.u32 %v5263_v41, 16  ;;  %v5287_v28 = vld [vmem:[%s4863_s29 + $0xac] sm:$0xf] }
  0xd8   : > { %v670_v6 = vrot.slane %v668_v43, 5  ;;  %v676_v37 = vrot.slane %v674_v61, 5  ;;  %v663_v10 = vsel %vm4917_vm4, %v658_v47, %v662_v4  ;;  %v5283_v44 = vcombine.low %v1349_v15, %v1352_v60  ;;  %v5296_v4 = vld [vmem:[%s4863_s29 + $0xb0] sm:$0x1] }
  0xd9   : > { %v680_v23 = vrot.slane %v678_v14, 4  ;;  %v3446_v58 = vrot.slane %v5004_v59, 9  ;;  %v5289_v63 = vcombine.low %v653_v52, %v663_v10  ;;  %v686_v24 = vrot.slane %v684_v18, 5 }
  0xda   : > { %6185 = vst [vmem:[#allocation30_spill] sm:$0xff] %v5283_v44  ;;  %v671_v53 = vor.u32 %v670_v6, %v667_v13  ;;  %v1355_v43 = vrot.slane %v5015_v16, 5  ;;  %3931 = vmatprep.mubr.msk.bf16.mxu0 %vm786_vm3, %v5283_v44  ;;  %v1358_v3 = vrot.slane %v5028_v25, 5  ;;  %v689_v15 = vshrl.u32 %v5279_v20, 16 }
  0xdb   : > { %6186 = vst [vmem:[#allocation31_spill] sm:$0xff] %v5289_v63  ;;  %v681_v61 = vor.u32 %v680_v23, %v676_v37  ;;  %v692_v47 = vshll.u32 %v5279_v20, 16  ;;  %3777 = vmatprep.mubr.msk.bf16.mxu1 %vm786_vm3, %v5289_v63  ;;  %v698_v14 = vshll.u32 %v5287_v28, 16  ;;  %v702_v18 = vshrl.u32 %v5287_v28, 16 }
  0xdc   : > { %v672_v10 = vrot.slane %v671_v53, 4  ;;  %v1356_v52 = vsel %vm5095_vm7, %v3446_v58, %v1355_v43  ;;  %v1357_v13 = vrot.slane %v1355_v43, 4  ;;  %v691_v25 = vrot.slane %v689_v15, 4  ;;  %v5312_v58 = vld [vmem:[%s4863_s29 + $0xb4] sm:$0xf] }
  0xdd   : > { %v682_v60 = vrot.slane %v681_v61, 4  ;;  %v694_v6 = vrot.slane %v692_v47, 5  ;;  %v700_v63 = vrot.slane %v698_v14, 5  ;;  %v708_v53 = vshll.u32 %v5296_v4, 16 }
  0xde   : > { %v677_v23 = vsel %vm4917_vm4, %v672_v10, %v676_v37  ;;  %v1359_v44 = vsel %vm5095_vm7, %v1357_v13, %v1358_v3  ;;  %v704_v47 = vrot.slane %v702_v18, 4  ;;  %v3447_v3 = vrot.slane %v5032_v27, 9 }
  0xdf   : > { %v687_v43 = vsel %vm4917_vm4, %v682_v60, %v686_v24  ;;  %v5316_v61 = vcombine.low %v1356_v52, %v1359_v44  ;;  %v695_v15 = vor.u32 %v694_v6, %v691_v25  ;;  %v710_v37 = vrot.slane %v708_v53, 5  ;;  %v5329_v44 = vld [vmem:[%s4863_s29 + $0xbc] sm:$0x1] }
  0xe0   : > { %v5321_v11 = vcombine.low %v677_v23, %v687_v43  ;;  %v1362_v10 = vrot.slane %v5040_v45, 5  ;;  %v705_v14 = vor.u32 %v704_v47, %v700_v63  ;;  %v1365_v24 = vrot.slane %v5052_v55, 5 }
  0xe1   : > { %6187 = vst [vmem:[#allocation32_spill] sm:$0xff] %v5316_v61  ;;  %3932 = vmatmul.mubr.msk.bf16.gmra.mrb[8].mxu0 %vm786_vm3, %v5316_v61  ;;  %v696_v13 = vrot.slane %v695_v15, 4  ;;  %v713_v52 = vshrl.u32 %v5312_v58, 16  ;;  %v716_v6 = vshll.u32 %v5312_v58, 16  ;;  %v722_v18 = vshll.u32 %v5319_v50, 16 }
  0xe2   : > { %6188 = vst [vmem:[#allocation33_spill] sm:$0xff] %v5321_v11  ;;  %3778 = vmatmul.mubr.msk.bf16.gmra.mrb[24].mxu1 %vm786_vm3, %v5321_v11  ;;  %v1363_v60 = vsel %vm5095_vm7, %v3447_v3, %v1362_v10  ;;  %v1364_v25 = vrot.slane %v1362_v10, 4  ;;  %v706_v53 = vrot.slane %v705_v14, 4  ;;  %v726_v43 = vshrl.u32 %v5319_v50, 16 }
  0xe3   : > { %v701_v23 = vsel %vm4917_vm4, %v696_v13, %v700_v63  ;;  %v715_v55 = vrot.slane %v713_v52, 4  ;;  %v718_v47 = vrot.slane %v716_v6, 5  ;;  %v724_v11 = vrot.slane %v722_v18, 5 }
  0xe4   : > { %v1366_v15 = vsel %vm5095_vm7, %v1364_v25, %v1365_v24  ;;  %v732_v61 = vshll.u32 %v5329_v44, 16  ;;  %v711_v3 = vsel %vm4917_vm4, %v706_v53, %v710_v37  ;;  %v728_v0 = vrot.slane %v726_v43, 4 }
  0xe5   : > { %v5346_v10 = vcombine.low %v1363_v60, %v1366_v15  ;;  %v3448_v35 = vrot.slane %v5057_v8, 9  ;;  %v5349_v63 = vcombine.low %v701_v23, %v711_v3  ;;  %v719_v13 = vor.u32 %v718_v47, %v715_v55 }
  0xe6   : > { %v734_v14 = vrot.slane %v732_v61, 5  ;;  %v1369_v52 = vrot.slane %v5063_v17, 5  ;;  %v729_v24 = vor.u32 %v728_v0, %v724_v11  ;;  %v1372_v25 = vrot.slane %v5071_v33, 5 }
  0xe7   : > { %3935 = vmatprep.mubr.msk.bf16.mxu0 %vm786_vm3, %v5346_v10  ;;  %v3449_v6 = vrot.slane %v5082_v51, 9  ;;  %v1376_v37 = vrot.slane %v5104_v26, 5  ;;  %3781 = vmatprep.mubr.msk.bf16.mxu1 %vm786_vm3, %v5349_v63  ;;  %v720_v60 = vrot.slane %v719_v13, 4  ;;  %v1379_v23 = vrot.slane %v5113_v32, 5 }
  0xe8   : > { %v1370_v18 = vsel %vm5095_vm7, %v3448_v35, %v1369_v52  ;;  %v1371_v61 = vrot.slane %v1369_v52, 4  ;;  %v730_v53 = vrot.slane %v729_v24, 4  ;;  %v3408_v0 = vcombine.low %v4879_v2, %v4888_v5 }
  0xe9   : > { %v1377_v33 = vsel %vm5095_vm7, %v3449_v6, %v1376_v37  ;;  %v1378_v55 = vrot.slane %v1376_v37, 4  ;;  %v725_v43 = vsel %vm4917_vm4, %v720_v60, %v724_v11  ;;  %v3450_v47 = vrot.slane %v5135_v12, 9 }
  0xea   : > { %v1373_v15 = vsel %vm5095_vm7, %v1371_v61, %v1372_v25  ;;  %v1383_v35 = vrot.slane %v5142_v56, 5  ;;  %v735_v32 = vsel %vm4917_vm4, %v730_v53, %v734_v14  ;;  %v1386_v5 = vrot.slane %v5159_v46, 5 }
  0xeb   : > { %v5374_v3 = vcombine.low %v1370_v18, %v1373_v15  ;;  %v1380_v2 = vsel %vm5095_vm7, %v1378_v55, %v1379_v23  ;;  %v5379_v13 = vcombine.low %v725_v43, %v735_v32  ;;  %v3451_v14 = vrot.slane %v5173_v54, 9 }
  0xec   : > { %v5381_v11 = vcombine.low %v1377_v33, %v1380_v2  ;;  %v1385_v52 = vrot.slane %v1383_v35, 4  ;;  %v1384_v24 = vsel %vm5095_vm7, %v3450_v47, %v1383_v35  ;;  %v1390_v25 = vrot.slane %v5186_v40, 5 }
  0xed   : > { %3936 = vmatmul.mubr.msk.bf16.gmra.mrb[12].mxu0 %vm786_vm3, %v5374_v3  ;;  %v1393_v6 = vrot.slane %v5189_v42, 5  ;;  %3782 = vmatmul.mubr.msk.bf16.gmra.mrb[28].mxu1 %vm786_vm3, %v5379_v13  ;;  %v1397_v37 = vrot.slane %v5219_v49, 5  ;;  %v3452_v42 = vrot.slane %v5208_v31, 9  ;;  %v1400_v33 = vrot.slane %v5228_v38, 5 }
  0xee   : > { %3939 = vmatprep.mubr.msk.bf16.mxu0 %vm786_vm3, %v5381_v11  ;;  %v1387_v46 = vsel %vm5095_vm7, %v1385_v52, %v1386_v5  ;;  %3787 = vmatprep.mubr.msk.bf16.mxu1 %vm786_vm3, %v3408_v0  ;;  %v1391_v60 = vsel %vm5095_vm7, %v3451_v14, %v1390_v25  ;;  %v1392_v18 = vrot.slane %v1390_v25, 4  ;;  %v1404_v55 = vrot.slane %v5253_v19, 5 }
  0xef   : > { %v5400_v61 = vcombine.low %v1384_v24, %v1387_v46  ;;  %v1399_v53 = vrot.slane %v1397_v37, 4  ;;  %v5411_v0 = vcombine.low %v4913_v29, %v4926_v39  ;;  %v3453_v15 = vrot.slane %v5246_v21, 9  ;;  %v5424_v39 = vld [vmem:[#allocation5 + $0xc] sm:$0xf] }
  0xf0   : > { %v1394_v23 = vsel %vm5095_vm7, %v1392_v18, %v1393_v6  ;;  %v1406_v47 = vrot.slane %v1404_v55, 4  ;;  %v1407_v35 = vrot.slane %v5263_v41, 5  ;;  %v1522_v32 = vsel %vm835_vm0, %v5087_v1, 0 }
  0xf1   : > { %v5407_v43 = vcombine.low %v1391_v60, %v1394_v23  ;;  %v1411_v2 = vrot.slane %v5287_v28, 5  ;;  %v1398_v38 = vsel %vm5095_vm7, %v3452_v42, %v1397_v37  ;;  %v1401_v29 = vsel %vm5095_vm7, %v1399_v53, %v1400_v33 }
  0xf2   : > { %v1418_v1 = vrot.slane %v5319_v50, 5  ;;  %v5435_v41 = vcombine.low %v4943_v57, %v4951_v62  ;;  %v1405_v5 = vsel %vm5095_vm7, %v3453_v15, %v1404_v55  ;;  %v1408_v52 = vsel %vm5095_vm7, %v1406_v47, %v1407_v35 }
  0xf3   : > { %v3454_v24 = vrot.slane %v5279_v20, 9  ;;  %v5442_v14 = vcombine.low %v1398_v38, %v1401_v29  ;;  %v1413_v25 = vrot.slane %v1411_v2, 4  ;;  %v1414_v6 = vrot.slane %v5296_v4, 5 }
  0xf4   : > { %v5447_v46 = vcombine.low %v5082_v51, %v5104_v26  ;;  %v3455_v57 = vrot.slane %v5312_v58, 9  ;;  %v1421_v62 = vrot.slane %v5329_v44, 5  ;;  %v5455_v37 = vcombine.low %v5135_v12, %v5142_v56  ;;  %v5464_v26 = vld [vmem:[%s4863_s29 + $0xc4] sm:$0xf] }
  0xf5   : > { %3940 = vmatmul.mubr.msk.bf16.gmra.mrb[16].mxu0 %vm786_vm3, %v5400_v61  ;;  %3788 = vmatmul.mubr.msk.bf16.vlgmr.msra.gmra.mrb[0].mxu1 %vm786_vm3, %v4923_v34  ;;  %v5459_v60 = vcombine.low %v5173_v54, %v5186_v40  ;;  %v5461_v4 = vcombine.low %v1405_v5, %v1408_v52  ;;  %v1420_v51 = vrot.slane %v1418_v1, 4  ;;  %v5468_v18 = vcombine.low %v5208_v31, %v5219_v49  ;;  %v5491_v49 = vld [vmem:[%s4863_s29 + $0xc0] sm:$0xf] }
  0xf6   : > { %3943 = vmatprep.mubr.msk.bf16.mxu0 %vm786_vm3, %v5407_v43  ;;  %3820 = vmatpush3.bf16.msra.mxu1 %v1522_v32  ;;  %v5472_v44 = vcombine.low %v5246_v21, %v5253_v19  ;;  %v5476_v12 = vcombine.low %v4959_v7, %v4970_v22  ;;  %v5480_v56 = vcombine.low %v5279_v20, %v5287_v28  ;;  %v2154_v31 = vrot.slane %v5464_v26, 5  ;;  %v344_v19 = vld [vmem:[%s4863_s29 + $0xc8] sm:$0x1] }
  0xf7   : > { %3791 = vmatprep.mubr.msk.bf16.mxu1 %vm786_vm3, %v5411_v0  ;;  %4318 = vmatprep.subr.msk.bf16.mxu1 %vm835_vm0, %v5424_v39  ;;  %v5484_v54 = vcombine.low %v5312_v58, %v5319_v50  ;;  %v1412_v40 = vsel %vm5095_vm7, %v3454_v24, %v1411_v2  ;;  %v1415_v7 = vsel %vm5095_vm7, %v1413_v25, %v1414_v6  ;;  %v3522_v20 = vrot.slane %v5491_v49, 9 }
  0xf8   : > { %v1419_v22 = vsel %vm5095_vm7, %v3455_v57, %v1418_v1  ;;  %v1422_v50 = vsel %vm5095_vm7, %v1420_v51, %v1421_v62  ;;  %v5509_v21 = vcombine.low %v4980_v36, %v4990_v48  ;;  %v5512_v28 = vcombine.low %v1412_v40, %v1415_v7 }
  0xf9   : > { %v5514_v58 = vcombine.low %v1419_v22, %v1422_v50  ;;  %v2156_v42 = vrot.slane %v2154_v31, 4  ;;  %v2157_v23 = vrot.slane %v344_v19, 5  ;;  %v1924_v53 = vshrl.u32 %v5491_v49, 16  ;;  %v4421_v22 = vld [vmem:[%s4863_s29] sm:$0xf] }
  0xfa   : > { %v1927_v33 = vshll.u32 %v5491_v49, 16  ;;  %v1933_v55 = vshll.u32 %v5464_v26, 16  ;;  %v1937_v15 = vshrl.u32 %v5464_v26, 16  ;;  %v5522_v36 = vcombine.low %v5004_v59, %v5015_v16 }
  0xfb   : > { %v1926_v48 = vrot.slane %v1924_v53, 4  ;;  %v2155_v2 = vsel %vm5095_vm7, %v3522_v20, %v2154_v31  ;;  %v2158_v59 = vsel %vm5095_vm7, %v2156_v42, %v2157_v23  ;;  %v1943_v29 = vshll.u32 %v344_v19, 16  ;;  %v4420_v31 = vld [vmem:[%s4863_s29 + $0x8] sm:$0x1] }
  0xfc   : > { %v1929_v47 = vrot.slane %v1927_v33, 5  ;;  %v1935_v35 = vrot.slane %v1933_v55, 5  ;;  %v1939_v32 = vrot.slane %v1937_v15, 4  ;;  %v5536_v24 = vcombine.low %v2155_v2, %v2158_v59  ;;  %v6190_v33 = vld [vmem:[#allocation21_spill] sm:$0xff]  ;;  %v6191_v55 = vld [vmem:[#allocation23_spill] sm:$0xff]  ;;  %v6195_v59 = vld [vmem:[#allocation32_spill] sm:$0xff] }
  0xfd   : > { %3944 = vmatmul.mubr.msk.bf16.gmra.mrb[20].mxu0 %vm786_vm3, %v5442_v14  ;;  %3792 = vmatmul.mubr.msk.bf16.gmra.mrb[4].mxu1 %vm786_vm3, %v5435_v41  ;;  %v1945_v52 = vrot.slane %v1943_v29, 5  ;;  %v5540_v25 = vcombine.low %v5032_v27, %v5040_v45  ;;  %v5548_v62 = vcombine.low %v5057_v8, %v5063_v17  ;;  %v6189_v27 = vld [vmem:[#allocation25_spill] sm:$0xff]  ;;  %v4419_v17 = vld [vmem:[%s4863_s29 + $0x4] sm:$0xf]  ;;  %v1316_v7 = vrot.slane %v4420_v31, 5 }
  0xfe   : > { %3947 = vmatprep.mubr.msk.bf16.mxu0 %vm786_vm3, %v5461_v4  ;;  %3795 = vmatprep.mubr.msk.bf16.mxu1 %vm786_vm3, %v5476_v12  ;;  %v1930_v16 = vor.u32 %v1929_v47, %v1926_v48  ;;  %v1940_v38 = vor.u32 %v1939_v32, %v1935_v35  ;;  %v2602_v45 = vsel %vm835_vm0, %v6189_v27, 0  ;;  %v2806_v8 = vld [vmem:[#allocation5 + $0x20] sm:$0xf]  ;;  %v1313_v40 = vrot.slane %v4419_v17, 5  ;;  %v4422_v15 = vld [vmem:[#allocation5 + $0x10] sm:$0xf] }
  0xff   : > { %v3440_v50 = vrot.slane %v4421_v22, 9  ;;  %v1728_v53 = vsel %vm835_vm0, %v5424_v39, 0  ;;  %v6192_v39 = vld [vmem:[#allocation26_spill] sm:$0xff]  ;;  %v6193_v48 = vld [vmem:[#allocation28_spill] sm:$0xff]  ;;  %v5622_v47 = vcombine.low %v5491_v49, %v5464_v26  ;;  %v6196_v49 = vld [vmem:[#allocation15_spill] sm:$0xff] }
 0x100   : > { %v1931_v1 = vrot.slane %v1930_v16, 4  ;;  %v1941_v5 = vrot.slane %v1940_v38, 4  ;;  %v1315_v19 = vrot.slane %v1313_v40, 4  ;;  %v5631_v32 = vld [vmem:[%s4863_s29 + $0xcc] sm:$0xf]  ;;  %v2814_v16 = vsel %vm835_vm0, %v2806_v8, 0 }
 0x101   : > { %v1314_v20 = vsel %vm5095_vm7, %v3440_v50, %v1313_v40  ;;  %v5634_v2 = vld [vmem:[%s4863_s29 + $0xd0] sm:$0xf]  ;;  %v6204_v27 = vld [vmem:[#allocation27_spill] sm:$0xff]  ;;  %v2573_v17 = vshll.u32 %v5631_v32, 16  ;;  %v6207_v22 = vld [vmem:[#allocation14_spill] sm:$0xff] }
 0x102   : > { %v1936_v6 = vsel %vm4917_vm4, %v1931_v1, %v1935_v35  ;;  %v1946_v57 = vsel %vm4917_vm4, %v1941_v5, %v1945_v52  ;;  %v1317_v42 = vsel %vm5095_vm7, %v1315_v19, %v1316_v7  ;;  %v6194_v35 = vld [vmem:[#allocation30_spill] sm:$0xff]  ;;  %v3540_v26 = vcombine.low %v5631_v32, %v5634_v2  ;;  %v6197_v38 = vld [vmem:[#allocation16_spill] sm:$0xff]  ;;  %v6198_v29 = vld [vmem:[#allocation17_spill] sm:$0xff] }
 0x103   : > { %v5550_v51 = vcombine.low %v1936_v6, %v1946_v57  ;;  %v3456_v23 = vcombine.low %v1314_v20, %v1317_v42  ;;  %v6199_v1 = vld [vmem:[#allocation18_spill] sm:$0xff]  ;;  %v6200_v5 = vld [vmem:[#allocation19_spill] sm:$0xff]  ;;  %v6201_v52 = vld [vmem:[#allocation20_spill] sm:$0xff]  ;;  %v2583_v40 = vshrl.u32 %v5634_v2, 16  ;;  %v2579_v7 = vshll.u32 %v5634_v2, 16 }
 0x104   : > { %v6202_v6 = vld [vmem:[#allocation22_spill] sm:$0xff]  ;;  %v6203_v57 = vld [vmem:[#allocation24_spill] sm:$0xff]  ;;  %v6206_v31 = vld [vmem:[#allocation31_spill] sm:$0xff]  ;;  %v2575_v50 = vrot.slane %v2573_v17, 5  ;;  %v2800_v30 = vrot.slane %v5634_v2, 5 }
 0x105   : > { %3948 = vmatmul.mubr.msk.bf16.gmra.mrb[24].mxu0 %vm786_vm3, %v5512_v28  ;;  %3796 = vmatmul.mubr.msk.bf16.gmra.mrb[8].mxu1 %vm786_vm3, %v5509_v21  ;;  %v2581_v19 = vrot.slane %v2579_v7, 5  ;;  %v2585_v20 = vrot.slane %v2583_v40, 4  ;;  %v347_v42 = vld [vmem:[%s4863_s29 + $0xd4] sm:$0x1] }
 0x106   : > { %3951 = vmatprep.mubr.msk.bf16.mxu0 %vm786_vm3, %v5514_v58  ;;  %3799 = vmatprep.mubr.msk.bf16.mxu1 %vm786_vm3, %v5522_v36 }
 0x10d   : > { %3952 = vmatmul.mubr.msk.bf16.gmra.mrb[28].mxu0 %vm786_vm3, %v5536_v24  ;;  %3800 = vmatmul.mubr.msk.bf16.gmra.mrb[12].mxu1 %vm786_vm3, %v5540_v25 }
 0x10e   : > { %3957 = vmatprep.mubr.msk.bf16.mxu0 %vm786_vm3, %v5411_v0  ;;  %3803 = vmatprep.mubr.msk.bf16.mxu1 %vm786_vm3, %v5548_v62 }
 0x115   : > { %3958 = vmatmul.mubr.msk.bf16.vlgmr.msra.gmra.mrb[0].mxu0 %vm786_vm3, %v5435_v41  ;;  %3804 = vmatmul.mubr.msk.bf16.gmra.mrb[16].mxu1 %vm786_vm3, %v5447_v46 }
 0x116   : > { %3990 = vmatpush3.bf16.msra.mxu0 %v2602_v45  ;;  %3807 = vmatprep.mubr.msk.bf16.mxu1 %vm786_vm3, %v5455_v37  ;;  %v6205_v45 = vld [vmem:[#allocation29_spill] sm:$0xff] }
 0x117   : > { %3961 = vmatprep.mubr.msk.bf16.mxu0 %vm786_vm3, %v5476_v12  ;;  %4324 = vmatprep.subr.msk.bf16.mxu0 %vm835_vm0, %v2806_v8  ;;  %v2570_v8 = vshrl.u32 %v5631_v32, 16 }
 0x11d   : > { %3962 = vmatmul.mubr.msk.bf16.gmra.mrb[4].mxu0 %vm786_vm3, %v5509_v21  ;;  %3808 = vmatmul.mubr.msk.bf16.gmra.mrb[20].mxu1 %vm786_vm3, %v5459_v60 }
 0x11e   : > { %3965 = vmatprep.mubr.msk.bf16.mxu0 %vm786_vm3, %v5522_v36  ;;  %3811 = vmatprep.mubr.msk.bf16.mxu1 %vm786_vm3, %v5468_v18 }
 0x125   : > { %3966 = vmatmul.mubr.msk.bf16.gmra.mrb[8].mxu0 %vm786_vm3, %v5540_v25  ;;  %3812 = vmatmul.mubr.msk.bf16.gmra.mrb[24].mxu1 %vm786_vm3, %v5472_v44 }
 0x126   : > { %3969 = vmatprep.mubr.msk.bf16.mxu0 %vm786_vm3, %v5548_v62  ;;  %3815 = vmatprep.mubr.msk.bf16.mxu1 %vm786_vm3, %v5480_v56 }
 0x12d   : > { %3970 = vmatmul.mubr.msk.bf16.gmra.mrb[12].mxu0 %vm786_vm3, %v5447_v46  ;;  %3816 = vmatmul.mubr.msk.bf16.gmra.mrb[28].mxu1 %vm786_vm3, %v5484_v54 }
 0x12e   : > { %3973 = vmatprep.mubr.msk.bf16.mxu0 %vm786_vm3, %v5455_v37  ;;  %3821 = vmatprep.mubr.msk.bf16.mxu1 %vm786_vm3, %v3456_v23  ;;  %v6208_v23 = vld [vmem:[#allocation33_spill] sm:$0xff] }
 0x135   : > { %3974 = vmatmul.mubr.msk.bf16.gmra.mrb[16].mxu0 %vm786_vm3, %v5459_v60  ;;  %3822 = vmatmul.mubr.msk.bf16.vlgmr.msra.gmra.mrb[0].mxu1 %vm786_vm3, %v6190_v33  ;;  %v2589_v33 = vshll.u32 %v347_v42, 16 }
 0x136   : > { %3977 = vmatprep.mubr.msk.bf16.mxu0 %vm786_vm3, %v5468_v18  ;;  %3854 = vmatpush3.bf16.msra.mxu1 %v1728_v53  ;;  %v2586_v53 = vor.u32 %v2585_v20, %v2581_v19 }
 0x137   : > { %3825 = vmatprep.mubr.msk.bf16.mxu1 %vm786_vm3, %v6191_v55  ;;  %4320 = vmatprep.subr.msk.bf16.mxu1 %vm835_vm0, %v4422_v15 }
 0x138   : > { %v2587_v15 = vrot.slane %v2586_v53, 4 }
 0x13d   : > { %3978 = vmatmul.mubr.msk.bf16.gmra.mrb[20].mxu0 %vm786_vm3, %v5472_v44  ;;  %3826 = vmatmul.mubr.msk.bf16.gmra.mrb[4].mxu1 %vm786_vm3, %v6192_v39 }
 0x13e   : > { %3981 = vmatprep.mubr.msk.bf16.mxu0 %vm786_vm3, %v5480_v56  ;;  %3829 = vmatprep.mubr.msk.bf16.mxu1 %vm786_vm3, %v6193_v48 }
 0x145   : > { %3982 = vmatmul.mubr.msk.bf16.gmra.mrb[24].mxu0 %vm786_vm3, %v5484_v54  ;;  %3830 = vmatmul.mubr.msk.bf16.gmra.mrb[8].mxu1 %vm786_vm3, %v6194_v35 }
 0x146   : > { %3985 = vmatprep.mubr.msk.bf16.mxu0 %vm786_vm3, %v5622_v47  ;;  %3833 = vmatprep.mubr.msk.bf16.mxu1 %vm786_vm3, %v6195_v59 }
 0x14d   : > { %3986 = vmatmul.mubr.msk.bf16.gmra.mrb[28].mxu0 %vm786_vm3, %v3540_v26  ;;  %3834 = vmatmul.mubr.msk.bf16.gmra.mrb[12].mxu1 %vm786_vm3, %v5346_v10  ;;  %v2591_v26 = vrot.slane %v2589_v33, 5 }
 0x14e   : > { %3991 = vmatprep.mubr.msk.bf16.mxu0 %vm786_vm3, %v6196_v49  ;;  %3837 = vmatprep.mubr.msk.bf16.mxu1 %vm786_vm3, %v5374_v3 }
 0x14f   : > { %v2592_v49 = vsel %vm4917_vm4, %v2587_v15, %v2591_v26 }
 0x155   : > { %3992 = vmatmul.mubr.msk.bf16.vlgmr.msra.gmra.mrb[0].mxu0 %vm786_vm3, %v6197_v38  ;;  %3838 = vmatmul.mubr.msk.bf16.gmra.mrb[16].mxu1 %vm786_vm3, %v5381_v11 }
 0x156   : > { %4024 = vmatpush3.bf16.msra.mxu0 %v2814_v16  ;;  %3841 = vmatprep.mubr.msk.bf16.mxu1 %vm786_vm3, %v5400_v61 }
 0x157   : > { %3995 = vmatprep.mubr.msk.bf16.mxu0 %vm786_vm3, %v6198_v29 }
 0x15d   : > { %3996 = vmatmul.mubr.msk.bf16.gmra.mrb[4].mxu0 %vm786_vm3, %v6199_v1  ;;  %3842 = vmatmul.mubr.msk.bf16.gmra.mrb[20].mxu1 %vm786_vm3, %v5407_v43 }
 0x15e   : > { %3999 = vmatprep.mubr.msk.bf16.mxu0 %vm786_vm3, %v6200_v5  ;;  %3845 = vmatprep.mubr.msk.bf16.mxu1 %vm786_vm3, %v5442_v14 }
 0x165   : > { %4000 = vmatmul.mubr.msk.bf16.gmra.mrb[8].mxu0 %vm786_vm3, %v6201_v52  ;;  %3846 = vmatmul.mubr.msk.bf16.gmra.mrb[24].mxu1 %vm786_vm3, %v5461_v4 }
 0x166   : > { %4003 = vmatprep.mubr.msk.bf16.mxu0 %vm786_vm3, %v6202_v6  ;;  %3849 = vmatprep.mubr.msk.bf16.mxu1 %vm786_vm3, %v5512_v28 }
 0x16d   : > { %4004 = vmatmul.mubr.msk.bf16.gmra.mrb[12].mxu0 %vm786_vm3, %v6203_v57  ;;  %3850 = vmatmul.mubr.msk.bf16.gmra.mrb[28].mxu1 %vm786_vm3, %v5514_v58 }
 0x16e   : > { %4007 = vmatprep.mubr.msk.bf16.mxu0 %vm786_vm3, %v6204_v27  ;;  %3855 = vmatprep.mubr.msk.bf16.mxu1 %vm786_vm3, %v4923_v34  ;;  %v2572_v34 = vrot.slane %v2570_v8, 4 }
 0x175   : > { %4008 = vmatmul.mubr.msk.bf16.gmra.mrb[16].mxu0 %vm786_vm3, %v6205_v45  ;;  %3856 = vmatmul.mubr.msk.bf16.vlgmr.msra.gmra.mrb[0].mxu1 %vm786_vm3, %v5411_v0  ;;  %v2576_v0 = vor.u32 %v2575_v50, %v2572_v34 }
 0x176   : > { %4011 = vmatprep.mubr.msk.bf16.mxu0 %vm786_vm3, %v6206_v31  ;;  %4058 = vmatpush3.bf16.msra.mxu1 %v6207_v22 }
 0x177   : > { %3859 = vmatprep.mubr.msk.bf16.mxu1 %vm786_vm3, %v5435_v41  ;;  %v2577_v41 = vrot.slane %v2576_v0, 4 }
 0x17d   : > { %4012 = vmatmul.mubr.msk.bf16.gmra.mrb[20].mxu0 %vm786_vm3, %v6208_v23  ;;  %3860 = vmatmul.mubr.msk.bf16.gmra.mrb[4].mxu1 %vm786_vm3, %v5476_v12  ;;  %v2582_v12 = vsel %vm4917_vm4, %v2577_v41, %v2581_v19 }
 0x17e   : > { %4015 = vmatprep.mubr.msk.bf16.mxu0 %vm786_vm3, %v5349_v63  ;;  %3863 = vmatprep.mubr.msk.bf16.mxu1 %vm786_vm3, %v5509_v21  ;;  %v3557_v21 = vcombine.low %v2582_v12, %v2592_v49 }
 0x185   : > { %4016 = vmatmul.mubr.msk.bf16.gmra.mrb[24].mxu0 %vm786_vm3, %v5379_v13  ;;  %3864 = vmatmul.mubr.msk.bf16.gmra.mrb[8].mxu1 %vm786_vm3, %v5522_v36 }
 0x186   : > { %4019 = vmatprep.mubr.msk.bf16.mxu0 %vm786_vm3, %v5550_v51  ;;  %3867 = vmatprep.mubr.msk.bf16.mxu1 %vm786_vm3, %v5540_v25 }
 0x18d   : > { %4020 = vmatmul.mubr.msk.bf16.gmra.mrb[28].mxu0 %vm786_vm3, %v3557_v21  ;;  %3868 = vmatmul.mubr.msk.bf16.gmra.mrb[12].mxu1 %vm786_vm3, %v5548_v62 }
 0x18e   : > { %4025 = vmatprep.mubr.msk.bf16.mxu0 %vm786_vm3, %v6191_v55  ;;  %3871 = vmatprep.mubr.msk.bf16.mxu1 %vm786_vm3, %v5447_v46 }
 0x195   : > { %4026 = vmatmul.mubr.msk.bf16.vlgmr.msra.gmra.mrb[0].mxu0 %vm786_vm3, %v6192_v39  ;;  %3872 = vmatmul.mubr.msk.bf16.gmra.mrb[16].mxu1 %vm786_vm3, %v5455_v37 }
 0x196   : > { %4029 = vmatprep.mubr.msk.bf16.mxu0 %vm786_vm3, %v6193_v48  ;;  %3875 = vmatprep.mubr.msk.bf16.mxu1 %vm786_vm3, %v5459_v60 }
 0x19d   : > { %4030 = vmatmul.mubr.msk.bf16.gmra.mrb[4].mxu0 %vm786_vm3, %v6194_v35  ;;  %3876 = vmatmul.mubr.msk.bf16.gmra.mrb[20].mxu1 %vm786_vm3, %v5468_v18 }
 0x19e   : > { %4033 = vmatprep.mubr.msk.bf16.mxu0 %vm786_vm3, %v6195_v59  ;;  %3879 = vmatprep.mubr.msk.bf16.mxu1 %vm786_vm3, %v5472_v44 }
 0x1a5   : > { %4034 = vmatmul.mubr.msk.bf16.gmra.mrb[8].mxu0 %vm786_vm3, %v5346_v10  ;;  %3880 = vmatmul.mubr.msk.bf16.gmra.mrb[24].mxu1 %vm786_vm3, %v5480_v56  ;;  %v3574_v10 = vrot.slane %v5631_v32, 9 }
 0x1a6   : > { %4037 = vmatprep.mubr.msk.bf16.mxu0 %vm786_vm3, %v5374_v3  ;;  %3883 = vmatprep.mubr.msk.bf16.mxu1 %vm786_vm3, %v5484_v54  ;;  %v2802_v3 = vrot.slane %v2800_v30, 4 }
 0x1ad   : > { %4038 = vmatmul.mubr.msk.bf16.gmra.mrb[12].mxu0 %vm786_vm3, %v5381_v11  ;;  %3884 = vmatmul.mubr.msk.bf16.gmra.mrb[28].mxu1 %vm786_vm3, %v5622_v47  ;;  %v2803_v11 = vrot.slane %v347_v42, 5 }
 0x1ae   : > { %4041 = vmatprep.mubr.msk.bf16.mxu0 %vm786_vm3, %v5400_v61  ;;  %3905 = vmatprep.mubr.msk.bf16.mxu1 %vm786_vm3, %v6203_v57  ;;  %v2801_v61 = vsel %vm5095_vm7, %v3574_v10, %v2800_v30 }
 0x1b5   : > { %4042 = vmatmul.mubr.msk.bf16.gmra.mrb[16].mxu0 %vm786_vm3, %v5407_v43  ;;  %3906 = vmatmul.mubr.msk.bf16.vlgmr.msra.gmra.mrb[16].mxu1 %vm786_vm3, %v6204_v27  ;;  %v2804_v43 = vsel %vm5095_vm7, %v2802_v3, %v2803_v11 }
 0x1b6   : > { %4045 = vmatprep.mubr.msk.bf16.mxu0 %vm786_vm3, %v5442_v14  ;;  %3909 = vmatprep.mubr.msk.bf16.mxu1 %vm786_vm3, %v6205_v45  ;;  %v3575_v14 = vcombine.low %v2801_v61, %v2804_v43 }
 0x1bd   : > { %4046 = vmatmul.mubr.msk.bf16.gmra.mrb[20].mxu0 %vm786_vm3, %v5461_v4  ;;  %3910 = vmatmul.mubr.msk.bf16.gmra.mrb[20].mxu1 %vm786_vm3, %v6206_v31 }
 0x1be   : > { %4049 = vmatprep.mubr.msk.bf16.mxu0 %vm786_vm3, %v5512_v28  ;;  %3913 = vmatprep.mubr.msk.bf16.mxu1 %vm786_vm3, %v6208_v23 }
 0x1c5   : > { %4050 = vmatmul.mubr.msk.bf16.gmra.mrb[24].mxu0 %vm786_vm3, %v5514_v58  ;;  %3914 = vmatmul.mubr.msk.bf16.gmra.mrb[24].mxu1 %vm786_vm3, %v5349_v63 }
 0x1c6   : > { %4053 = vmatprep.mubr.msk.bf16.mxu0 %vm786_vm3, %v5536_v24  ;;  %3917 = vmatprep.mubr.msk.bf16.mxu1 %vm786_vm3, %v5379_v13 }
 0x1cd   : > { %4054 = vmatmul.mubr.msk.bf16.gmra.mrb[28].mxu0 %vm786_vm3, %v3575_v14  ;;  %3918 = vmatmul.mubr.msk.bf16.gmra.mrb[28].mxu1 %vm786_vm3, %v5550_v51 }
 0x248   : > { %v3857_v46 = vpop.f32.mrb[0].mxu1 }
 0x249   : > { %v1764_v63 = vpop.f32.mrb[1].mxu1 }
 0x24a   : > { %v3858_v37 = vpop.f32.mrb[2].mxu1 }
 0x24b   : > { %v1767_v60 = vpop.f32.mrb[3].mxu1 }
 0x250   : > { %v3861_v4 = vpop.f32.mrb[4].mxu1 }
 0x251   : > { %v1780_v18 = vpop.f32.mrb[5].mxu1 }
 0x252   : > { %v3862_v44 = vpop.f32.mrb[6].mxu1 }
 0x253   : > { %v1783_v56 = vpop.f32.mrb[7].mxu1 }
 0x258   : > { %v3865_v54 = vpop.f32.mrb[8].mxu1 }
 0x259   : > { %v1796_v9 = vpop.f32.mrb[9].mxu1 }
 0x25a   : > { %v3866_v28 = vpop.f32.mrb[10].mxu1 }
 0x25b   : > { %v1799_v58 = vpop.f32.mrb[11].mxu1 }
 0x260   : > { %v3869_v36 = vpop.f32.mrb[12].mxu1 }
 0x261   : > { %v1812_v13 = vpop.f32.mrb[13].mxu1 }
 0x262   : > { %v5786_v24 = vpop.f32.mrb[14].mxu1 }
 0x263   : > { %v5788_v25 = vpop.f32.mrb[15].mxu1 }
 0x268   : > { %v4027_v62 = vpop.f32.mrb[0].mxu0 }
 0x269   : > { %v5790_v51 = vadd.f32 %v4027_v62, %v3857_v46  ;;  %v2850_v55 = vpop.f32.mrb[1].mxu0 }
 0x26a   : > { %v5792_v39 = vadd.f32 %v2850_v55, %v1764_v63  ;;  %v4028_v48 = vpop.f32.mrb[2].mxu0 }
 0x26b   : > { %v5794_v47 = vadd.f32 %v4028_v48, %v3858_v37  ;;  %v2853_v35 = vpop.f32.mrb[3].mxu0  ;;  %v3049_v38 = vmul.f32 %v5790_v51, %v5790_v51 }
 0x26c   : > { %v5796_v32 = vadd.f32 %v2853_v35, %v1767_v60  ;;  %v3047_v2 = vmul.f32 %v5792_v39, %v5792_v39 }
 0x26d   : > { %v3050_v57 = vmul.f32 %v5794_v47, %v5794_v47 }
 0x26e   : > { %v3009_v59 = vadd.f32 %v5796_v32, %v5792_v39  ;;  %v3048_v16 = vmul.f32 %v5796_v32, %v5796_v32 }
 0x270   : > { %v3010_v29 = vadd.f32 %v5790_v51, %v3009_v59  ;;  %v3079_v1 = vadd.f32 %v3048_v16, %v3047_v2  ;;  %v4031_v5 = vpop.f32.mrb[4].mxu0 }
 0x271   : > { %v5807_v52 = vadd.f32 %v4031_v5, %v3861_v4  ;;  %v2866_v6 = vpop.f32.mrb[5].mxu0 }
 0x272   : > { %v3080_v27 = vadd.f32 %v3079_v1, %v3049_v38  ;;  %v5811_v45 = vadd.f32 %v2866_v6, %v1780_v18  ;;  %v3011_v8 = vadd.f32 %v5794_v47, %v3010_v29  ;;  %v4032_v17 = vpop.f32.mrb[6].mxu0 }
 0x273   : > { %v5814_v40 = vadd.f32 %v4032_v17, %v3862_v44  ;;  %v2869_v31 = vpop.f32.mrb[7].mxu0  ;;  %v3053_v23 = vmul.f32 %v5807_v52, %v5807_v52 }
 0x274   : > { %v3012_v7 = vadd.f32 %v5811_v45, %v3011_v8  ;;  %v3051_v22 = vmul.f32 %v5811_v45, %v5811_v45  ;;  %v3081_v34 = vadd.f32 %v3080_v27, %v3050_v57  ;;  %v5819_v50 = vadd.f32 %v2869_v31, %v1783_v56 }
 0x275   : > { %v3054_v26 = vmul.f32 %v5814_v40, %v5814_v40 }
 0x276   : > { %v3082_v19 = vadd.f32 %v3081_v34, %v3051_v22  ;;  %v3013_v20 = vadd.f32 %v5819_v50, %v3012_v7  ;;  %v3052_v42 = vmul.f32 %v5819_v50, %v5819_v50 }
 0x278   : > { %v3014_v0 = vadd.f32 %v5807_v52, %v3013_v20  ;;  %v3083_v53 = vadd.f32 %v3082_v19, %v3052_v42  ;;  %v4035_v33 = vpop.f32.mrb[8].mxu0 }
 0x279   : > { %v5827_v41 = vadd.f32 %v4035_v33, %v3865_v54  ;;  %v2882_v15 = vpop.f32.mrb[9].mxu0 }
 0x27a   : > { %v3084_v12 = vadd.f32 %v3083_v53, %v3053_v23  ;;  %v5831_v49 = vadd.f32 %v2882_v15, %v1796_v9  ;;  %v3015_v21 = vadd.f32 %v5814_v40, %v3014_v0  ;;  %v4036_v30 = vpop.f32.mrb[10].mxu0 }
 0x27b   : > { %v5834_v10 = vadd.f32 %v4036_v30, %v3866_v28  ;;  %v2885_v3 = vpop.f32.mrb[11].mxu0  ;;  %v3057_v60 = vmul.f32 %v5827_v41, %v5827_v41 }
 0x27c   : > { %v3016_v11 = vadd.f32 %v5831_v49, %v3015_v21  ;;  %v3055_v61 = vmul.f32 %v5831_v49, %v5831_v49  ;;  %v3085_v43 = vadd.f32 %v3084_v12, %v3054_v26  ;;  %v5839_v14 = vadd.f32 %v2885_v3, %v1799_v58 }
 0x27d   : > { %v3058_v9 = vmul.f32 %v5834_v10, %v5834_v10 }
 0x27e   : > { %v3086_v46 = vadd.f32 %v3085_v43, %v3055_v61  ;;  %v3017_v63 = vadd.f32 %v5839_v14, %v3016_v11  ;;  %v3056_v37 = vmul.f32 %v5839_v14, %v5839_v14 }
 0x280   : > { %v3018_v4 = vadd.f32 %v5827_v41, %v3017_v63  ;;  %v3087_v18 = vadd.f32 %v3086_v46, %v3056_v37  ;;  %v4039_v44 = vpop.f32.mrb[12].mxu0 }
 0x281   : > { %v5847_v56 = vadd.f32 %v4039_v44, %v3869_v36  ;;  %v2898_v54 = vpop.f32.mrb[13].mxu0 }
 0x282   : > { %v3088_v28 = vadd.f32 %v3087_v18, %v3057_v60  ;;  %v5851_v58 = vadd.f32 %v2898_v54, %v1812_v13  ;;  %v3019_v62 = vadd.f32 %v5834_v10, %v3018_v4  ;;  %v4040_v55 = vpop.f32.mrb[14].mxu0 }
 0x283   : > { %v5855_v48 = vadd.f32 %v4040_v55, %v5786_v24  ;;  %v2901_v35 = vpop.f32.mrb[15].mxu0  ;;  %v3061_v24 = vmul.f32 %v5847_v56, %v5847_v56 }
 0x284   : > { %v3020_v2 = vadd.f32 %v5851_v58, %v3019_v62  ;;  %v3059_v36 = vmul.f32 %v5851_v58, %v5851_v58  ;;  %v3089_v59 = vadd.f32 %v3088_v28, %v3058_v9  ;;  %v5861_v16 = vadd.f32 %v2901_v35, %v5788_v25 }
 0x285   : > { %v3062_v8 = vmul.f32 %v5855_v48, %v5855_v48 }
 0x286   : > { %v3090_v38 = vadd.f32 %v3089_v59, %v3059_v36  ;;  %v3021_v13 = vadd.f32 %v5861_v16, %v3020_v2  ;;  %v3060_v29 = vmul.f32 %v5861_v16, %v5861_v16 }
 0x288   : > { %v3022_v1 = vadd.f32 %v5847_v56, %v3021_v13  ;;  %v3091_v5 = vadd.f32 %v3090_v38, %v3060_v29  ;;  %v4043_v6 = vpop.f32.mrb[16].mxu0  ;;  %v3907_v57 = vpop.f32.mrb[16].mxu1 }
 0x289   : > { %v2914_v27 = vpop.f32.mrb[17].mxu0  ;;  %v5871_v17 = vadd.f32 %v4043_v6, %v3907_v57  ;;  %v2056_v31 = vpop.f32.mrb[17].mxu1 }
 0x28a   : > { %v3092_v25 = vadd.f32 %v3091_v5, %v3061_v24  ;;  %v3023_v7 = vadd.f32 %v5855_v48, %v3022_v1  ;;  %v4044_v22 = vpop.f32.mrb[18].mxu0  ;;  %v5874_v34 = vadd.f32 %v2914_v27, %v2056_v31  ;;  %v3908_v19 = vpop.f32.mrb[18].mxu1 }
 0x28b   : > { %v2917_v20 = vpop.f32.mrb[19].mxu0  ;;  %v5876_v23 = vadd.f32 %v4044_v22, %v3908_v19  ;;  %v2059_v0 = vpop.f32.mrb[19].mxu1  ;;  %v3065_v3 = vmul.f32 %v5871_v17, %v5871_v17 }
 0x28c   : > { %v3093_v42 = vadd.f32 %v3092_v25, %v3062_v8  ;;  %v3024_v53 = vadd.f32 %v5874_v34, %v3023_v7  ;;  %v3063_v33 = vmul.f32 %v5874_v34, %v5874_v34  ;;  %v5881_v15 = vadd.f32 %v2917_v20, %v2059_v0 }
 0x28d   : > { %v3066_v4 = vmul.f32 %v5876_v23, %v5876_v23 }
 0x28e   : > { %v3094_v26 = vadd.f32 %v3093_v42, %v3063_v33  ;;  %v3025_v12 = vadd.f32 %v5881_v15, %v3024_v53  ;;  %v3064_v21 = vmul.f32 %v5881_v15, %v5881_v15 }
 0x290   : > { %v4047_v30 = vpop.f32.mrb[20].mxu0  ;;  %v3026_v11 = vadd.f32 %v5871_v17, %v3025_v12  ;;  %v3095_v61 = vadd.f32 %v3094_v26, %v3064_v21  ;;  %v3911_v43 = vpop.f32.mrb[20].mxu1 }
 0x291   : > { %v2930_v46 = vpop.f32.mrb[21].mxu0  ;;  %v5889_v63 = vadd.f32 %v4047_v30, %v3911_v43  ;;  %v2072_v37 = vpop.f32.mrb[21].mxu1 }
 0x292   : > { %v4048_v60 = vpop.f32.mrb[22].mxu0  ;;  %v3096_v18 = vadd.f32 %v3095_v61, %v3065_v3  ;;  %v5893_v44 = vadd.f32 %v2930_v46, %v2072_v37  ;;  %v3027_v54 = vadd.f32 %v5876_v23, %v3026_v11  ;;  %v3912_v9 = vpop.f32.mrb[22].mxu1 }
 0x293   : > { %v2933_v28 = vpop.f32.mrb[23].mxu0  ;;  %v5896_v62 = vadd.f32 %v4048_v60, %v3912_v9  ;;  %v2075_v55 = vpop.f32.mrb[23].mxu1  ;;  %v3069_v1 = vmul.f32 %v5889_v63, %v5889_v63 }
 0x294   : > { %v3028_v35 = vadd.f32 %v5893_v44, %v3027_v54  ;;  %v3067_v2 = vmul.f32 %v5893_v44, %v5893_v44  ;;  %v3097_v36 = vadd.f32 %v3096_v18, %v3066_v4  ;;  %v5901_v59 = vadd.f32 %v2933_v28, %v2075_v55 }
 0x295   : > { %v3070_v7 = vmul.f32 %v5896_v62, %v5896_v62 }
 0x296   : > { %v3098_v38 = vadd.f32 %v3097_v36, %v3067_v2  ;;  %v3029_v13 = vadd.f32 %v5901_v59, %v3028_v35  ;;  %v3068_v29 = vmul.f32 %v5901_v59, %v5901_v59 }
 0x298   : > { %v4051_v24 = vpop.f32.mrb[24].mxu0  ;;  %v3030_v5 = vadd.f32 %v5889_v63, %v3029_v13  ;;  %v3099_v6 = vadd.f32 %v3098_v38, %v3068_v29  ;;  %v3915_v57 = vpop.f32.mrb[24].mxu1 }
 0x299   : > { %v2946_v27 = vpop.f32.mrb[25].mxu0  ;;  %v5909_v8 = vadd.f32 %v4051_v24, %v3915_v57  ;;  %v2088_v25 = vpop.f32.mrb[25].mxu1 }
 0x29a   : > { %v4052_v31 = vpop.f32.mrb[26].mxu0  ;;  %v3100_v22 = vadd.f32 %v3099_v6, %v3069_v1  ;;  %v5913_v19 = vadd.f32 %v2946_v27, %v2088_v25  ;;  %v3031_v20 = vadd.f32 %v5896_v62, %v3030_v5  ;;  %v3916_v42 = vpop.f32.mrb[26].mxu1 }
 0x29b   : > { %v2949_v0 = vpop.f32.mrb[27].mxu0  ;;  %v5916_v53 = vadd.f32 %v4052_v31, %v3916_v42  ;;  %v2091_v33 = vpop.f32.mrb[27].mxu1  ;;  %v3073_v46 = vmul.f32 %v5909_v8, %v5909_v8 }
 0x29c   : > { %v3032_v26 = vadd.f32 %v5913_v19, %v3031_v20  ;;  %v3071_v12 = vmul.f32 %v5913_v19, %v5913_v19  ;;  %v3101_v21 = vadd.f32 %v3100_v22, %v3070_v7  ;;  %v5921_v30 = vadd.f32 %v2949_v0, %v2091_v33 }
 0x29d   : > { %v3074_v55 = vmul.f32 %v5916_v53, %v5916_v53 }
 0x29e   : > { %v3102_v3 = vadd.f32 %v3101_v21, %v3071_v12  ;;  %v3033_v11 = vadd.f32 %v5921_v30, %v3032_v26  ;;  %v3072_v61 = vmul.f32 %v5921_v30, %v5921_v30 }
 0x2a0   : > { %v4055_v43 = vpop.f32.mrb[28].mxu0  ;;  %v3034_v37 = vadd.f32 %v5909_v8, %v3033_v11  ;;  %v3103_v60 = vadd.f32 %v3102_v3, %v3072_v61  ;;  %v3919_v4 = vpop.f32.mrb[28].mxu1 }
 0x2a1   : > { %v2962_v18 = vpop.f32.mrb[29].mxu0  ;;  %v5929_v54 = vadd.f32 %v4055_v43, %v3919_v4  ;;  %v2104_v9 = vpop.f32.mrb[29].mxu1 }
 0x2a2   : > { %v4056_v28 = vpop.f32.mrb[30].mxu0  ;;  %v3104_v35 = vadd.f32 %v3103_v60, %v3073_v46  ;;  %v5933_v2 = vadd.f32 %v2962_v18, %v2104_v9  ;;  %v3035_v36 = vadd.f32 %v5916_v53, %v3034_v37  ;;  %v3920_v38 = vpop.f32.mrb[30].mxu1 }
 0x2a3   : > { %v2965_v13 = vpop.f32.mrb[31].mxu0  ;;  %v5936_v29 = vadd.f32 %v4056_v28, %v3920_v38  ;;  %v2107_v24 = vpop.f32.mrb[31].mxu1  ;;  %v3077_v7 = vmul.f32 %v5929_v54, %v5929_v54 }
 0x2a4   : > { %v3036_v1 = vadd.f32 %v5933_v2, %v3035_v36  ;;  %v3075_v5 = vmul.f32 %v5933_v2, %v5933_v2  ;;  %v3105_v6 = vadd.f32 %v3104_v35, %v3074_v55  ;;  %v4090_v57 = vadd.f32 %v2965_v13, %v2107_v24 }
 0x2a5   : > { %v3078_v42 = vmul.f32 %v5936_v29, %v5936_v29  ;;  %v3128_v24 = vlaneseq }
 0x2a6   : > { %v3106_v27 = vadd.f32 %v3105_v6, %v3075_v5  ;;  %v3037_v25 = vadd.f32 %v4090_v57, %v3036_v1  ;;  %v3076_v31 = vmul.f32 %v4090_v57, %v4090_v57  ;;  %v3122_v5 = vld [vmem:[%s252_s30] sm:$0x1] }
 0x2a7   : > { %v3129_v1 = vshrl.u32 %v3128_v24, 7 }
 0x2a8   : > { %v3038_v22 = vadd.f32 %v5929_v54, %v3037_v25  ;;  %v3107_v20 = vadd.f32 %v3106_v27, %v3076_v31  ;;  %v3124_v31 = vld [vmem:[%s260_s20] sm:$0x1] }
 0x2a9   : > { %v3130_v6 = vsub.s32 0, %v3129_v1 }
 0x2aa   : > { %v3039_v0 = vadd.f32 %v5936_v29, %v3038_v22  ;;  %v3108_v33 = vadd.f32 %v3107_v20, %v3077_v7 }
 0x2ac   : > { %v3040_v26 = vrot.slane %v3039_v0, 4  ;;  %v3109_v12 = vadd.f32 %v3108_v33, %v3078_v42 }
 0x2ae   : > { %v3041_v21 = vadd.f32 %v3040_v26, %v3039_v0  ;;  %v3110_v3 = vrot.slane %v3109_v12, 4 }
 0x2b0   : > { %v3042_v11 = vrot.slane %v3041_v21, 2  ;;  %v3111_v61 = vadd.f32 %v3110_v3, %v3109_v12 }
 0x2b2   : > { %v3043_v43 = vadd.f32 %v3042_v11, %v3041_v21  ;;  %v3112_v46 = vrot.slane %v3111_v61, 2 }
 0x2b4   : > { %v3044_v37 = vrot.slane %v3043_v43, 1  ;;  %v3113_v60 = vadd.f32 %v3112_v46, %v3111_v61 }
 0x2b6   : > { %v3045_v4 = vadd.f32 %v3044_v37, %v3043_v43  ;;  %v3114_v18 = vrot.slane %v3113_v60, 1 }
 0x2b8   : > { %v3046_v9 = vmul.f32 0.00390625, %v3045_v4  ;;  %v3115_v28 = vadd.f32 %v3114_v18, %v3113_v60 }
 0x2ba   : > { %v3116_v55 = vmul.f32 0.00390625, %v3115_v28  ;;  %v3117_v35 = vmul.f32 %v3046_v9, %v3046_v9 }
 0x2bc   : > { %v3118_v36 = vsub.f32 %v3116_v55, %v3117_v35 }
 0x2be   : > { %v3119_v38 = vmax.f32 %v3118_v36, 0.0 }
 0x2c0   : > { %v3120_v13 = vadd.f32 1e-08, %v3119_v38 }
 0x2c2   : > { %4417 = vrsqrt.f32 %v3120_v13 }
 0x2cc   : > { %v4418_v27 = vpop.eup %4417 }
 0x2cd   : > { %v3123_v25 = vmul.f32 %v4418_v27, %v3122_v5 }
 0x2cf   : > { %v3125_v7 = vmul.f32 %v3123_v25, %v3046_v9  ;;  %v3131_v22 = vrot.slane %v3123_v25, %v3130_v6 }
 0x2d1   : > { %v3126_v20 = vsub.f32 %v3124_v31, %v3125_v7  ;;  %v3162_v42 = vmul.f32 %v4090_v57, %v3131_v22  ;;  %v3133_v0 = vmul.f32 %v5792_v39, %v3131_v22  ;;  %v3134_v33 = vmul.f32 %v5796_v32, %v3131_v22 }
 0x2d2   : > { %v3135_v26 = vmul.f32 %v5790_v51, %v3131_v22  ;;  %v3136_v12 = vmul.f32 %v5794_v47, %v3131_v22  ;;  %v3137_v21 = vmul.f32 %v5811_v45, %v3131_v22  ;;  %v3138_v3 = vmul.f32 %v5819_v50, %v3131_v22 }
 0x2d3   : > { %v5957_v11 = vrot.slane %v3126_v20, %v3130_v6  ;;  %v3139_v61 = vmul.f32 %v5807_v52, %v3131_v22  ;;  %v3140_v43 = vmul.f32 %v5814_v40, %v3131_v22  ;;  %v3141_v57 = vmul.f32 %v5831_v49, %v3131_v22 }
 0x2d4   : > { %v3142_v39 = vmul.f32 %v5839_v14, %v3131_v22  ;;  %v3143_v32 = vmul.f32 %v5827_v41, %v3131_v22  ;;  %v3144_v51 = vmul.f32 %v5834_v10, %v3131_v22  ;;  %v3145_v47 = vmul.f32 %v5851_v58, %v3131_v22 }
 0x2d5   : > { %v3200_v45 = vadd.f32 %v5957_v11, %v3162_v42  ;;  %v3146_v50 = vmul.f32 %v5861_v16, %v3131_v22  ;;  %v3147_v46 = vmul.f32 %v5847_v56, %v3131_v22  ;;  %v3148_v52 = vmul.f32 %v5855_v48, %v3131_v22 }
 0x2d6   : > { %v3149_v40 = vmul.f32 %v5874_v34, %v3131_v22  ;;  %v3150_v49 = vmul.f32 %v5881_v15, %v3131_v22  ;;  %v3151_v14 = vmul.f32 %v5871_v17, %v3131_v22  ;;  %v3152_v41 = vmul.f32 %v5876_v23, %v3131_v22 }
 0x2d7   : > { %3232 = vst [vmem:[%s5974_s10 + $0xe8] sm:$0xff] %v3200_v45  ;;  %v3153_v10 = vmul.f32 %v5893_v44, %v3131_v22  ;;  %v3154_v58 = vmul.f32 %v5901_v59, %v3131_v22  ;;  %v3155_v56 = vmul.f32 %v5889_v63, %v3131_v22  ;;  %v3156_v48 = vmul.f32 %v5896_v62, %v3131_v22 }
 0x2d8   : > { %v3157_v16 = vmul.f32 %v5913_v19, %v3131_v22  ;;  %v3158_v34 = vmul.f32 %v5921_v30, %v3131_v22  ;;  %v3159_v17 = vmul.f32 %v5909_v8, %v3131_v22  ;;  %v3160_v23 = vmul.f32 %v5916_v53, %v3131_v22 }
 0x2d9   : > { %v3161_v15 = vmul.f32 %v5933_v2, %v3131_v22  ;;  %v3163_v37 = vmul.f32 %v5929_v54, %v3131_v22  ;;  %v3164_v44 = vmul.f32 %v5936_v29, %v3131_v22  ;;  %v3171_v63 = vadd.f32 %v5957_v11, %v3133_v0 }
 0x2da   : > { %v3172_v62 = vadd.f32 %v5957_v11, %v3134_v33  ;;  %v3173_v59 = vadd.f32 %v5957_v11, %v3135_v26  ;;  %v3174_v8 = vadd.f32 %v5957_v11, %v3136_v12  ;;  %v3175_v19 = vadd.f32 %v5957_v11, %v3137_v21 }
 0x2db   : > { %v3176_v53 = vadd.f32 %v5957_v11, %v3138_v3  ;;  %v3177_v30 = vadd.f32 %v5957_v11, %v3139_v61  ;;  %v3178_v54 = vadd.f32 %v5957_v11, %v3140_v43  ;;  %v3179_v2 = vadd.f32 %v5957_v11, %v3141_v57  ;;  %3203 = vst [vmem:[%s5974_s10] sm:$0xff] %v3171_v63 }
 0x2dc   : > { %v3180_v29 = vadd.f32 %v5957_v11, %v3142_v39  ;;  %v3181_v60 = vadd.f32 %v5957_v11, %v3143_v32  ;;  %v3182_v4 = vadd.f32 %v5957_v11, %v3144_v51  ;;  %v3183_v18 = vadd.f32 %v5957_v11, %v3145_v47  ;;  %3204 = vst [vmem:[%s5974_s10 + $0x8] sm:$0xff] %v3172_v62 }
 0x2dd   : > { %3205 = vst [vmem:[%s5974_s10 + $0x10] sm:$0xff] %v3173_v59  ;;  %3206 = vst [vmem:[%s5974_s10 + $0x18] sm:$0xff] %v3174_v8  ;;  %v3184_v9 = vadd.f32 %v5957_v11, %v3146_v50  ;;  %v3185_v28 = vadd.f32 %v5957_v11, %v3147_v46  ;;  %v3186_v55 = vadd.f32 %v5957_v11, %v3148_v52 }
 0x2de   : > { %3207 = vst [vmem:[%s5974_s10 + $0x20] sm:$0xff] %v3175_v19  ;;  %v3187_v35 = vadd.f32 %v5957_v11, %v3149_v40  ;;  %3208 = vst [vmem:[%s5974_s10 + $0x28] sm:$0xff] %v3176_v53  ;;  %v3188_v36 = vadd.f32 %v5957_v11, %v3150_v49  ;;  %v3189_v38 = vadd.f32 %v5957_v11, %v3151_v14 }
 0x2df   : > { %3209 = vst [vmem:[%s5974_s10 + $0x30] sm:$0xff] %v3177_v30  ;;  %3210 = vst [vmem:[%s5974_s10 + $0x38] sm:$0xff] %v3178_v54  ;;  %v3190_v13 = vadd.f32 %v5957_v11, %v3152_v41  ;;  %v3191_v24 = vadd.f32 %v5957_v11, %v3153_v10  ;;  %v3192_v1 = vadd.f32 %v5957_v11, %v3154_v58 }
 0x2e0   : > { %3211 = vst [vmem:[%s5974_s10 + $0x40] sm:$0xff] %v3179_v2  ;;  %3212 = vst [vmem:[%s5974_s10 + $0x48] sm:$0xff] %v3180_v29  ;;  %v3193_v5 = vadd.f32 %v5957_v11, %v3155_v56  ;;  %v3194_v6 = vadd.f32 %v5957_v11, %v3156_v48  ;;  %v3195_v27 = vadd.f32 %v5957_v11, %v3157_v16 }
 0x2e1   : > { %3213 = vst [vmem:[%s5974_s10 + $0x50] sm:$0xff] %v3181_v60  ;;  %3214 = vst [vmem:[%s5974_s10 + $0x58] sm:$0xff] %v3182_v4  ;;  %v3196_v25 = vadd.f32 %v5957_v11, %v3158_v34  ;;  %v3197_v31 = vadd.f32 %v5957_v11, %v3159_v17  ;;  %v3198_v7 = vadd.f32 %v5957_v11, %v3160_v23 }
 0x2e2   : > { %3215 = vst [vmem:[%s5974_s10 + $0x60] sm:$0xff] %v3183_v18  ;;  %3216 = vst [vmem:[%s5974_s10 + $0x68] sm:$0xff] %v3184_v9  ;;  %v3199_v22 = vadd.f32 %v5957_v11, %v3161_v15  ;;  %v3201_v20 = vadd.f32 %v5957_v11, %v3163_v37  ;;  %v3202_v42 = vadd.f32 %v5957_v11, %v3164_v44 }
 0x2e3   : > { %3217 = vst [vmem:[%s5974_s10 + $0x70] sm:$0xff] %v3185_v28  ;;  %3218 = vst [vmem:[%s5974_s10 + $0x78] sm:$0xff] %v3186_v55 }
 0x2e4   : > { %3219 = vst [vmem:[%s5974_s10 + $0x80] sm:$0xff] %v3187_v35  ;;  %3220 = vst [vmem:[%s5974_s10 + $0x88] sm:$0xff] %v3188_v36 }
 0x2e5   : > { %3221 = vst [vmem:[%s5974_s10 + $0x90] sm:$0xff] %v3189_v38  ;;  %3222 = vst [vmem:[%s5974_s10 + $0x98] sm:$0xff] %v3190_v13 }
 0x2e6   : > { %3223 = vst [vmem:[%s5974_s10 + $0xa0] sm:$0xff] %v3191_v24  ;;  %3224 = vst [vmem:[%s5974_s10 + $0xa8] sm:$0xff] %v3192_v1 }
 0x2e7   : > { %3225 = vst [vmem:[%s5974_s10 + $0xb0] sm:$0xff] %v3193_v5  ;;  %3226 = vst [vmem:[%s5974_s10 + $0xb8] sm:$0xff] %v3194_v6 }
 0x2e8   : > { %3227 = vst [vmem:[%s5974_s10 + $0xc0] sm:$0xff] %v3195_v27  ;;  %3228 = vst [vmem:[%s5974_s10 + $0xc8] sm:$0xff] %v3196_v25 }
 0x2e9   : > { %3229 = vst [vmem:[%s5974_s10 + $0xd0] sm:$0xff] %v3197_v31  ;;  %3230 = vst [vmem:[%s5974_s10 + $0xd8] sm:$0xff] %v3198_v7 }
 0x2ea   : > { %3231 = vst [vmem:[%s5974_s10 + $0xe0] sm:$0xff] %v3199_v22  ;;  %3233 = vst [vmem:[%s5974_s10 + $0xf0] sm:$0xff] %v3201_v20 }
 0x2eb   : > { %3234 = vst [vmem:[%s5974_s10 + $0xf8] sm:$0xff] %v3202_v42 }
 0x2ec   : > { %4554 = shalt.err (!%p4551_p3)
}
 0x2ed   : > { %s4555_s5 = scalar_lea.hbm %s6043_s25, 4096  ;;  %s4559_s29 = scalar_lea.hbm %s6105_s4, 8192 }
 0x2ee   : > { %p4556_p0 = scmp.ne.s32.totalorder %s6043_s25, %s4555_s5  ;;  %p4560_p7 = scmp.lt.u32.totalorder %s6043_s25, %s6105_s4 }
 0x2ef   : > { %p4561_p10 = scmp.lt.u32.totalorder %s4559_s29, %s4555_s5  ;;  %p4563_p12 = scmp.lt.u32.totalorder %s4555_s5, %s6043_s25 }
 0x2f0   : > { %p4557_p9 = pnand %p4556_p0, %p6209_p13 }
 0x2f1   : > { %p4562_p11 = por %p4561_p10, %p4560_p7 }
 0x2f2   : > { %p4558_p8 = pneg %p4557_p9 }
 0x2f3   : > { %p4564_p4 = por %p4563_p12, %p4562_p11 }
 0x2f5   : > { %p4565_p6 = pnand %p4564_p4, %p4558_p8 }
 0x2f7   : > { %4568 = shalt.err (!%p4565_p6)
}
 0x2f8   : > { %s4624_s21 = smov 128   ;;  %s4625_s10 = smov 8  }
 0x2f9   : > { %4338 = dma.vmem_to_hbm [thread:$0]  (%p6209_p13), %s6045_s23, 4096, %s6043_s25, %s3236_s26, %s4624_s21, %s4624_s21, %s4625_s10  }
 0x2fa PF: > { %s3264_s6 = sand.u32 1, %s4603_s15   ;;  %p6210_p5 = scmp.ne.s32.totalorder %s6154_s13, 0 }
 0x2fb   : > { %p6211_p1 = scmp.ge.s32.totalorder %s4615_s18, 2  ;;  %s3265_s12 = scalar_lea.sflag [#allocation4], %s3264_s6 }
 0x2fd   : > { %p4355_p2 = pnand %p6211_p1, %p6210_p5 }
 0x2ff   : > { %4598 = dma.done.wait (!%p4355_p2), %s3265_s12, 4096  }
 0x300   : > { %4600 = vsyncadd (!%p4355_p2), %s3265_s12, 4294963200  ;;  %p18_p3 = scmp.ge.s32.totalorder %s4672_s19, 4   ;;  %s6212_s15 = smov %s4607_s16 }
 0x301   : > { %s6213_s16 = smov %s4611_s17  ;;  %s6214_s17 = smov %s4681_s22 }
 0x302   : > { %s6215_s18 = smov %s4672_s19  ;;  %20 = sbr.rel (!%p18_p3) target bundleno = 8 (0x8), region = 115 }
 0x309   :  { %3270 = vsyncpa [#allocation3], 1 }
 0x30a   :  { %3272 = vsyncpa [#allocation3 + $0x1], 1 }
 0x30b   :  { %3273 = vsyncpa [#allocation6], 1 }
 0x30c   :  { %3274 = vsyncpa [#allocation4], 1 }
 0x30d   :  { %3276 = vsyncpa [#allocation4 + $0x1], 1 }

</bundles_post_ra>
